<compile_context>
chip_gen: v7x
topology: tpu7x:2x2x1
jax: 0.10.0
libtpu: 0.0.40
codegen_flags: <defaults>
</compile_context>

<pallas_src>
import functools

import jax
import jax.numpy as jnp
from jax.experimental import pallas as pl
from jax.experimental.pallas import tpu as pltpu

NUM_CLASSES = 2
_NEG = -1e30  # "never selectable" pad value (avoid -inf so 0 * pad never becomes NaN)


def _round_up(x, m):
    return ((x + m - 1) // m) * m


def _multibox_loss_kernel(loc_p_ref, loc_t_ref, conf_r_ref, tgt_r_ref,
                          conf_c_ref, tgt_c_ref, out_ref,
                          cl_sc, clc_sc, acc_sc,
                          *, m_real, mp, bb, tq, tk, nq, nk, qpad, kpad):
    # ---------------- lane-dense row section (rows on sublanes, boxes on lanes) ----------
    loc_p = loc_p_ref[0]            # [BB, 4*MP]
    loc_t = loc_t_ref[0]            # [BB, 4*MP]
    conf_r = conf_r_ref[0]          # [BB, 2*MP]
    tgt_r = tgt_r_ref[0]            # [BB, MP] int32

    pos = tgt_r > 0                                              # [BB, MP]
    pos_f = pos.astype(jnp.float32)
    num_pos_row = jnp.sum(pos_f, axis=1, keepdims=True)          # [BB, 1]
    num_pos_blk = jnp.sum(num_pos_row)                           # scalar

    # smooth-L1 (beta=1), summed over positive boxes (pad boxes/rows have pos == False)
    d = loc_p - loc_t
    ad = jnp.abs(d)
    sl1 = jnp.where(ad < 1.0, 0.5 * d * d, ad - 0.5)             # [BB, 4*MP]
    sl1_box = (sl1[:, 0:mp] + sl1[:, mp:2 * mp]
               + sl1[:, 2 * mp:3 * mp] + sl1[:, 3 * mp:4 * mp])  # [BB, MP]
    loc_loss = jnp.sum(sl1_box * pos_f)

    # per-box cross entropy, 2-class closed form (EUP exp/log; no class reduction)
    x0 = conf_r[:, 0:mp]
    x1 = conf_r[:, mp:2 * mp]
    lse = jnp.maximum(x0, x1) + jnp.log(1.0 + jnp.exp(-jnp.abs(x0 - x1)))
    ce = lse - jnp.where(pos, x1, x0)                            # [BB, MP]
    conf_pos = jnp.sum(ce * pos_f)

    # mining input: positives zeroed, pad boxes forced to -BIG (never rank before / never selected)
    cl = jnp.where(pos, 0.0, ce)
    if mp > m_real:
        lane_m = jax.lax.broadcasted_iota(jnp.int32, (1, mp), 1)
        cl = jnp.where(lane_m < m_real, cl, _NEG)
    if kpad > mp:                                  # only the padded tail is initialized
        cl_sc[:, mp:kpad] = jnp.full((bb, kpad - mp), _NEG, jnp.float32)
    cl_sc[:, 0:mp] = cl                            # key operand (lane-dense rows)

    # ---------------- column section: boxes on sublanes (query operand) -----------------
    xc = conf_c_ref[0]              # [2, MP, BB]
    x0c = xc[0]                     # [MP, BB]
    x1c = xc[1]                     # [MP, BB]
    tc = tgt_c_ref[0]               # [MP, BB] int32
    pos_c = tc > 0
    lse_c = jnp.maximum(x0c, x1c) + jnp.log(1.0 + jnp.exp(-jnp.abs(x0c - x1c)))
    ce_c = lse_c - jnp.where(pos_c, x1c, x0c)
    cl_c = jnp.where(pos_c, 0.0, ce_c)
    if mp > m_real:
        sub_m = jax.lax.broadcasted_iota(jnp.int32, (mp, 1), 0)
        cl_c = jnp.where(sub_m < m_real, cl_c, _NEG)
    if qpad > mp:
        clc_sc[mp:qpad, :] = jnp.full((qpad - mp, bb), _NEG, jnp.float32)
    clc_sc[0:mp, :] = cl_c

    num_neg_row = jnp.minimum(3.0 * num_pos_row, jnp.float32(m_real - 1))   # [BB, 1]

    # ---------------- hard-negative mining: TQ x TK tiled, deferred reduction -----------
    # rank[j] = #{k : cl[k] > cl[j]  or  (cl[k] == cl[j] and k < j)}  (exact, deterministic
    # descending-stable-sort rank).  The boolean blocks are accumulated elementwise into
    # acc_sc across key chunks (VPU only); one lane reduce per query tile gives rank.
    iota_q = jax.lax.broadcasted_iota(jnp.int32, (tq, 1), 0)     # hoisted
    lane_k = jax.lax.broadcasted_iota(jnp.int32, (1, tk), 1)     # hoisted
    unroll_k = nk <= 8

    conf_neg = jnp.float32(0.0)
    for b in range(bb):                                          # static over batch rows
        num_neg_b = num_neg_row[b, 0]

        def q_body(qi, carry, b=b, num_neg_b=num_neg_b):
            q0 = pl.multiple_of(qi * tq, tq)
            cl_q = clc_sc[pl.ds(q0, tq), b:b + 1]                # [TQ, 1]
            idx_q = q0 + iota_q                                  # [TQ, 1]
            acc_sc[...] = jnp.zeros_like(acc_sc)

            def k_body(kc, dummy):
                k0 = pl.multiple_of(kc * tk, tk)
                cl_k = cl_sc[b:b + 1, pl.ds(k0, tk)]             # [1, TK]
                thr = idx_q - k0                                 # [TQ, 1]
                before = (cl_k > cl_q) | ((cl_k == cl_q) & (lane_k < thr))
                acc_sc[...] += before.astype(jnp.float32)        # deferred reduction
                return dummy

            jax.lax.fori_loop(0, nk, k_body, 0, unroll=unroll_k)

            rank = jnp.sum(acc_sc[...], axis=1, keepdims=True)   # [TQ, 1] (single reduce)
            neg = rank < num_neg_b
            # selected = pos | neg and sum(ce*selected) == conf_pos + sum(cl*neg), since
            # cl == 0 on positives and cl == ce on (valid) negatives; pad boxes are never neg.
            return carry + jnp.sum(jnp.where(neg, cl_q, 0.0))

        conf_neg = jax.lax.fori_loop(0, nq, q_body, conf_neg)

    conf_loss = conf_pos + conf_neg

    # ---------------- per-grid-step partial sums, lane-dense 128-wide store -------------
    lane_o = jax.lax.broadcasted_iota(jnp.int32, (1, 1, 128), 2)
    out_ref[...] = (jnp.where(lane_o == 0, loc_loss, 0.0)
                    + jnp.where(lane_o == 1, conf_loss, 0.0)
                    + jnp.where(lane_o == 2, num_pos_blk, 0.0))


def _vmem_limit_bytes(mp, bb, tq, tk, qpad, kpad):
    """Rough VMEM need; only raise the scoped limit when the 32 MiB default is tight."""
    blk = (2 * bb * 4 * mp * 4          # loc preds + targets
           + bb * 2 * mp * 4            # conf row
           + bb * mp * 4                # targets row
           + 2 * mp * bb * 4            # conf col
           + mp * bb * 4                # targets col
           + 128 * 4)                   # output
    scratch = (bb * kpad + qpad * 128 + tq * tk) * 4     # clc padded to 128 lanes
    transient = (4 * bb * 4 * mp + 2 * tq * tk) * 4
    est = 2 * blk + scratch + transient + (4 << 20)
    if est <= (30 << 20):
        return None
    return min(int(est * 1.25), 100 << 20)


def multibox_loss(loc_preds, loc_targets, conf_preds, conf_targets, *,
                  block_batch=8, q_tile=512, k_tile=512):
    B, M, four = loc_preds.shape
    assert four == 4
    C = conf_preds.shape[-1]
    assert C == NUM_CLASSES
    assert conf_targets.shape == (B, M)

    MP = _round_up(M, 128)
    assert MP < (1 << 23)       # f32 rank counts stay exact
    BB = max(1, min(block_batch, B))
    G = -(-B // BB)
    BP = G * BB

    TQ = max(128, (min(q_tile, MP) // 128) * 128)
    TK = max(128, (min(k_tile, MP) // 128) * 128)
    QPAD = _round_up(MP, TQ)
    KPAD = _round_up(MP, TK)
    NQ = QPAD // TQ
    NK = KPAD // TK

    f32, i32 = jnp.float32, jnp.int32
    locp = loc_preds.astype(f32)
    loct = loc_targets.astype(f32)
    confp = conf_preds.astype(f32)
    conft = conf_targets.astype(i32)

    # pad boxes to MP and batch to BP with zeros — padded boxes/rows are provably inert
    # (targets 0 => not positive; rank of a -BIG box >= M > num_neg => never selected).
    pad_m, pad_b = MP - M, BP - B
    locp = jnp.pad(locp, ((0, pad_b), (0, pad_m), (0, 0)))
    loct = jnp.pad(loct, ((0, pad_b), (0, pad_m), (0, 0)))
    confp = jnp.pad(confp, ((0, pad_b), (0, pad_m), (0, 0)))
    conft = jnp.pad(conft, ((0, pad_b), (0, pad_m)))

    # lane-dense "row" layouts: BB batch rows on sublanes, (coord/class, box) on lanes
    loc_p_r = jnp.transpose(locp, (0, 2, 1)).reshape(G, BB, 4 * MP)
    loc_t_r = jnp.transpose(loct, (0, 2, 1)).reshape(G, BB, 4 * MP)
    conf_p_r = jnp.transpose(confp, (0, 2, 1)).reshape(G, BB, 2 * MP)
    conf_t_r = conft.reshape(G, BB, MP)

    # "column" layouts for the mining query operand: boxes on sublanes, batch rows on lanes
    conf_p_c = jnp.transpose(confp.reshape(G, BB, MP, 2), (0, 3, 2, 1))   # [G, 2, MP, BB]
    conf_t_c = jnp.transpose(conft.reshape(G, BB, MP), (0, 2, 1))         # [G, MP, BB]

    kernel = functools.partial(
        _multibox_loss_kernel,
        m_real=M, mp=MP, bb=BB, tq=TQ, tk=TK, nq=NQ, nk=NK, qpad=QPAD, kpad=KPAD)

    cost = pl.CostEstimate(
        flops=int(BP * (7 * QPAD * KPAD + 64 * MP)),
        transcendentals=int(4 * BP * MP),
        bytes_accessed=int(4 * BP * MP * (4 + 4 + 2 + 1 + 2 + 1) + G * 512),
    )

    partials = pl.pallas_call(
        kernel,
        out_shape=jax.ShapeDtypeStruct((G, 1, 128), jnp.float32),
        grid=(G,),
        in_specs=[
            pl.BlockSpec((1, BB, 4 * MP), lambda g: (g, 0, 0)),
            pl.BlockSpec((1, BB, 4 * MP), lambda g: (g, 0, 0)),
            pl.BlockSpec((1, BB, 2 * MP), lambda g: (g, 0, 0)),
            pl.BlockSpec((1, BB, MP), lambda g: (g, 0, 0)),
            pl.BlockSpec((1, 2, MP, BB), lambda g: (g, 0, 0, 0)),
            pl.BlockSpec((1, MP, BB), lambda g: (g, 0, 0)),
        ],
        out_specs=pl.BlockSpec((1, 1, 128), lambda g: (g, 0, 0)),
        scratch_shapes=[
            pltpu.VMEM((BB, KPAD), jnp.float32),     # lane-dense cl rows (key operand)
            pltpu.VMEM((QPAD, BB), jnp.float32),     # column cl (query operand)
            pltpu.VMEM((TQ, TK), jnp.float32),       # deferred-reduction accumulator
        ],
        compiler_params=pltpu.CompilerParams(
            dimension_semantics=("parallel",),
            vmem_limit_bytes=_vmem_limit_bytes(MP, BB, TQ, TK, QPAD, KPAD)),
        cost_estimate=cost,
    )(loc_p_r, loc_t_r, conf_p_r, conf_t_r, conf_p_c, conf_t_c)

    # tiny finalize: reduce per-step partials, normalize, zero-guard.
    loc_sum = jnp.sum(partials[:, 0, 0])
    conf_sum = jnp.sum(partials[:, 0, 1])
    n_match = jnp.sum(partials[:, 0, 2])
    total = (loc_sum + conf_sum) / jnp.maximum(n_match, 1.0)
    return jnp.where(n_match > 0.0, total, 0.0)


def _reference_loss(loc_preds, loc_targets, conf_preds, conf_targets):
    """Pure-JAX reference of the same forward pass (for validation)."""
    B, M, C = conf_preds.shape
    pos = conf_targets > 0
    num_matched = jnp.sum(pos.astype(jnp.float32))

    d = loc_preds - loc_targets
    ad = jnp.abs(d)
    sl1 = jnp.where(ad < 1.0, 0.5 * d * d, ad - 0.5)
    loc_loss = jnp.sum(sl1 * pos[:, :, None].astype(jnp.float32))

    row_max = jnp.max(conf_preds, axis=-1, keepdims=True)
    lse = jnp.log(jnp.sum(jnp.exp(conf_preds - row_max), axis=-1)) + row_max[..., 0]
    gathered = jnp.take_along_axis(conf_preds, conf_targets[..., None], axis=-1)[..., 0]
    ce = lse - gathered

    cl = jnp.where(pos, 0.0, ce)
    greater = (cl[:, None, :] > cl[:, :, None]) | (
        (cl[:, None, :] == cl[:, :, None])
        & (jnp.arange(M)[None, None, :] < jnp.arange(M)[None, :, None]))
    rank = jnp.sum(greater.astype(jnp.int32), axis=2)
    num_pos = jnp.sum(pos.astype(jnp.int32), axis=1, keepdims=True)
    num_neg = jnp.minimum(3 * num_pos, M - 1)
    neg = rank < num_neg

    sel = (pos | neg).astype(jnp.float32)
    conf_loss = jnp.sum(ce * sel)
    total = (loc_loss + conf_loss) / jnp.maximum(num_matched, 1.0)
    return jnp.where(num_matched > 0.0, total, 0.0)


if __name__ == "__main__":
    key = jax.random.PRNGKey(0)
    k1, k2, k3, k4 = jax.random.split(key, 4)

    # main check: B=2, M=256, 2 key chunks and 2 query tiles per row
    B, M, C = 2, 256, NUM_CLASSES
    loc_preds = jax.random.normal(k1, (B, M, 4), dtype=jnp.float32)
    loc_targets = jax.random.normal(k2, (B, M, 4), dtype=jnp.float32)
    conf_preds = jax.random.normal(k3, (B, M, C), dtype=jnp.float32)
    conf_targets = jax.random.bernoulli(k4, 0.25, (B, M)).astype(jnp.int32)
    conf_targets = conf_targets.at[0, 0].set(1)   # guarantee at least one matched box

    loss = multibox_loss(loc_preds, loc_targets, conf_preds, conf_targets,
                         block_batch=8, q_tile=128, k_tile=128)
    jax.block_until_ready(loss)
    ref = _reference_loss(loc_preds, loc_targets, conf_preds, conf_targets)
    assert jnp.isfinite(loss), "loss is not finite"
    assert jnp.allclose(loss, ref, atol=2e-4, rtol=2e-4), (loss, ref)

    # second config: exercises box padding (M=200 -> 256), batch padding (B=3, BB=2)
    # and a length-2 parallel grid.
    l1, l2, l3, l4 = jax.random.split(jax.random.PRNGKey(1), 4)
    B2, M2 = 3, 200
    lp = jax.random.normal(l1, (B2, M2, 4), dtype=jnp.float32)
    lt = jax.random.normal(l2, (B2, M2, 4), dtype=jnp.float32)
    cp = jax.random.normal(l3, (B2, M2, C), dtype=jnp.float32)
    ct = jax.random.bernoulli(l4, 0.2, (B2, M2)).astype(jnp.int32)
    ct = ct.at[0, 0].set(1)
    loss2 = multibox_loss(lp, lt, cp, ct, block_batch=2, q_tile=128, k_tile=128)
    jax.block_until_ready(loss2)
    ref2 = _reference_loss(lp, lt, cp, ct)
    assert jnp.allclose(loss2, ref2, atol=2e-4, rtol=2e-4), (loss2, ref2)

    print("KERNEL_OK")
</pallas_src>

<mosaic_0001>
module attributes {stable_mosaic.version = 11 : i64} {
  func.func @_multibox_loss_kernel(%arg0: i32, %arg1: memref<1x2x1024xf32, #tpu.memory_space<vmem>>, %arg2: memref<1x2x1024xf32, #tpu.memory_space<vmem>>, %arg3: memref<1x2x512xf32, #tpu.memory_space<vmem>>, %arg4: memref<1x2x256xi32, #tpu.memory_space<vmem>>, %arg5: memref<1x2x256x2xf32, #tpu.memory_space<vmem>>, %arg6: memref<1x256x2xi32, #tpu.memory_space<vmem>>, %arg7: memref<1x1x128xf32, #tpu.memory_space<vmem>>, %arg8: memref<2x256xf32, #tpu.memory_space<vmem>>, %arg9: memref<256x2xf32, #tpu.memory_space<vmem>>, %arg10: memref<128x128xf32, #tpu.memory_space<vmem>>) attributes {dimension_semantics = [#tpu.dimension_semantics<parallel>], iteration_bounds = array<i64: 1>, scalar_prefetch = 0 : i64, scratch_operands = 3 : i64, tpu.core_type = #tpu.core_type<tc>, window_params = [{transform_indices = @transform_0, window_bounds = array<i64: 1, 2, 1024>}, {transform_indices = @transform_1, window_bounds = array<i64: 1, 2, 1024>}, {transform_indices = @transform_2, window_bounds = array<i64: 1, 2, 512>}, {transform_indices = @transform_3, window_bounds = array<i64: 1, 2, 256>}, {transform_indices = @transform_4, window_bounds = array<i64: 1, 2, 256, 2>}, {transform_indices = @transform_5, window_bounds = array<i64: 1, 256, 2>}, {transform_indices = @transform_6, window_bounds = array<i64: 1, 1, 128>}]} {
    %c0 = arith.constant 0 : index
    %c0_0 = arith.constant 0 : index
    %c0_1 = arith.constant 0 : index
    %0 = vector.load %arg1[%c0, %c0_0, %c0_1] : memref<1x2x1024xf32, #tpu.memory_space<vmem>>, vector<1x2x1024xf32>
    %1 = vector.shape_cast %0 : vector<1x2x1024xf32> to vector<2x1024xf32>
    %c0_2 = arith.constant 0 : index
    %c0_3 = arith.constant 0 : index
    %c0_4 = arith.constant 0 : index
    %2 = vector.load %arg2[%c0_2, %c0_3, %c0_4] : memref<1x2x1024xf32, #tpu.memory_space<vmem>>, vector<1x2x1024xf32>
    %3 = vector.shape_cast %2 : vector<1x2x1024xf32> to vector<2x1024xf32>
    %c0_5 = arith.constant 0 : index
    %c0_6 = arith.constant 0 : index
    %c0_7 = arith.constant 0 : index
    %4 = vector.load %arg3[%c0_5, %c0_6, %c0_7] : memref<1x2x512xf32, #tpu.memory_space<vmem>>, vector<1x2x512xf32>
    %5 = vector.shape_cast %4 : vector<1x2x512xf32> to vector<2x512xf32>
    %c0_8 = arith.constant 0 : index
    %c0_9 = arith.constant 0 : index
    %c0_10 = arith.constant 0 : index
    %6 = vector.load %arg4[%c0_8, %c0_9, %c0_10] : memref<1x2x256xi32, #tpu.memory_space<vmem>>, vector<1x2x256xi32>
    %7 = vector.shape_cast %6 : vector<1x2x256xi32> to vector<2x256xi32>
    %c0_i32 = arith.constant 0 : i32
    %8 = vector.broadcast %c0_i32 : i32 to vector<2x256xi32>
    %9 = arith.cmpi sgt, %7, %8 : vector<2x256xi32>
    %10 = arith.extui %9 : vector<2x256xi1> to vector<2x256xi32>
    %11 = arith.sitofp %10 : vector<2x256xi32> to vector<2x256xf32>
    %cst = arith.constant dense<0.000000e+00> : vector<2xf32>
    %12 = vector.multi_reduction <add>, %11, %cst [1] : vector<2x256xf32> to vector<2xf32>
    %13 = vector.shape_cast %12 : vector<2xf32> to vector<2x1xf32>
    %14 = vector.shape_cast %13 : vector<2x1xf32> to vector<1x2x1xf32>
    %cst_11 = arith.constant dense<0.000000e+00> : vector<1xf32>
    %15 = vector.multi_reduction <add>, %14, %cst_11 [1, 2] : vector<1x2x1xf32> to vector<1xf32>
    %16 = vector.shape_cast %15 : vector<1xf32> to vector<1x1x1xf32>
    %17 = vector.extract %16[0, 0, 0] : f32 from vector<1x1x1xf32>
    %18 = arith.subf %1, %3 : vector<2x1024xf32>
    %19 = math.absf %18 : vector<2x1024xf32>
    %cst_12 = arith.constant 1.000000e+00 : f32
    %20 = vector.broadcast %cst_12 : f32 to vector<2x1024xf32>
    %21 = arith.cmpf olt, %19, %20 : vector<2x1024xf32>
    %cst_13 = arith.constant 5.000000e-01 : f32
    %22 = vector.broadcast %cst_13 : f32 to vector<2x1024xf32>
    %23 = arith.mulf %22, %18 : vector<2x1024xf32>
    %24 = arith.mulf %23, %18 : vector<2x1024xf32>
    %cst_14 = arith.constant 5.000000e-01 : f32
    %25 = vector.broadcast %cst_14 : f32 to vector<2x1024xf32>
    %26 = arith.subf %19, %25 : vector<2x1024xf32>
    %27 = arith.select %21, %24, %26 : vector<2x1024xi1>, vector<2x1024xf32>
    %28 = vector.extract_strided_slice %27 {offsets = [0, 0], sizes = [2, 256], strides = [1, 1]} : vector<2x1024xf32> to vector<2x256xf32>
    %29 = vector.extract_strided_slice %27 {offsets = [0, 256], sizes = [2, 256], strides = [1, 1]} : vector<2x1024xf32> to vector<2x256xf32>
    %30 = arith.addf %28, %29 : vector<2x256xf32>
    %31 = vector.extract_strided_slice %27 {offsets = [0, 512], sizes = [2, 256], strides = [1, 1]} : vector<2x1024xf32> to vector<2x256xf32>
    %32 = arith.addf %30, %31 : vector<2x256xf32>
    %33 = vector.extract_strided_slice %27 {offsets = [0, 768], sizes = [2, 256], strides = [1, 1]} : vector<2x1024xf32> to vector<2x256xf32>
    %34 = arith.addf %32, %33 : vector<2x256xf32>
    %35 = arith.mulf %34, %11 : vector<2x256xf32>
    %36 = vector.shape_cast %35 : vector<2x256xf32> to vector<1x2x256xf32>
    %cst_15 = arith.constant dense<0.000000e+00> : vector<1xf32>
    %37 = vector.multi_reduction <add>, %36, %cst_15 [1, 2] : vector<1x2x256xf32> to vector<1xf32>
    %38 = vector.shape_cast %37 : vector<1xf32> to vector<1x1x1xf32>
    %39 = vector.extract %38[0, 0, 0] : f32 from vector<1x1x1xf32>
    %40 = vector.extract_strided_slice %5 {offsets = [0, 0], sizes = [2, 256], strides = [1, 1]} : vector<2x512xf32> to vector<2x256xf32>
    %41 = vector.extract_strided_slice %5 {offsets = [0, 256], sizes = [2, 256], strides = [1, 1]} : vector<2x512xf32> to vector<2x256xf32>
    %42 = arith.maximumf %40, %41 : vector<2x256xf32>
    %43 = arith.subf %40, %41 : vector<2x256xf32>
    %44 = math.absf %43 : vector<2x256xf32>
    %cst_16 = arith.constant 0.000000e+00 : f32
    %45 = vector.broadcast %cst_16 : f32 to vector<2x256xf32>
    %46 = arith.subf %45, %44 : vector<2x256xf32>
    %47 = math.exp %46 : vector<2x256xf32>
    %cst_17 = arith.constant 1.000000e+00 : f32
    %48 = vector.broadcast %cst_17 : f32 to vector<2x256xf32>
    %49 = arith.addf %48, %47 : vector<2x256xf32>
    %50 = math.log %49 : vector<2x256xf32>
    %51 = arith.addf %42, %50 : vector<2x256xf32>
    %52 = arith.select %9, %41, %40 : vector<2x256xi1>, vector<2x256xf32>
    %53 = arith.subf %51, %52 : vector<2x256xf32>
    %54 = arith.mulf %53, %11 : vector<2x256xf32>
    %55 = vector.shape_cast %54 : vector<2x256xf32> to vector<1x2x256xf32>
    %cst_18 = arith.constant dense<0.000000e+00> : vector<1xf32>
    %56 = vector.multi_reduction <add>, %55, %cst_18 [1, 2] : vector<1x2x256xf32> to vector<1xf32>
    %57 = vector.shape_cast %56 : vector<1xf32> to vector<1x1x1xf32>
    %58 = vector.extract %57[0, 0, 0] : f32 from vector<1x1x1xf32>
    %cst_19 = arith.constant 0.000000e+00 : f32
    %59 = vector.broadcast %cst_19 : f32 to vector<2x256xf32>
    %60 = arith.select %9, %59, %53 : vector<2x256xi1>, vector<2x256xf32>
    %c0_20 = arith.constant 0 : index
    %c0_21 = arith.constant 0 : index
    %61 = vector.load %arg8[%c0_20, %c0_21] : memref<2x256xf32, #tpu.memory_space<vmem>>, vector<2x256xf32>
    tpu.vector_store %arg8[%c0_20, %c0_21], %60 {strides = array<i32>} : memref<2x256xf32, #tpu.memory_space<vmem>>, vector<2x256xf32>,
    %c0_22 = arith.constant 0 : index
    %c0_23 = arith.constant 0 : index
    %c0_24 = arith.constant 0 : index
    %c0_25 = arith.constant 0 : index
    %62 = vector.load %arg5[%c0_22, %c0_23, %c0_24, %c0_25] : memref<1x2x256x2xf32, #tpu.memory_space<vmem>>, vector<1x2x256x2xf32>
    %63 = vector.shape_cast %62 : vector<1x2x256x2xf32> to vector<2x256x2xf32>
    %64 = vector.extract_strided_slice %63 {offsets = [0, 0, 0], sizes = [1, 256, 2], strides = [1, 1, 1]} : vector<2x256x2xf32> to vector<1x256x2xf32>
    %65 = vector.shape_cast %64 : vector<1x256x2xf32> to vector<256x2xf32>
    %66 = vector.extract_strided_slice %63 {offsets = [1, 0, 0], sizes = [1, 256, 2], strides = [1, 1, 1]} : vector<2x256x2xf32> to vector<1x256x2xf32>
    %67 = vector.shape_cast %66 : vector<1x256x2xf32> to vector<256x2xf32>
    %c0_26 = arith.constant 0 : index
    %c0_27 = arith.constant 0 : index
    %c0_28 = arith.constant 0 : index
    %68 = vector.load %arg6[%c0_26, %c0_27, %c0_28] : memref<1x256x2xi32, #tpu.memory_space<vmem>>, vector<1x256x2xi32>
    %69 = vector.shape_cast %68 : vector<1x256x2xi32> to vector<256x2xi32>
    %c0_i32_29 = arith.constant 0 : i32
    %70 = vector.broadcast %c0_i32_29 : i32 to vector<256x2xi32>
    %71 = arith.cmpi sgt, %69, %70 : vector<256x2xi32>
    %72 = arith.maximumf %65, %67 : vector<256x2xf32>
    %73 = arith.subf %65, %67 : vector<256x2xf32>
    %74 = math.absf %73 : vector<256x2xf32>
    %cst_30 = arith.constant 0.000000e+00 : f32
    %75 = vector.broadcast %cst_30 : f32 to vector<256x2xf32>
    %76 = arith.subf %75, %74 : vector<256x2xf32>
    %77 = math.exp %76 : vector<256x2xf32>
    %cst_31 = arith.constant 1.000000e+00 : f32
    %78 = vector.broadcast %cst_31 : f32 to vector<256x2xf32>
    %79 = arith.addf %78, %77 : vector<256x2xf32>
    %80 = math.log %79 : vector<256x2xf32>
    %81 = arith.addf %72, %80 : vector<256x2xf32>
    %82 = arith.select %71, %67, %65 : vector<256x2xi1>, vector<256x2xf32>
    %83 = arith.subf %81, %82 : vector<256x2xf32>
    %cst_32 = arith.constant 0.000000e+00 : f32
    %84 = vector.broadcast %cst_32 : f32 to vector<256x2xf32>
    %85 = arith.select %71, %84, %83 : vector<256x2xi1>, vector<256x2xf32>
    %c0_33 = arith.constant 0 : index
    %c0_34 = arith.constant 0 : index
    %86 = vector.load %arg9[%c0_33, %c0_34] : memref<256x2xf32, #tpu.memory_space<vmem>>, vector<256x2xf32>
    tpu.vector_store %arg9[%c0_33, %c0_34], %85 {strides = array<i32>} : memref<256x2xf32, #tpu.memory_space<vmem>>, vector<256x2xf32>,
    %cst_35 = arith.constant 3.000000e+00 : f32
    %87 = vector.broadcast %cst_35 : f32 to vector<2x1xf32>
    %88 = arith.mulf %87, %13 : vector<2x1xf32>
    %cst_36 = arith.constant 2.550000e+02 : f32
    %89 = vector.broadcast %cst_36 : f32 to vector<2x1xf32>
    %90 = arith.minimumf %88, %89 : vector<2x1xf32>
    %91 = tpu.iota {dimensions = array<i32: 0>} : vector<128x1xi32>
    %92 = tpu.iota {dimensions = array<i32: 1>} : vector<1x128xi32>
    %93 = vector.extract_strided_slice %90 {offsets = [0, 0], sizes = [1, 1], strides = [1, 1]} : vector<2x1xf32> to vector<1x1xf32>
    %94 = vector.extract %93[0, 0] : f32 from vector<1x1xf32>
    %cst_37 = arith.constant 0.000000e+00 : f32
    %c0_i32_38 = arith.constant 0 : i32
    %c2_i32 = arith.constant 2 : i32
    %95 = arith.addi %c0_i32_38, %c2_i32 : i32
    %c1_i32 = arith.constant 1 : i32
    %96 = scf.for %arg11 = %c0_i32_38 to %95 step %c1_i32 iter_args(%arg12 = %cst_37) -> (f32)  : i32 {
      %c128_i32 = arith.constant 128 : i32
      %121 = arith.muli %arg11, %c128_i32 : i32
      %122 = tpu.assume_multiple %121, 128 : i32
      %123 = arith.index_cast %122 : i32 to index
      %c0_53 = arith.constant 0 : index
      %124 = vector.load %arg9[%123, %c0_53] : memref<256x2xf32, #tpu.memory_space<vmem>>, vector<128x1xf32>
      %125 = vector.broadcast %122 : i32 to vector<128x1xi32>
      %126 = arith.addi %125, %91 : vector<128x1xi32>
      %cst_54 = arith.constant 0.000000e+00 : f32
      %127 = vector.broadcast %cst_54 : f32 to vector<128x128xf32>
      %c0_55 = arith.constant 0 : index
      %c0_56 = arith.constant 0 : index
      %128 = vector.load %arg10[%c0_55, %c0_56] : memref<128x128xf32, #tpu.memory_space<vmem>>, vector<128x128xf32>
      tpu.vector_store %arg10[%c0_55, %c0_56], %127 {strides = array<i32>} : memref<128x128xf32, #tpu.memory_space<vmem>>, vector<128x128xf32>,
      %c0_i32_57 = arith.constant 0 : i32
      %c128_i32_58 = arith.constant 128 : i32
      %129 = arith.muli %c0_i32_57, %c128_i32_58 : i32
      %130 = tpu.assume_multiple %129, 128 : i32
      %c0_59 = arith.constant 0 : index
      %131 = arith.index_cast %130 : i32 to index
      %132 = vector.load %arg8[%c0_59, %131] : memref<2x256xf32, #tpu.memory_space<vmem>>, vector<1x128xf32>
      %133 = vector.broadcast %130 : i32 to vector<128x1xi32>
      %134 = arith.subi %126, %133 : vector<128x1xi32>
      %135 = vector.broadcast %132 : vector<1x128xf32> to vector<128x128xf32>
      %136 = vector.broadcast %124 : vector<128x1xf32> to vector<128x128xf32>
      %137 = arith.cmpf ogt, %135, %136 : vector<128x128xf32>
      %138 = vector.broadcast %132 : vector<1x128xf32> to vector<128x128xf32>
      %139 = vector.broadcast %124 : vector<128x1xf32> to vector<128x128xf32>
      %140 = arith.cmpf oeq, %138, %139 : vector<128x128xf32>
      %141 = vector.broadcast %92 : vector<1x128xi32> to vector<128x128xi32>
      %142 = vector.broadcast %134 : vector<128x1xi32> to vector<128x128xi32>
      %143 = arith.cmpi slt, %141, %142 : vector<128x128xi32>
      %144 = arith.andi %140, %143 : vector<128x128xi1>
      %145 = arith.ori %137, %144 : vector<128x128xi1>
      %c0_60 = arith.constant 0 : index
      %c0_61 = arith.constant 0 : index
      %146 = vector.load %arg10[%c0_60, %c0_61] : memref<128x128xf32, #tpu.memory_space<vmem>>, vector<128x128xf32>
      %147 = arith.extui %145 : vector<128x128xi1> to vector<128x128xi32>
      %148 = arith.sitofp %147 : vector<128x128xi32> to vector<128x128xf32>
      %149 = arith.addf %146, %148 : vector<128x128xf32>
      %c0_62 = arith.constant 0 : index
      %c0_63 = arith.constant 0 : index
      %150 = vector.load %arg10[%c0_62, %c0_63] : memref<128x128xf32, #tpu.memory_space<vmem>>, vector<128x128xf32>
      tpu.vector_store %arg10[%c0_62, %c0_63], %149 {strides = array<i32>} : memref<128x128xf32, #tpu.memory_space<vmem>>, vector<128x128xf32>,
      %c1_i32_64 = arith.constant 1 : i32
      %c128_i32_65 = arith.constant 128 : i32
      %151 = arith.muli %c1_i32_64, %c128_i32_65 : i32
      %152 = tpu.assume_multiple %151, 128 : i32
      %c0_66 = arith.constant 0 : index
      %153 = arith.index_cast %152 : i32 to index
      %154 = vector.load %arg8[%c0_66, %153] : memref<2x256xf32, #tpu.memory_space<vmem>>, vector<1x128xf32>
      %155 = vector.broadcast %152 : i32 to vector<128x1xi32>
      %156 = arith.subi %126, %155 : vector<128x1xi32>
      %157 = vector.broadcast %154 : vector<1x128xf32> to vector<128x128xf32>
      %158 = vector.broadcast %124 : vector<128x1xf32> to vector<128x128xf32>
      %159 = arith.cmpf ogt, %157, %158 : vector<128x128xf32>
      %160 = vector.broadcast %154 : vector<1x128xf32> to vector<128x128xf32>
      %161 = vector.broadcast %124 : vector<128x1xf32> to vector<128x128xf32>
      %162 = arith.cmpf oeq, %160, %161 : vector<128x128xf32>
      %163 = vector.broadcast %92 : vector<1x128xi32> to vector<128x128xi32>
      %164 = vector.broadcast %156 : vector<128x1xi32> to vector<128x128xi32>
      %165 = arith.cmpi slt, %163, %164 : vector<128x128xi32>
      %166 = arith.andi %162, %165 : vector<128x128xi1>
      %167 = arith.ori %159, %166 : vector<128x128xi1>
      %c0_67 = arith.constant 0 : index
      %c0_68 = arith.constant 0 : index
      %168 = vector.load %arg10[%c0_67, %c0_68] : memref<128x128xf32, #tpu.memory_space<vmem>>, vector<128x128xf32>
      %169 = arith.extui %167 : vector<128x128xi1> to vector<128x128xi32>
      %170 = arith.sitofp %169 : vector<128x128xi32> to vector<128x128xf32>
      %171 = arith.addf %168, %170 : vector<128x128xf32>
      %c0_69 = arith.constant 0 : index
      %c0_70 = arith.constant 0 : index
      %172 = vector.load %arg10[%c0_69, %c0_70] : memref<128x128xf32, #tpu.memory_space<vmem>>, vector<128x128xf32>
      tpu.vector_store %arg10[%c0_69, %c0_70], %171 {strides = array<i32>} : memref<128x128xf32, #tpu.memory_space<vmem>>, vector<128x128xf32>,
      %c2_i32_71 = arith.constant 2 : i32
      %c0_72 = arith.constant 0 : index
      %c0_73 = arith.constant 0 : index
      %173 = vector.load %arg10[%c0_72, %c0_73] : memref<128x128xf32, #tpu.memory_space<vmem>>, vector<128x128xf32>
      %cst_74 = arith.constant dense<0.000000e+00> : vector<128xf32>
      %174 = vector.multi_reduction <add>, %173, %cst_74 [1] : vector<128x128xf32> to vector<128xf32>
      %175 = vector.shape_cast %174 : vector<128xf32> to vector<128x1xf32>
      %176 = vector.broadcast %94 : f32 to vector<128x1xf32>
      %177 = arith.cmpf olt, %175, %176 : vector<128x1xf32>
      %cst_75 = arith.constant 0.000000e+00 : f32
      %178 = vector.broadcast %cst_75 : f32 to vector<128x1xf32>
      %179 = arith.select %177, %124, %178 : vector<128x1xi1>, vector<128x1xf32>
      %180 = vector.shape_cast %179 : vector<128x1xf32> to vector<1x128x1xf32>
      %cst_76 = arith.constant dense<0.000000e+00> : vector<1xf32>
      %181 = vector.multi_reduction <add>, %180, %cst_76 [1, 2] : vector<1x128x1xf32> to vector<1xf32>
      %182 = vector.shape_cast %181 : vector<1xf32> to vector<1x1x1xf32>
      %183 = vector.extract %182[0, 0, 0] : f32 from vector<1x1x1xf32>
      %184 = arith.addf %arg12, %183 : f32
      scf.yield %184 : f32
    }
    %c2_i32_39 = arith.constant 2 : i32
    %97 = vector.extract_strided_slice %90 {offsets = [1, 0], sizes = [1, 1], strides = [1, 1]} : vector<2x1xf32> to vector<1x1xf32>
    %98 = vector.extract %97[0, 0] : f32 from vector<1x1xf32>
    %c0_i32_40 = arith.constant 0 : i32
    %c2_i32_41 = arith.constant 2 : i32
    %99 = arith.addi %c0_i32_40, %c2_i32_41 : i32
    %c1_i32_42 = arith.constant 1 : i32
    %100 = scf.for %arg11 = %c0_i32_40 to %99 step %c1_i32_42 iter_args(%arg12 = %96) -> (f32)  : i32 {
      %c128_i32 = arith.constant 128 : i32
      %121 = arith.muli %arg11, %c128_i32 : i32
      %122 = tpu.assume_multiple %121, 128 : i32
      %123 = arith.index_cast %122 : i32 to index
      %c1 = arith.constant 1 : index
      %124 = vector.load %arg9[%123, %c1] : memref<256x2xf32, #tpu.memory_space<vmem>>, vector<128x1xf32>
      %125 = vector.broadcast %122 : i32 to vector<128x1xi32>
      %126 = arith.addi %125, %91 : vector<128x1xi32>
      %cst_53 = arith.constant 0.000000e+00 : f32
      %127 = vector.broadcast %cst_53 : f32 to vector<128x128xf32>
      %c0_54 = arith.constant 0 : index
      %c0_55 = arith.constant 0 : index
      %128 = vector.load %arg10[%c0_54, %c0_55] : memref<128x128xf32, #tpu.memory_space<vmem>>, vector<128x128xf32>
      tpu.vector_store %arg10[%c0_54, %c0_55], %127 {strides = array<i32>} : memref<128x128xf32, #tpu.memory_space<vmem>>, vector<128x128xf32>,
      %c0_i32_56 = arith.constant 0 : i32
      %c128_i32_57 = arith.constant 128 : i32
      %129 = arith.muli %c0_i32_56, %c128_i32_57 : i32
      %130 = tpu.assume_multiple %129, 128 : i32
      %c1_58 = arith.constant 1 : index
      %131 = arith.index_cast %130 : i32 to index
      %132 = vector.load %arg8[%c1_58, %131] : memref<2x256xf32, #tpu.memory_space<vmem>>, vector<1x128xf32>
      %133 = vector.broadcast %130 : i32 to vector<128x1xi32>
      %134 = arith.subi %126, %133 : vector<128x1xi32>
      %135 = vector.broadcast %132 : vector<1x128xf32> to vector<128x128xf32>
      %136 = vector.broadcast %124 : vector<128x1xf32> to vector<128x128xf32>
      %137 = arith.cmpf ogt, %135, %136 : vector<128x128xf32>
      %138 = vector.broadcast %132 : vector<1x128xf32> to vector<128x128xf32>
      %139 = vector.broadcast %124 : vector<128x1xf32> to vector<128x128xf32>
      %140 = arith.cmpf oeq, %138, %139 : vector<128x128xf32>
      %141 = vector.broadcast %92 : vector<1x128xi32> to vector<128x128xi32>
      %142 = vector.broadcast %134 : vector<128x1xi32> to vector<128x128xi32>
      %143 = arith.cmpi slt, %141, %142 : vector<128x128xi32>
      %144 = arith.andi %140, %143 : vector<128x128xi1>
      %145 = arith.ori %137, %144 : vector<128x128xi1>
      %c0_59 = arith.constant 0 : index
      %c0_60 = arith.constant 0 : index
      %146 = vector.load %arg10[%c0_59, %c0_60] : memref<128x128xf32, #tpu.memory_space<vmem>>, vector<128x128xf32>
      %147 = arith.extui %145 : vector<128x128xi1> to vector<128x128xi32>
      %148 = arith.sitofp %147 : vector<128x128xi32> to vector<128x128xf32>
      %149 = arith.addf %146, %148 : vector<128x128xf32>
      %c0_61 = arith.constant 0 : index
      %c0_62 = arith.constant 0 : index
      %150 = vector.load %arg10[%c0_61, %c0_62] : memref<128x128xf32, #tpu.memory_space<vmem>>, vector<128x128xf32>
      tpu.vector_store %arg10[%c0_61, %c0_62], %149 {strides = array<i32>} : memref<128x128xf32, #tpu.memory_space<vmem>>, vector<128x128xf32>,
      %c1_i32_63 = arith.constant 1 : i32
      %c128_i32_64 = arith.constant 128 : i32
      %151 = arith.muli %c1_i32_63, %c128_i32_64 : i32
      %152 = tpu.assume_multiple %151, 128 : i32
      %c1_65 = arith.constant 1 : index
      %153 = arith.index_cast %152 : i32 to index
      %154 = vector.load %arg8[%c1_65, %153] : memref<2x256xf32, #tpu.memory_space<vmem>>, vector<1x128xf32>
      %155 = vector.broadcast %152 : i32 to vector<128x1xi32>
      %156 = arith.subi %126, %155 : vector<128x1xi32>
      %157 = vector.broadcast %154 : vector<1x128xf32> to vector<128x128xf32>
      %158 = vector.broadcast %124 : vector<128x1xf32> to vector<128x128xf32>
      %159 = arith.cmpf ogt, %157, %158 : vector<128x128xf32>
      %160 = vector.broadcast %154 : vector<1x128xf32> to vector<128x128xf32>
      %161 = vector.broadcast %124 : vector<128x1xf32> to vector<128x128xf32>
      %162 = arith.cmpf oeq, %160, %161 : vector<128x128xf32>
      %163 = vector.broadcast %92 : vector<1x128xi32> to vector<128x128xi32>
      %164 = vector.broadcast %156 : vector<128x1xi32> to vector<128x128xi32>
      %165 = arith.cmpi slt, %163, %164 : vector<128x128xi32>
      %166 = arith.andi %162, %165 : vector<128x128xi1>
      %167 = arith.ori %159, %166 : vector<128x128xi1>
      %c0_66 = arith.constant 0 : index
      %c0_67 = arith.constant 0 : index
      %168 = vector.load %arg10[%c0_66, %c0_67] : memref<128x128xf32, #tpu.memory_space<vmem>>, vector<128x128xf32>
      %169 = arith.extui %167 : vector<128x128xi1> to vector<128x128xi32>
      %170 = arith.sitofp %169 : vector<128x128xi32> to vector<128x128xf32>
      %171 = arith.addf %168, %170 : vector<128x128xf32>
      %c0_68 = arith.constant 0 : index
      %c0_69 = arith.constant 0 : index
      %172 = vector.load %arg10[%c0_68, %c0_69] : memref<128x128xf32, #tpu.memory_space<vmem>>, vector<128x128xf32>
      tpu.vector_store %arg10[%c0_68, %c0_69], %171 {strides = array<i32>} : memref<128x128xf32, #tpu.memory_space<vmem>>, vector<128x128xf32>,
      %c2_i32_70 = arith.constant 2 : i32
      %c0_71 = arith.constant 0 : index
      %c0_72 = arith.constant 0 : index
      %173 = vector.load %arg10[%c0_71, %c0_72] : memref<128x128xf32, #tpu.memory_space<vmem>>, vector<128x128xf32>
      %cst_73 = arith.constant dense<0.000000e+00> : vector<128xf32>
      %174 = vector.multi_reduction <add>, %173, %cst_73 [1] : vector<128x128xf32> to vector<128xf32>
      %175 = vector.shape_cast %174 : vector<128xf32> to vector<128x1xf32>
      %176 = vector.broadcast %98 : f32 to vector<128x1xf32>
      %177 = arith.cmpf olt, %175, %176 : vector<128x1xf32>
      %cst_74 = arith.constant 0.000000e+00 : f32
      %178 = vector.broadcast %cst_74 : f32 to vector<128x1xf32>
      %179 = arith.select %177, %124, %178 : vector<128x1xi1>, vector<128x1xf32>
      %180 = vector.shape_cast %179 : vector<128x1xf32> to vector<1x128x1xf32>
      %cst_75 = arith.constant dense<0.000000e+00> : vector<1xf32>
      %181 = vector.multi_reduction <add>, %180, %cst_75 [1, 2] : vector<1x128x1xf32> to vector<1xf32>
      %182 = vector.shape_cast %181 : vector<1xf32> to vector<1x1x1xf32>
      %183 = vector.extract %182[0, 0, 0] : f32 from vector<1x1x1xf32>
      %184 = arith.addf %arg12, %183 : f32
      scf.yield %184 : f32
    }
    %c2_i32_43 = arith.constant 2 : i32
    %101 = arith.addf %58, %100 : f32
    %102 = tpu.iota {dimensions = array<i32: 2>} : vector<1x1x128xi32>
    %c0_i32_44 = arith.constant 0 : i32
    %103 = vector.broadcast %c0_i32_44 : i32 to vector<1x1x128xi32>
    %104 = arith.cmpi eq, %102, %103 : vector<1x1x128xi32>
    %cst_45 = arith.constant 0.000000e+00 : f32
    %105 = vector.broadcast %39 : f32 to vector<1x1x128xf32>
    %106 = vector.broadcast %cst_45 : f32 to vector<1x1x128xf32>
    %107 = arith.select %104, %105, %106 : vector<1x1x128xi1>, vector<1x1x128xf32>
    %c1_i32_46 = arith.constant 1 : i32
    %108 = vector.broadcast %c1_i32_46 : i32 to vector<1x1x128xi32>
    %109 = arith.cmpi eq, %102, %108 : vector<1x1x128xi32>
    %cst_47 = arith.constant 0.000000e+00 : f32
    %110 = vector.broadcast %101 : f32 to vector<1x1x128xf32>
    %111 = vector.broadcast %cst_47 : f32 to vector<1x1x128xf32>
    %112 = arith.select %109, %110, %111 : vector<1x1x128xi1>, vector<1x1x128xf32>
    %113 = arith.addf %107, %112 : vector<1x1x128xf32>
    %c2_i32_48 = arith.constant 2 : i32
    %114 = vector.broadcast %c2_i32_48 : i32 to vector<1x1x128xi32>
    %115 = arith.cmpi eq, %102, %114 : vector<1x1x128xi32>
    %cst_49 = arith.constant 0.000000e+00 : f32
    %116 = vector.broadcast %17 : f32 to vector<1x1x128xf32>
    %117 = vector.broadcast %cst_49 : f32 to vector<1x1x128xf32>
    %118 = arith.select %115, %116, %117 : vector<1x1x128xi1>, vector<1x1x128xf32>
    %119 = arith.addf %113, %118 : vector<1x1x128xf32>
    %c0_50 = arith.constant 0 : index
    %c0_51 = arith.constant 0 : index
    %c0_52 = arith.constant 0 : index
    %120 = vector.load %arg7[%c0_50, %c0_51, %c0_52] : memref<1x1x128xf32, #tpu.memory_space<vmem>>, vector<1x1x128xf32>
    tpu.vector_store %arg7[%c0_50, %c0_51, %c0_52], %119 {strides = array<i32>} : memref<1x1x128xf32, #tpu.memory_space<vmem>>, vector<1x1x128xf32>,
    return
  }
  func.func @transform_0(%arg0: i32) -> (i32, i32, i32) {
    %c0_i32 = arith.constant 0 : i32
    %c0_i32_0 = arith.constant 0 : i32
    %c0_i32_1 = arith.constant 0 : i32
    return %arg0, %c0_i32, %c0_i32_0 : i32, i32, i32
  }
  func.func @transform_1(%arg0: i32) -> (i32, i32, i32) {
    %c0_i32 = arith.constant 0 : i32
    %c0_i32_0 = arith.constant 0 : i32
    %c0_i32_1 = arith.constant 0 : i32
    return %arg0, %c0_i32, %c0_i32_0 : i32, i32, i32
  }
  func.func @transform_2(%arg0: i32) -> (i32, i32, i32) {
    %c0_i32 = arith.constant 0 : i32
    %c0_i32_0 = arith.constant 0 : i32
    %c0_i32_1 = arith.constant 0 : i32
    return %arg0, %c0_i32, %c0_i32_0 : i32, i32, i32
  }
  func.func @transform_3(%arg0: i32) -> (i32, i32, i32) {
    %c0_i32 = arith.constant 0 : i32
    %c0_i32_0 = arith.constant 0 : i32
    %c0_i32_1 = arith.constant 0 : i32
    return %arg0, %c0_i32, %c0_i32_0 : i32, i32, i32
  }
  func.func @transform_4(%arg0: i32) -> (i32, i32, i32, i32) {
    %c0_i32 = arith.constant 0 : i32
    %c0_i32_0 = arith.constant 0 : i32
    %c0_i32_1 = arith.constant 0 : i32
    %c0_i32_2 = arith.constant 0 : i32
    return %arg0, %c0_i32, %c0_i32_0, %c0_i32_1 : i32, i32, i32, i32
  }
  func.func @transform_5(%arg0: i32) -> (i32, i32, i32) {
    %c0_i32 = arith.constant 0 : i32
    %c0_i32_0 = arith.constant 0 : i32
    %c0_i32_1 = arith.constant 0 : i32
    return %arg0, %c0_i32, %c0_i32_0 : i32, i32, i32
  }
  func.func @transform_6(%arg0: i32) -> (i32, i32, i32) {
    %c0_i32 = arith.constant 0 : i32
    %c0_i32_0 = arith.constant 0 : i32
    %c0_i32_1 = arith.constant 0 : i32
    return %arg0, %c0_i32, %c0_i32_0 : i32, i32, i32
  }
}

</mosaic_0001>

<bundles_post_ra>
// kernel: tpu_custom_call.1
= control target key start
LH: loop header
LB: loop body
LE: loop exit
PB: predicated region body
PF: predicated region fallthrough
CT: control target
= control target key end

     0   :  { %v37_v1 = vlaneseq  ;;  %v2464_v2 = vmov 1983009808   ;;  %v2465_v7 = vmov 0.0   ;;  %vm44_vm1 = vcmask 1041408   ;;  %s4631_s0 = inlined_call_operand.vmem [shape: f32[1,2,1024], index: 0, kind: input, shape index: {}]   ;;  %s4632_s1 = inlined_call_operand.vmem [shape: f32[1,2,1024], index: 1, kind: input, shape index: {}]   ;;  %s4633_s2 = inlined_call_operand.vmem [shape: f32[1,2,512], index: 2, kind: input, shape index: {}]   ;;  %s4634_s3 = inlined_call_operand.vmem [shape: s32[1,2,256], index: 3, kind: input, shape index: {}]   ;;  %s4635_s4 = inlined_call_operand.vmem [shape: f32[1,2,256,2], index: 4, kind: input, shape index: {}]   ;;  %s4636_s5 = inlined_call_operand.vmem [shape: s32[1,256,2], index: 5, kind: input, shape index: {}]   ;;  %s4637_s6 = inlined_call_operand.hbm [shape: f32[1,1,128], index: 6, kind: output, shape index: {}]  }
   0x1   :  { %v2510_v0 = vld [vmem:[%s4634_s3] sm:$0xf]  ;;  %v35_v3 = vunpack.c.l.s4 %v2464_v2  ;;  %v25_v5 = vld [vmem:[%s4631_s0 + $0x8] sm:$0xff] }
   0x2   :  { %vm30_vm0 = vcmp.gt.s32.totalorder %v2510_v0, 0  ;;  %v24_v4 = vld [vmem:[%s4631_s0] sm:$0xff]  ;;  %v2526_v9 = vshrl.u32 %v37_v1, 7  ;;  %v2528_v10 = vand.u32 127, %v37_v1  ;;  %v27_v11 = vld [vmem:[%s4632_s1 + $0x8] sm:$0xff] }
   0x3   :  { %v26_v6 = vld [vmem:[%s4632_s1] sm:$0xff]  ;;  %v2524_v8 = vsel %vm30_vm0, 1.0, %v2465_v7  ;;  %v36_v13 = vunpack.c.0.s8 %v35_v3  ;;  %v62_v15 = vsub.f32 %v25_v5, %v27_v11 }
   0x4   :  { %4827 = vst [vmem:[#allocation8_spill] sm:$0xff] %v2526_v9  ;;  %4828 = vst [vmem:[#allocation9_spill] sm:$0xff] %v2528_v10  ;;  %v2536_v12 = vld [vmem:[%s4633_s2] sm:$0xff]  ;;  %v61_v14 = vsub.f32 %v24_v4, %v26_v6 }
   0x5   :  { %v109_v16 = vrot.slane %v2536_v12, 4 }
   0x6   :  { %11 = vsyncpa [#allocation6], 0  ;;  %v2540_v17 = vadd.s32 8, %v2526_v9  ;;  %v2543_v18 = vadd.s32 16, %v2526_v9  ;;  %v2546_v19 = vadd.s32 24, %v2526_v9  ;;  %v2549_v20 = vadd.s32 32, %v2526_v9 }
   0x7   :  { %v39_v21 = vsub.s32 %v36_v13, %v2526_v9  ;;  %v2553_v22 = vadd.s32 40, %v2526_v9  ;;  %v2556_v23 = vadd.s32 48, %v2526_v9  ;;  %v2559_v24 = vadd.s32 56, %v2526_v9  ;;  %v2956_v10 = vld [vmem:[%s4635_s4 + $0x1d8] sm:$0xff]  ;;  %s4013_s3 = smov 0.0   ;;  %s4015_s29 = smov 0  }
   0x8   :  { %4829 = vst [vmem:[#allocation10_spill] sm:$0xff] %v2540_v17  ;;  %4830 = vst [vmem:[#allocation11_spill] sm:$0xff] %v2543_v18  ;;  %v2562_v25 = vadd.s32 64, %v2526_v9  ;;  %v2565_v26 = vadd.s32 72, %v2526_v9  ;;  %v2568_v27 = vadd.s32 80, %v2526_v9  ;;  %v2571_v28 = vadd.s32 88, %v2526_v9 }
   0x9   :  { %4831 = vst [vmem:[#allocation12_spill] sm:$0xff] %v2546_v19  ;;  %4832 = vst [vmem:[#allocation13_spill] sm:$0xff] %v2549_v20  ;;  %v40_v29 = vrot.slane %v2524_v8, %v39_v21  ;;  %v2575_v30 = vadd.s32 96, %v2526_v9  ;;  %v2578_v31 = vadd.s32 104, %v2526_v9  ;;  %v2581_v32 = vadd.s32 112, %v2526_v9  ;;  %v2917_v17 = vld [vmem:[%s4635_s4 + $0xe8] sm:$0xff] }
   0xa   :  { %4833 = vst [vmem:[#allocation14_spill] sm:$0xff] %v2553_v22  ;;  %4834 = vst [vmem:[#allocation15_spill] sm:$0xff] %v2556_v23  ;;  %v2584_v33 = vadd.s32 120, %v2526_v9  ;;  %v63_v34 = vand.u32 2147483647, %v61_v14  ;;  %v67_v36 = vmul.f32 0.5, %v61_v14  ;;  %v112_v45 = vsub.f32 %v2536_v12, %v109_v16 }
   0xb   :  { %4835 = vst [vmem:[#allocation16_spill] sm:$0xff] %v2559_v24  ;;  %4836 = vst [vmem:[#allocation17_spill] sm:$0xff] %v2562_v25  ;;  %v64_v35 = vand.u32 2147483647, %v62_v15  ;;  %v41_v37 = vcombine.high %v40_v29, %v40_v29  ;;  %v45_v38 = vsel %vm44_vm1, %v40_v29, 0.0  ;;  %v68_v39 = vmul.f32 0.5, %v62_v15 }
   0xc   :  { %4837 = vst [vmem:[#allocation18_spill] sm:$0xff] %v2565_v26  ;;  %4838 = vst [vmem:[#allocation19_spill] sm:$0xff] %v2568_v27  ;;  %vm65_vm2 = vcmp.lt.f32.partialorder %v63_v34, 1.0  ;;  %v69_v40 = vmul.f32 %v67_v36, %v61_v14  ;;  %v2114_v41 = vadd.f32 -0.5, %v63_v34  ;;  %v113_v50 = vand.u32 2147483647, %v112_v45 }
   0xd   :  { %4839 = vst [vmem:[#allocation20_spill] sm:$0xff] %v2571_v28  ;;  %4840 = vst [vmem:[#allocation21_spill] sm:$0xff] %v2575_v30  ;;  %vm66_vm3 = vcmp.lt.f32.partialorder %v64_v35, 1.0  ;;  %v46_v42 = vsel %vm44_vm1, %v41_v37, 0.0  ;;  %v70_v43 = vmul.f32 %v68_v39, %v62_v15  ;;  %v2115_v44 = vadd.f32 -0.5, %v64_v35  ;;  %v2616_v45 = vld [vmem:[%s4635_s4 + $0x10] sm:$0xff] }
   0xe   :  { %4841 = vst [vmem:[#allocation22_spill] sm:$0xff] %v2578_v31  ;;  %4842 = vst [vmem:[#allocation23_spill] sm:$0xff] %v2581_v32  ;;  %v47_v46 = vadd.f32 %v46_v42, %v45_v38  ;;  %v73_v47 = vsel %vm65_vm2, %v69_v40, %v2114_v41  ;;  %v114_v53 = vsub.f32 0.0, %v113_v50  ;;  %v111_v2 = vmax.f32 %v2536_v12, %v109_v16  ;;  %v2641_v50 = vld [vmem:[%s4635_s4 + $0x108] sm:$0xff]  ;;  %v2869_v27 = vld [vmem:[%s4635_s4 + $0xc0] sm:$0xff] }
   0xf   :  { %4843 = vst [vmem:[#allocation24_spill] sm:$0xff] %v2584_v33  ;;  %v74_v48 = vsel %vm66_vm3, %v70_v43, %v2115_v44  ;;  %v76_v49 = vrot.slane %v73_v47, 4  ;;  %v121_v5 = vsel %vm30_vm0, %v109_v16, %v2536_v12  ;;  %vm50_vm4 = vcmask 1024   ;;  %v2606_v43 = vld [vmem:[%s4635_s4] sm:$0xff]  ;;  %v2611_v44 = vld [vmem:[%s4635_s4 + $0x8] sm:$0xff]  ;;  %4847 = vst [vmem:[#allocation28_spill] sm:$0xff] %v2616_v45 }
  0x10   :  { %48 = vadd.xlane.f32.xlu0 %v47_v46  ;;  %v81_v52 = vrot.slane %v74_v48, 4  ;;  %v115_v55 = vmul.f32 1.442695, %v114_v53  ;;  %4845 = vst [vmem:[#allocation26_spill] sm:$0xff] %v2606_v43  ;;  %4846 = vst [vmem:[#allocation27_spill] sm:$0xff] %v2611_v44  ;;  %v2621_v46 = vld [vmem:[%s4635_s4 + $0x100] sm:$0xff] }
  0x11   :  { %v78_v51 = vadd.f32 %v76_v49, %v73_v47  ;;  %4848 = vst [vmem:[#allocation29_spill] sm:$0xff] %v2621_v46  ;;  %v2626_v47 = vld [vmem:[%s4635_s4 + $0x18] sm:$0xff]  ;;  %v2636_v49 = vld [vmem:[%s4635_s4 + $0x28] sm:$0xff]  ;;  %4852 = vst [vmem:[#allocation33_spill] sm:$0xff] %v2641_v50 }
  0x12   :  { %2272 = vpow2.f32 %v115_v55  ;;  %4849 = vst [vmem:[#allocation30_spill] sm:$0xff] %v2626_v47  ;;  %4851 = vst [vmem:[#allocation32_spill] sm:$0xff] %v2636_v49  ;;  %v2648_v53 = vld [vmem:[%s4635_s4 + $0x30] sm:$0xff]  ;;  %v2658_v55 = vld [vmem:[%s4635_s4 + $0x40] sm:$0xff] }
  0x13   :  { %v79_v54 = vadd.f32 %v78_v51, %v74_v48  ;;  %v2631_v48 = vld [vmem:[%s4635_s4 + $0x20] sm:$0xff]  ;;  %4854 = vst [vmem:[#allocation35_spill] sm:$0xff] %v2648_v53  ;;  %4856 = vst [vmem:[#allocation37_spill] sm:$0xff] %v2658_v55  ;;  %v2874_v28 = vld [vmem:[%s4635_s4 + $0xc8] sm:$0xff] }
  0x14   :  { %4850 = vst [vmem:[#allocation31_spill] sm:$0xff] %v2631_v48  ;;  %4885 = vst [vmem:[#allocation66_spill] sm:$0xff] %v2869_v27  ;;  %v2879_v33 = vld [vmem:[%s4635_s4 + $0xd0] sm:$0xff]  ;;  %v2884_v30 = vld [vmem:[%s4635_s4 + $0xd8] sm:$0xff] }
  0x15   :  { %v83_v56 = vadd.f32 %v81_v52, %v79_v54  ;;  %v2653_v54 = vld [vmem:[%s4635_s4 + $0x38] sm:$0xff]  ;;  %4886 = vst [vmem:[#allocation67_spill] sm:$0xff] %v2874_v28  ;;  %4887 = vst [vmem:[#allocation68_spill] sm:$0xff] %v2879_v33  ;;  %v2889_v31 = vld [vmem:[%s4635_s4 + $0x1a0] sm:$0xff] }
  0x16   :  { %4855 = vst [vmem:[#allocation36_spill] sm:$0xff] %v2653_v54  ;;  %4888 = vst [vmem:[#allocation69_spill] sm:$0xff] %v2884_v30  ;;  %v2894_v32 = vld [vmem:[%s4635_s4 + $0x1a8] sm:$0xff]  ;;  %v2899_v25 = vld [vmem:[%s4635_s4 + $0x1b0] sm:$0xff] }
  0x17   :  { %v84_v57 = vmul.f32 %v2524_v8, %v83_v56  ;;  %v2663_v56 = vld [vmem:[%s4635_s4 + $0x110] sm:$0xff]  ;;  %4889 = vst [vmem:[#allocation70_spill] sm:$0xff] %v2894_v32  ;;  %4890 = vst [vmem:[#allocation71_spill] sm:$0xff] %v2899_v25  ;;  %v2912_v22 = vld [vmem:[%s4635_s4 + $0xe0] sm:$0xff] }
  0x18   :  { %4857 = vst [vmem:[#allocation38_spill] sm:$0xff] %v2663_v56  ;;  %4891 = vst [vmem:[#allocation72_spill] sm:$0xff] %v2912_v22  ;;  %v2922_v23 = vld [vmem:[%s4635_s4 + $0xf0] sm:$0xff]  ;;  %v2927_v24 = vld [vmem:[%s4635_s4 + $0x1b8] sm:$0xff] }
  0x19   :  { %v92_v58 = vrot.slane %v84_v57, %v39_v21  ;;  %v2668_v57 = vld [vmem:[%s4635_s4 + $0x118] sm:$0xff]  ;;  %4892 = vst [vmem:[#allocation73_spill] sm:$0xff] %v2917_v17  ;;  %4893 = vst [vmem:[#allocation74_spill] sm:$0xff] %v2922_v23  ;;  %v2932_v26 = vld [vmem:[%s4635_s4 + $0x1c0] sm:$0xff] }
  0x1a   :  { %4858 = vst [vmem:[#allocation39_spill] sm:$0xff] %v2668_v57  ;;  %4894 = vst [vmem:[#allocation75_spill] sm:$0xff] %v2927_v24  ;;  %v2937_v19 = vld [vmem:[%s4635_s4 + $0x1c8] sm:$0xff]  ;;  %v2961_v9 = vld [vmem:[%s4635_s4 + $0x1e0] sm:$0xff] }
  0x1b   :  { %v93_v59 = vcombine.high %v92_v58, %v92_v58  ;;  %v96_v60 = vsel %vm44_vm1, %v92_v58, 0.0  ;;  %v2673_v58 = vld [vmem:[%s4635_s4 + $0x120] sm:$0xff]  ;;  %4895 = vst [vmem:[#allocation76_spill] sm:$0xff] %v2932_v26  ;;  %4896 = vst [vmem:[#allocation77_spill] sm:$0xff] %v2937_v19  ;;  %v2977_v32 = vld [vmem:[%s4635_s4 + $0x1f0] sm:$0xff] }
  0x1c   :  { %v2273_v63 = vpop.eup %2272  ;;  %4859 = vst [vmem:[#allocation40_spill] sm:$0xff] %v2673_v58  ;;  %v313_v20 = vsub.f32 %v2631_v48, %v2673_v58  ;;  %v2951_v58 = vld [vmem:[%s4635_s4 + $0x1d0] sm:$0xff]  ;;  %4898 = vst [vmem:[#allocation79_spill] sm:$0xff] %v2956_v10  ;;  %v2995_v24 = vld [vmem:[%s4635_s4 + $0xf8] sm:$0xff] }
  0x1d   :  { %v97_v61 = vsel %vm44_vm1, %v93_v59, 0.0  ;;  %v117_v1 = vadd.f32 1.0, %v2273_v63  ;;  %v2694_v63 = vld [vmem:[%s4635_s4 + $0x130] sm:$0xff]  ;;  %v2820_v59 = vld [vmem:[%s4635_s4 + $0x178] sm:$0xff]  ;;  %4897 = vst [vmem:[#allocation78_spill] sm:$0xff] %v2951_v58  ;;  %4899 = vst [vmem:[#allocation80_spill] sm:$0xff] %v2961_v9 }
  0x1e   :  { %v98_v62 = vadd.f32 %v97_v61, %v96_v60  ;;  %v2679_v60 = vld [vmem:[%s4635_s4 + $0x48] sm:$0xff]  ;;  %v2684_v61 = vld [vmem:[%s4635_s4 + $0x50] sm:$0xff]  ;;  %4863 = vst [vmem:[#allocation44_spill] sm:$0xff] %v2694_v63  ;;  %4880 = vst [vmem:[#allocation61_spill] sm:$0xff] %v2820_v59 }
  0x1f   :  { %2274 = vlog2.f32 %v117_v1  ;;  %4860 = vst [vmem:[#allocation41_spill] sm:$0xff] %v2679_v60  ;;  %4861 = vst [vmem:[#allocation42_spill] sm:$0xff] %v2684_v61  ;;  %v2699_v1 = vld [vmem:[%s4635_s4 + $0x138] sm:$0xff] }
  0x20   :  { %99 = vadd.xlane.f32.xlu1 %v98_v62  ;;  %v2689_v62 = vld [vmem:[%s4635_s4 + $0x128] sm:$0xff]  ;;  %4864 = vst [vmem:[#allocation45_spill] sm:$0xff] %v2699_v1  ;;  %4901 = vst [vmem:[#allocation82_spill] sm:$0xff] %v2977_v32  ;;  %v316_v10 = vsub.f32 %v2653_v54, %v2699_v1 }
  0x21   :  { %4862 = vst [vmem:[#allocation43_spill] sm:$0xff] %v2689_v62  ;;  %v314_v48 = vsub.f32 %v2636_v49, %v2689_v62  ;;  %4903 = vst [vmem:[#allocation84_spill] sm:$0xff] %v2995_v24 }
  0x23   :  { %v4916_v54 = vld [vmem:[#allocation79_spill] sm:$0xff] }
  0x29   :  { %v2275_v3 = vpop.eup %2274 }
  0x2a   :  { %v119_v4 = vmul.f32 0.6931472, %v2275_v3  ;;  %v2846_v3 = vld [vmem:[%s4635_s4 + $0x188] sm:$0xff] }
  0x2b   :  { %4884 = vst [vmem:[#allocation65_spill] sm:$0xff] %v2846_v3 }
  0x2c   :  { %v120_v6 = vadd.f32 %v119_v4, %v111_v2  ;;  %v2825_v4 = vld [vmem:[%s4635_s4 + $0x180] sm:$0xff]  ;;  %v2851_v2 = vld [vmem:[%s4635_s4 + $0x190] sm:$0xff] }
  0x2d   :  { %4881 = vst [vmem:[#allocation62_spill] sm:$0xff] %v2825_v4 }
  0x2e   :  { %v122_v7 = vsub.f32 %v120_v6, %v121_v5  ;;  %v2712_v6 = vld [vmem:[%s4635_s4 + $0x58] sm:$0xff] }
  0x2f   :  { %4865 = vst [vmem:[#allocation46_spill] sm:$0xff] %v2712_v6  ;;  %v2841_v5 = vld [vmem:[%s4635_s4 + $0xb8] sm:$0xff] }
  0x30   :  { %v123_v11 = vmul.f32 %v2524_v8, %v122_v7  ;;  %v147_v13 = vsel %vm30_vm0, 0.0, %v122_v7  ;;  %v2717_v7 = vld [vmem:[%s4635_s4 + $0x60] sm:$0xff]  ;;  %4883 = vst [vmem:[#allocation64_spill] sm:$0xff] %v2841_v5  ;;  %v315_v5 = vsub.f32 %v2648_v53, %v2694_v63  ;;  %v4917_v63 = vld [vmem:[#allocation69_spill] sm:$0xff] }
  0x31   :  { %148 = vst [vmem:[#allocation2] sm:$0xf] %v147_v13  ;;  %4866 = vst [vmem:[#allocation47_spill] sm:$0xff] %v2717_v7  ;;  %v2727_v13 = vld [vmem:[%s4635_s4 + $0x70] sm:$0xff] }
  0x32   :  { %v131_v14 = vrot.slane %v123_v11, %v39_v21  ;;  %v2722_v11 = vld [vmem:[%s4635_s4 + $0x68] sm:$0xff]  ;;  %4868 = vst [vmem:[#allocation49_spill] sm:$0xff] %v2727_v13  ;;  %v347_v53 = vand.u32 2147483647, %v315_v5 }
  0x33   :  { %4867 = vst [vmem:[#allocation48_spill] sm:$0xff] %v2722_v11 }
  0x34   :  { %v132_v15 = vcombine.high %v131_v14, %v131_v14  ;;  %v135_v29 = vsel %vm44_vm1, %v131_v14, 0.0  ;;  %v2732_v14 = vld [vmem:[%s4635_s4 + $0x140] sm:$0xff] }
  0x35   :  { %4869 = vst [vmem:[#allocation50_spill] sm:$0xff] %v2732_v14  ;;  %v317_v33 = vsub.f32 %v2658_v55, %v2732_v14 }
  0x36   :  { %v136_v34 = vsel %vm44_vm1, %v132_v15, 0.0  ;;  %v2737_v15 = vld [vmem:[%s4635_s4 + $0x148] sm:$0xff] }
  0x37   :  { %v137_v35 = vadd.f32 %v136_v34, %v135_v29  ;;  %4870 = vst [vmem:[#allocation51_spill] sm:$0xff] %v2737_v15  ;;  %v2742_v29 = vld [vmem:[%s4635_s4 + $0x150] sm:$0xff]  ;;  %v318_v18 = vsub.f32 %v2679_v60, %v2737_v15  ;;  %v4915_v60 = vld [vmem:[#allocation68_spill] sm:$0xff] }
  0x38   :  { %4871 = vst [vmem:[#allocation52_spill] sm:$0xff] %v2742_v29  ;;  %v2795_v34 = vld [vmem:[%s4635_s4 + $0x90] sm:$0xff]  ;;  %v319_v49 = vsub.f32 %v2684_v61, %v2742_v29  ;;  %v4914_v29 = vld [vmem:[#allocation64_spill] sm:$0xff]  ;;  %v345_v61 = vand.u32 2147483647, %v313_v20 }
  0x39   :  { %138 = vadd.xlane.f32.xlu1 %v137_v35  ;;  %v348_v20 = vand.u32 2147483647, %v316_v10 }
  0x3a   :  { %v351_v55 = vand.u32 2147483647, %v319_v49 }
  0x9d   :  { %v49_v36 = vpop.xlane.xlu0 %48 }
  0x9e   :  { %v51_v37 = vsel %vm50_vm4, %v49_v36, 0.0  ;;  %v2601_v41 = vmul.f32 3.0, %v49_v36  ;;  %v2856_v36 = vld [vmem:[%s4635_s4 + $0x198] sm:$0xff] }
  0x9f   :  { %52 = vadd.xlane.f32.xlu0 %v51_v37  ;;  %v2836_v37 = vld [vmem:[%s4635_s4 + $0xb0] sm:$0xff] }
  0xa0   :  { %4844 = vst [vmem:[#allocation25_spill] sm:$0xff] %v2601_v41  ;;  %4882 = vst [vmem:[#allocation63_spill] sm:$0xff] %v2836_v37  ;;  %v2982_v41 = vld [vmem:[%s4636_s5] sm:$0xff]  ;;  %v3000_v37 = vld [vmem:[%s4635_s4 + $0x1f8] sm:$0xff] }
  0xa1   :  { %4902 = vst [vmem:[#allocation83_spill] sm:$0xff] %v2982_v41  ;;  %4904 = vst [vmem:[#allocation85_spill] sm:$0xff] %v3000_v37  ;;  %vm4750_vm5 = vcmp.gt.s32.totalorder %v2982_v41, 0  ;;  %v3193_v41 = vld [vmem:[%s4636_s5 + $0x70] sm:$0xff] }
  0xa2   :  { %4938 = vst [vmem:[#allocation99_spill] sm:$0xff] %v3193_v41  ;;  %vm4798_vm3 = vcmp.gt.s32.totalorder %v3193_v41, 0 }
  0xad   :  { %v100_v12 = vpop.xlane.xlu1 %99 }
  0xae   :  { %v101_v16 = vrot.slane %v100_v12, 4 }
  0xb0   :  { %v102_v38 = vadd.f32 %v101_v16, %v100_v12  ;;  %v2755_v12 = vld [vmem:[%s4635_s4 + $0x78] sm:$0xff]  ;;  %v2760_v16 = vld [vmem:[%s4635_s4 + $0x80] sm:$0xff] }
  0xb1   :  { %4872 = vst [vmem:[#allocation53_spill] sm:$0xff] %v2755_v12  ;;  %4873 = vst [vmem:[#allocation54_spill] sm:$0xff] %v2760_v16 }
  0xb2   :  { %v103_v8 = vrot.slane %v102_v38, 2 }
  0xb4   :  { %v104_v40 = vadd.f32 %v103_v8, %v102_v38  ;;  %v2765_v38 = vld [vmem:[%s4635_s4 + $0x88] sm:$0xff]  ;;  %v2770_v8 = vld [vmem:[%s4635_s4 + $0x158] sm:$0xff] }
  0xb5   :  { %4874 = vst [vmem:[#allocation55_spill] sm:$0xff] %v2765_v38  ;;  %4875 = vst [vmem:[#allocation56_spill] sm:$0xff] %v2770_v8  ;;  %v320_v30 = vsub.f32 %v2712_v6, %v2770_v8  ;;  %v4909_v8 = vsub.f32 %v2626_v47, %v2668_v57  ;;  %v4913_v6 = vld [vmem:[#allocation75_spill] sm:$0xff] }
  0xb6   :  { %v105_v42 = vrot.slane %v104_v40, 1 }
  0xb8   :  { %v2643_v52 = vadd.f32 %v105_v42, %v104_v40  ;;  %v2800_v40 = vld [vmem:[%s4635_s4 + $0x98] sm:$0xff]  ;;  %v2805_v42 = vld [vmem:[%s4635_s4 + $0xa0] sm:$0xff] }
  0xba   :  { %4853 = vst [vmem:[#allocation34_spill] sm:$0xff] %v2643_v52 }
  0xc6   :  { %v139_v39 = vpop.xlane.xlu1 %138 }
  0xc7   :  { %v140_v0 = vrot.slane %v139_v39, 4 }
  0xc9   :  { %v141_v21 = vadd.f32 %v140_v0, %v139_v39  ;;  %v2775_v39 = vld [vmem:[%s4635_s4 + $0x160] sm:$0xff]  ;;  %v2780_v0 = vld [vmem:[%s4635_s4 + $0x168] sm:$0xff] }
  0xca   :  { %4876 = vst [vmem:[#allocation57_spill] sm:$0xff] %v2775_v39  ;;  %4877 = vst [vmem:[#allocation58_spill] sm:$0xff] %v2780_v0  ;;  %v321_v1 = vsub.f32 %v2717_v7, %v2775_v39  ;;  %v322_v14 = vsub.f32 %v2722_v11, %v2780_v0  ;;  %v4906_v39 = vsub.f32 %v2606_v43, %v2621_v46  ;;  %v4912_v11 = vld [vmem:[#allocation63_spill] sm:$0xff] }
  0xcb   :  { %v142_v51 = vrot.slane %v141_v21, 2  ;;  %v4907_v0 = vsub.f32 %v2611_v44, %v2641_v50  ;;  %v377_v50 = vsub.f32 0.0, %v345_v61 }
  0xcc   :  { %v341_v7 = vand.u32 2147483647, %v4906_v39  ;;  %v354_v49 = vand.u32 2147483647, %v322_v14 }
  0xcd   :  { %v2790_v35 = vadd.f32 %v142_v51, %v141_v21  ;;  %v2810_v21 = vld [vmem:[%s4635_s4 + $0xa8] sm:$0xff]  ;;  %v2815_v51 = vld [vmem:[%s4635_s4 + $0x170] sm:$0xff] }
  0xce   :  { %4878 = vst [vmem:[#allocation59_spill] sm:$0xff] %v2810_v21  ;;  %4879 = vst [vmem:[#allocation60_spill] sm:$0xff] %v2815_v51  ;;  %v2972_v21 = vld [vmem:[%s4635_s4 + $0x1e8] sm:$0xff]  ;;  %v323_v15 = vsub.f32 %v2727_v13, %v2815_v51  ;;  %v342_v51 = vand.u32 2147483647, %v4907_v0  ;;  %v373_v57 = vsub.f32 0.0, %v341_v7 }
  0xcf   :  { %v144_v52 = vrot.slane %v2790_v35, 1  ;;  %4900 = vst [vmem:[#allocation81_spill] sm:$0xff] %v2972_v21  ;;  %v352_v13 = vand.u32 2147483647, %v320_v30  ;;  %v413_v30 = vmul.f32 1.442695, %v377_v50 }
  0xd0   :  { %v374_v0 = vsub.f32 0.0, %v342_v51  ;;  %v379_v51 = vsub.f32 0.0, %v347_v53  ;;  %v355_v53 = vand.u32 2147483647, %v323_v15  ;;  %v386_v14 = vsub.f32 0.0, %v354_v49 }
  0xd1   :  { %v3019_v62 = vadd.f32 %v144_v52, %v2790_v35  ;;  %v324_v52 = vsub.f32 %v2755_v12, %v2820_v59  ;;  %v325_v35 = vsub.f32 %v2760_v16, %v2825_v4  ;;  %v344_v16 = vand.u32 2147483647, %v4909_v8  ;;  %v4910_v12 = vld [vmem:[#allocation70_spill] sm:$0xff]  ;;  %v3188_v4 = vld [vmem:[%s4636_s5 + $0x68] sm:$0xff] }
  0xd2   :  { %v346_v8 = vand.u32 2147483647, %v314_v48  ;;  %v405_v59 = vmul.f32 1.442695, %v373_v57  ;;  %v407_v10 = vmul.f32 1.442695, %v374_v0  ;;  %v4922_v15 = vsub.f32 %v2795_v34, %v2851_v2 }
  0xd3   :  { %4905 = vst [vmem:[#allocation86_spill] sm:$0xff] %v3019_v62  ;;  %v326_v62 = vsub.f32 %v2765_v38, %v2846_v3  ;;  %v4908_v3 = vsub.f32 %v2616_v45, %v2663_v56  ;;  %v376_v56 = vsub.f32 0.0, %v344_v16  ;;  %v350_v45 = vand.u32 2147483647, %v318_v18  ;;  %v3087_v48 = vld [vmem:[%s4636_s5 + $0x8] sm:$0xff]  ;;  %4937 = vst [vmem:[#allocation98_spill] sm:$0xff] %v3188_v4 }
  0xd4   :  { %v378_v5 = vsub.f32 0.0, %v346_v8  ;;  %v3082_v18 = vsel %vm4750_vm5, %v2621_v46, %v2606_v43  ;;  %2276 = vpow2.f32 %v405_v59  ;;  %v383_v57 = vsub.f32 0.0, %v351_v55  ;;  %v3207_v46 = vld [vmem:[%s4636_s5 + $0x78] sm:$0xff]  ;;  %v3212_v43 = vld [vmem:[%s4636_s5 + $0x80] sm:$0xff] }
  0xd5   :  { %v343_v38 = vand.u32 2147483647, %v4908_v3  ;;  %v4911_v39 = vld [vmem:[#allocation59_spill] sm:$0xff]  ;;  %v349_v3 = vand.u32 2147483647, %v317_v33  ;;  %4918 = vst [vmem:[#allocation70_spill] sm:$0xff] %v3082_v18  ;;  %2278 = vpow2.f32 %v407_v10 }
  0xd6   :  { %v411_v44 = vmul.f32 1.442695, %v376_v56  ;;  %v353_v33 = vand.u32 2147483647, %v321_v1  ;;  %v382_v8 = vsub.f32 0.0, %v350_v45  ;;  %v384_v56 = vsub.f32 0.0, %v352_v13 }
  0xd7   :  { %v375_v47 = vsub.f32 0.0, %v343_v38  ;;  %v380_v38 = vsub.f32 0.0, %v348_v20  ;;  %v381_v61 = vsub.f32 0.0, %v349_v3  ;;  %v415_v7 = vmul.f32 1.442695, %v378_v5  ;;  %4919 = vst [vmem:[#allocation59_spill] sm:$0xff] %v3087_v48 }
  0xd8   :  { %v417_v0 = vmul.f32 1.442695, %v379_v51  ;;  %v357_v1 = vand.u32 2147483647, %v325_v35  ;;  %v385_v59 = vsub.f32 0.0, %v353_v33  ;;  %v3092_v45 = vld [vmem:[%s4636_s5 + $0x10] sm:$0xff]  ;;  %v4924_v5 = vsub.f32 %v2800_v40, %v2856_v36 }
  0xd9   :  { %v409_v16 = vmul.f32 1.442695, %v375_v47  ;;  %v356_v47 = vand.u32 2147483647, %v324_v52  ;;  %v419_v20 = vmul.f32 1.442695, %v380_v38  ;;  %v4927_v33 = vsub.f32 %v2805_v42, %v2889_v31 }
  0xda   :  { %v421_v50 = vmul.f32 1.442695, %v381_v61  ;;  %4920 = vst [vmem:[#allocation87_spill] sm:$0xff] %v3092_v45  ;;  %v358_v55 = vand.u32 2147483647, %v326_v62  ;;  %v387_v35 = vsub.f32 0.0, %v355_v53 }
  0xdb   :  { %2280 = vpow2.f32 %v409_v16  ;;  %v423_v13 = vmul.f32 1.442695, %v382_v8  ;;  %v3102_v52 = vand.u32 2147483647, %v4922_v15  ;;  %v425_v3 = vmul.f32 1.442695, %v383_v57 }
  0xdc   :  { %2282 = vpow2.f32 %v411_v44  ;;  %v3097_v44 = vld [vmem:[%s4636_s5 + $0x18] sm:$0xff]  ;;  %v3107_v62 = vld [vmem:[%s4636_s5 + $0x20] sm:$0xff]  ;;  %v388_v51 = vsub.f32 0.0, %v356_v47  ;;  %v427_v10 = vmul.f32 1.442695, %v384_v56  ;;  %v3117_v38 = vld [vmem:[%s4636_s5 + $0x28] sm:$0xff]  ;;  %v4930_v57 = vsub.f32 %v4911_v39, %v4910_v12 }
  0xdd   :  { %2284 = vpow2.f32 %v413_v30  ;;  %4921 = vst [vmem:[#allocation88_spill] sm:$0xff] %v3097_v44  ;;  %4923 = vst [vmem:[#allocation89_spill] sm:$0xff] %v3107_v62  ;;  %v3122_v16 = vld [vmem:[%s4636_s5 + $0x30] sm:$0xff]  ;;  %v3127_v61 = vand.u32 2147483647, %v4927_v33  ;;  %v389_v30 = vsub.f32 0.0, %v357_v1 }
  0xde   :  { %2286 = vpow2.f32 %v415_v7  ;;  %v3112_v7 = vand.u32 2147483647, %v4924_v5  ;;  %4925 = vst [vmem:[#allocation90_spill] sm:$0xff] %v3117_v38  ;;  %4926 = vst [vmem:[#allocation91_spill] sm:$0xff] %v3122_v16  ;;  %v429_v49 = vmul.f32 1.442695, %v385_v59 }
  0xdf   :  { %2288 = vpow2.f32 %v417_v0  ;;  %v3132_v8 = vld [vmem:[%s4636_s5 + $0x38] sm:$0xff]  ;;  %v3137_v53 = vld [vmem:[%s4636_s5 + $0x40] sm:$0xff]  ;;  %vm4765_vm6 = vcmp.gt.s32.totalorder %v3087_v48, 0  ;;  %v3143_v0 = vand.u32 2147483647, %v4930_v57  ;;  %v390_v47 = vsub.f32 0.0, %v358_v55 }
  0xe0   :  { %2290 = vpow2.f32 %v419_v20  ;;  %4928 = vst [vmem:[#allocation92_spill] sm:$0xff] %v3132_v8  ;;  %4929 = vst [vmem:[#allocation93_spill] sm:$0xff] %v3137_v53  ;;  %v431_v56 = vmul.f32 1.442695, %v386_v14  ;;  %v3145_v20 = vpop.eup %2276  ;;  %v3150_v1 = vld [vmem:[%s4636_s5 + $0x48] sm:$0xff]  ;;  %v3155_v59 = vld [vmem:[%s4636_s5 + $0x50] sm:$0xff]  ;;  %v4936_v57 = vsub.f32 %v4914_v29, %v4913_v6 }
  0xe1   :  { %2292 = vpow2.f32 %v421_v50  ;;  %4931 = vst [vmem:[#allocation94_spill] sm:$0xff] %v3150_v1  ;;  %4932 = vst [vmem:[#allocation95_spill] sm:$0xff] %v3155_v59  ;;  %vm4768_vm7 = vcmp.gt.s32.totalorder %v3092_v45, 0  ;;  %v4933_v50 = vsub.f32 %v4912_v11, %v2899_v25  ;;  %v391_v14 = vsub.f32 0.0, %v3102_v52  ;;  %v3164_v15 = vpop.eup %2278  ;;  %v3169_v5 = vld [vmem:[%s4636_s5 + $0x58] sm:$0xff]  ;;  %v3174_v33 = vld [vmem:[%s4636_s5 + $0x60] sm:$0xff] }
  0xe2   :  { %2294 = vpow2.f32 %v423_v13  ;;  %v433_v13 = vmul.f32 1.442695, %v387_v35  ;;  %4934 = vst [vmem:[#allocation96_spill] sm:$0xff] %v3169_v5  ;;  %4935 = vst [vmem:[#allocation97_spill] sm:$0xff] %v3174_v33  ;;  %vm4771_vm8 = vcmp.gt.s32.totalorder %v3097_v44, 0  ;;  %v392_v35 = vsub.f32 0.0, %v3112_v7 }
  0xe3   :  { %v3161_v55 = vand.u32 2147483647, %v4933_v50  ;;  %2296 = vpow2.f32 %v425_v3  ;;  %v3180_v52 = vand.u32 2147483647, %v4936_v57  ;;  %v435_v3 = vmul.f32 1.442695, %v388_v51 }
  0xe4   :  { %2298 = vpow2.f32 %v427_v10  ;;  %vm4774_vm9 = vcmp.gt.s32.totalorder %v3107_v62, 0  ;;  %v4939_v57 = vsub.f32 %v2869_v27, %v2932_v26  ;;  %v393_v51 = vsub.f32 0.0, %v3127_v61  ;;  %4940 = vst [vmem:[#allocation100_spill] sm:$0xff] %v3207_v46  ;;  %4941 = vst [vmem:[#allocation101_spill] sm:$0xff] %v3212_v43  ;;  %v3227_v27 = vld [vmem:[%s4636_s5 + $0x88] sm:$0xff]  ;;  %v3232_v6 = vld [vmem:[%s4636_s5 + $0x90] sm:$0xff] }
  0xe5   :  { %v3183_v50 = vpop.eup %2280  ;;  %2300 = vpow2.f32 %v429_v49  ;;  %v437_v10 = vmul.f32 1.442695, %v389_v30  ;;  %vm250_vm10 = vcmp.gt.s32.totalorder %v3117_v38, 0  ;;  %vm4779_vm11 = vcmp.gt.s32.totalorder %v3122_v16, 0  ;;  %4943 = vst [vmem:[#allocation102_spill] sm:$0xff] %v3227_v27  ;;  %4944 = vst [vmem:[#allocation103_spill] sm:$0xff] %v3232_v6 }
  0xe6   :  { %v3199_v7 = vand.u32 2147483647, %v4939_v57  ;;  %v3202_v18 = vpop.eup %2282  ;;  %v4942_v61 = vsub.f32 %v2874_v28, %v2937_v19  ;;  %v394_v49 = vsub.f32 0.0, %v3143_v0  ;;  %2302 = vpow2.f32 %v431_v56  ;;  %v3247_v28 = vld [vmem:[%s4636_s5 + $0x98] sm:$0xff]  ;;  %v3252_v29 = vld [vmem:[%s4636_s5 + $0xa0] sm:$0xff] }
  0xe7   :  { %v439_v57 = vmul.f32 1.442695, %v390_v47  ;;  %v3222_v26 = vpop.eup %2284  ;;  %vm252_vm12 = vcmp.gt.s32.totalorder %v3132_v8, 0  ;;  %vm253_vm13 = vcmp.gt.s32.totalorder %v3137_v53, 0  ;;  %v4945_v0 = vsub.f32 %v4915_v60, %v2951_v58  ;;  %4946 = vst [vmem:[#allocation104_spill] sm:$0xff] %v3247_v28  ;;  %4947 = vst [vmem:[#allocation105_spill] sm:$0xff] %v3252_v29 }
  0xe8   :  { %v3219_v30 = vand.u32 2147483647, %v4942_v61  ;;  %v395_v56 = vsub.f32 0.0, %v3161_v55  ;;  %2304 = vpow2.f32 %v433_v13  ;;  %v441_v61 = vmul.f32 1.442695, %v391_v14  ;;  %v3242_v19 = vpop.eup %2286  ;;  %v3267_v60 = vld [vmem:[%s4636_s5 + $0xa8] sm:$0xff] }
  0xe9   :  { %v3239_v47 = vand.u32 2147483647, %v4945_v0  ;;  %vm254_vm14 = vcmp.gt.s32.totalorder %v3150_v1, 0  ;;  %vm255_vm15 = vcmp.gt.s32.totalorder %v3155_v59, 0  ;;  %v4948_v55 = vsub.f32 %v4917_v63, %v4916_v54  ;;  %v3262_v58 = vpop.eup %2288  ;;  %4949 = vst [vmem:[#allocation106_spill] sm:$0xff] %v3267_v60  ;;  %v3282_v63 = vld [vmem:[%s4636_s5 + $0xb0] sm:$0xff] }
  0xea   :  { %v396_v13 = vsub.f32 0.0, %v3180_v52  ;;  %2306 = vpow2.f32 %v435_v3  ;;  %v443_v0 = vmul.f32 1.442695, %v392_v35  ;;  %vm256_vm0 = vcmp.gt.s32.totalorder %v3169_v5, 0  ;;  %v3277_v3 = vpop.eup %2290  ;;  %4951 = vst [vmem:[#allocation107_spill] sm:$0xff] %v3282_v63  ;;  %v4969_v48 = vld [vmem:[#allocation38_spill] sm:$0xff] }
  0xeb   :  { %v3259_v14 = vand.u32 2147483647, %v4948_v55  ;;  %vm4792_vm1 = vcmp.gt.s32.totalorder %v3174_v33, 0  ;;  %v4950_v54 = vsub.f32 %v2912_v22, %v2961_v9  ;;  %v397_v52 = vsub.f32 0.0, %v3199_v7  ;;  %v3297_v22 = vld [vmem:[%s4636_s5 + $0xb8] sm:$0xff]  ;;  %v5004_v1 = vld [vmem:[#allocation57_spill] sm:$0xff] }
  0xec   :  { %2308 = vpow2.f32 %v437_v10  ;;  %v445_v35 = vmul.f32 1.442695, %v393_v51  ;;  %vm4794_vm2 = vcmp.gt.s32.totalorder %v3188_v4, 0  ;;  %v4952_v9 = vsub.f32 %v2917_v17, %v2972_v21  ;;  %v3292_v10 = vpop.eup %2292  ;;  %4954 = vst [vmem:[#allocation109_spill] sm:$0xff] %v3297_v22  ;;  %v3312_v17 = vld [vmem:[%s4636_s5 + $0xc0] sm:$0xff]  ;;  %v4997_v8 = vld [vmem:[#allocation42_spill] sm:$0xff] }
  0xed   :  { %v3274_v55 = vand.u32 2147483647, %v4950_v54  ;;  %v398_v7 = vsub.f32 0.0, %v3219_v30  ;;  %2310 = vpow2.f32 %v439_v57  ;;  %v447_v51 = vmul.f32 1.442695, %v394_v49  ;;  %4953 = vst [vmem:[#allocation108_spill] sm:$0xff] %v3292_v10  ;;  %v3307_v57 = vpop.eup %2294 }
  0xee   :  { %v3289_v54 = vand.u32 2147483647, %v4952_v9  ;;  %v4955_v21 = vsub.f32 %v2922_v23, %v2977_v32  ;;  %v399_v30 = vsub.f32 0.0, %v3239_v47  ;;  %2312 = vpow2.f32 %v441_v61  ;;  %4956 = vst [vmem:[#allocation110_spill] sm:$0xff] %v3307_v57  ;;  %4957 = vst [vmem:[#allocation111_spill] sm:$0xff] %v3312_v17  ;;  %v3325_v61 = vld [vmem:[%s4636_s5 + $0xc8] sm:$0xff] }
  0xef   :  { %v449_v49 = vmul.f32 1.442695, %v395_v56  ;;  %v4958_v32 = vsub.f32 %v2995_v24, %v3000_v37  ;;  %v400_v23 = vsub.f32 0.0, %v3259_v14  ;;  %2314 = vpow2.f32 %v443_v0  ;;  %v3320_v56 = vpop.eup %2296  ;;  %4960 = vst [vmem:[#allocation113_spill] sm:$0xff] %v3325_v61  ;;  %v3330_v57 = vld [vmem:[%s4636_s5 + $0xd0] sm:$0xff]  ;;  %v3351_v10 = vld [vmem:[%s4636_s5 + $0xe0] sm:$0xff] }
  0xf0   :  { %v3304_v9 = vand.u32 2147483647, %v4955_v21  ;;  %v451_v47 = vmul.f32 1.442695, %v396_v13  ;;  %4959 = vst [vmem:[#allocation112_spill] sm:$0xff] %v3320_v56  ;;  %4961 = vst [vmem:[#allocation114_spill] sm:$0xff] %v3330_v57  ;;  %2316 = vpow2.f32 %v445_v35  ;;  %v3341_v24 = vpop.eup %2298 }
  0xf1   :  { %v372_v21 = vand.u32 2147483647, %v4958_v32  ;;  %v401_v32 = vsub.f32 0.0, %v3274_v55  ;;  %v453_v14 = vmul.f32 1.442695, %v397_v52  ;;  %v4962_v13 = vld [vmem:[#allocation27_spill] sm:$0xff]  ;;  %2318 = vpow2.f32 %v447_v51 }
  0xf2   :  { %v4963_v0 = vld [vmem:[#allocation33_spill] sm:$0xff]  ;;  %4965 = vst [vmem:[#allocation116_spill] sm:$0xff] %v3341_v24  ;;  %v3346_v56 = vld [vmem:[%s4636_s5 + $0xd8] sm:$0xff]  ;;  %4967 = vst [vmem:[#allocation118_spill] sm:$0xff] %v3351_v10  ;;  %vm266_vm4 = vcmp.gt.s32.totalorder %v3267_v60, 0  ;;  %v402_v55 = vsub.f32 0.0, %v3289_v54  ;;  %2320 = vpow2.f32 %v449_v49 }
  0xf3   :  { %v3339_v37 = vsel %vm4765_vm6, %v4963_v0, %v4962_v13  ;;  %4966 = vst [vmem:[#allocation117_spill] sm:$0xff] %v3346_v56  ;;  %v455_v52 = vmul.f32 1.442695, %v398_v7  ;;  %v4968_v35 = vld [vmem:[#allocation28_spill] sm:$0xff]  ;;  %v3362_v0 = vpop.eup %2300  ;;  %v3372_v24 = vld [vmem:[%s4636_s5 + $0xf0] sm:$0xff]  ;;  %v403_v54 = vsub.f32 0.0, %v3304_v9  ;;  %2322 = vpow2.f32 %v451_v47 }
  0xf4   :  { %4964 = vst [vmem:[#allocation115_spill] sm:$0xff] %v3339_v37  ;;  %v3360_v37 = vsel %vm4768_vm7, %v4969_v48, %v4968_v35  ;;  %4971 = vst [vmem:[#allocation120_spill] sm:$0xff] %v3362_v0  ;;  %v3367_v13 = vld [vmem:[%s4636_s5 + $0xe8] sm:$0xff]  ;;  %v457_v7 = vmul.f32 1.442695, %v399_v30  ;;  %v4974_v51 = vld [vmem:[#allocation30_spill] sm:$0xff]  ;;  %v3383_v48 = vpop.eup %2302  ;;  %2324 = vpow2.f32 %v453_v14 }
  0xf5   :  { %4970 = vst [vmem:[#allocation119_spill] sm:$0xff] %v3360_v37  ;;  %4972 = vst [vmem:[#allocation121_spill] sm:$0xff] %v3367_v13  ;;  %v4975_v45 = vld [vmem:[#allocation39_spill] sm:$0xff]  ;;  %vm270_vm7 = vcmp.gt.s32.totalorder %v3325_v61, 0  ;;  %vm271_vm5 = vcmp.gt.s32.totalorder %v3330_v57, 0  ;;  %v404_v9 = vsub.f32 0.0, %v372_v21  ;;  %2326 = vpow2.f32 %v455_v52 }
  0xf6   :  { %4973 = vst [vmem:[#allocation122_spill] sm:$0xff] %v3372_v24  ;;  %v3381_v37 = vsel %vm4771_vm8, %v4975_v45, %v4974_v51  ;;  %4977 = vst [vmem:[#allocation124_spill] sm:$0xff] %v3383_v48  ;;  %v3388_v35 = vld [vmem:[%s4636_s5 + $0xf8] sm:$0xff]  ;;  %v459_v30 = vmul.f32 1.442695, %v400_v23  ;;  %v4980_v0 = vld [vmem:[#allocation40_spill] sm:$0xff]  ;;  %2328 = vpow2.f32 %v457_v7 }
  0xf7   :  { %4976 = vst [vmem:[#allocation123_spill] sm:$0xff] %v3381_v37  ;;  %4978 = vst [vmem:[#allocation125_spill] sm:$0xff] %v3388_v35  ;;  %v4979_v49 = vld [vmem:[#allocation31_spill] sm:$0xff]  ;;  %v3398_v37 = vpop.eup %2304  ;;  %vm272_vm8 = vcmp.gt.s32.totalorder %v3346_v56, 0  ;;  %v461_v45 = vmul.f32 1.442695, %v401_v32 }
  0xf8   :  { %v3396_v44 = vsel %vm4774_vm9, %v4980_v0, %v4979_v49  ;;  %v4982_v51 = vld [vmem:[#allocation32_spill] sm:$0xff]  ;;  %v4983_v48 = vld [vmem:[#allocation43_spill] sm:$0xff]  ;;  %vm274_vm9 = vcmp.gt.s32.totalorder %v3367_v13, 0  ;;  %vm275_vm6 = vcmp.gt.s32.totalorder %v3372_v24, 0  ;;  %v463_v32 = vmul.f32 1.442695, %v402_v55 }
  0xf9   :  { %4981 = vst [vmem:[#allocation31_spill] sm:$0xff] %v3396_v44  ;;  %v3406_v21 = vsel %vm250_vm10, %v4983_v48, %v4982_v51  ;;  %v4985_v23 = vld [vmem:[#allocation35_spill] sm:$0xff]  ;;  %v4986_v47 = vld [vmem:[#allocation44_spill] sm:$0xff]  ;;  %v3414_v44 = vpop.eup %2306  ;;  %v4989_v0 = vld [vmem:[#allocation45_spill] sm:$0xff]  ;;  %2330 = vpow2.f32 %v459_v30  ;;  %v469_v59 = vadd.f32 1.0, %v3145_v20  ;;  %v470_v33 = vadd.f32 1.0, %v3164_v15 }
  0xfa   :  { %4984 = vst [vmem:[#allocation32_spill] sm:$0xff] %v3406_v21  ;;  %v3412_v62 = vsel %vm4779_vm11, %v4986_v47, %v4985_v23  ;;  %v4988_v14 = vld [vmem:[#allocation36_spill] sm:$0xff]  ;;  %v4991_v21 = vld [vmem:[#allocation37_spill] sm:$0xff]  ;;  %v4992_v48 = vld [vmem:[#allocation50_spill] sm:$0xff]  ;;  %vm276_vm11 = vcmp.gt.s32.totalorder %v3388_v35, 0  ;;  %2332 = vpow2.f32 %v461_v45  ;;  %v471_v41 = vadd.f32 1.0, %v3183_v50 }
  0xfb   :  { %4987 = vst [vmem:[#allocation126_spill] sm:$0xff] %v3412_v62  ;;  %v3422_v38 = vsel %vm252_vm12, %v4989_v0, %v4988_v14  ;;  %v3428_v16 = vsel %vm253_vm13, %v4992_v48, %v4991_v21  ;;  %v3430_v62 = vpop.eup %2308  ;;  %v465_v47 = vmul.f32 1.442695, %v403_v54  ;;  %v4994_v52 = vld [vmem:[#allocation41_spill] sm:$0xff]  ;;  %v4995_v55 = vld [vmem:[#allocation51_spill] sm:$0xff]  ;;  %v5000_v48 = vld [vmem:[#allocation46_spill] sm:$0xff]  ;;  %2334 = vpow2.f32 %v463_v32 }
  0xfc   :  { %4990 = vst [vmem:[#allocation36_spill] sm:$0xff] %v3422_v38  ;;  %4993 = vst [vmem:[#allocation127_spill] sm:$0xff] %v3428_v16  ;;  %v3437_v23 = vsel %vm254_vm14, %v4995_v55, %v4994_v52  ;;  %v4998_v38 = vld [vmem:[#allocation52_spill] sm:$0xff]  ;;  %v3445_v53 = vpop.eup %2310  ;;  %v467_v16 = vmul.f32 1.442695, %v404_v9  ;;  %v5003_v7 = vld [vmem:[#allocation47_spill] sm:$0xff] }
  0xfd   :  { %4996 = vst [vmem:[#allocation41_spill] sm:$0xff] %v3437_v23  ;;  %v3443_v0 = vsel %vm255_vm15, %v4998_v38, %v4997_v8  ;;  %v5001_v21 = vld [vmem:[#allocation56_spill] sm:$0xff]  ;;  %v3457_v23 = vsel %vm4792_vm1, %v5004_v1, %v5003_v7  ;;  %v2313_v55 = vpop.eup %2312  ;;  %v5007_v38 = vld [vmem:[#allocation58_spill] sm:$0xff]  ;;  %v5009_v30 = vld [vmem:[#allocation49_spill] sm:$0xff]  ;;  %vm5014_vm1 = vcmp.gt.s32.totalorder %v3207_v46, 0  ;;  %2336 = vpow2.f32 %v465_v47 }
  0xfe   :  { %4999 = vst [vmem:[#allocation42_spill] sm:$0xff] %v3443_v0  ;;  %v3451_v54 = vsel %vm256_vm0, %v5001_v21, %v5000_v48  ;;  %5005 = vst [vmem:[#allocation47_spill] sm:$0xff] %v3457_v23  ;;  %v5006_v0 = vld [vmem:[#allocation48_spill] sm:$0xff]  ;;  %v2315_v21 = vpop.eup %2314  ;;  %v5012_v23 = vld [vmem:[#allocation53_spill] sm:$0xff]  ;;  %2338 = vpow2.f32 %v467_v16  ;;  %v486_v35 = vadd.f32 1.0, %v3445_v53 }
  0xff   :  { %5002 = vst [vmem:[#allocation46_spill] sm:$0xff] %v3451_v54  ;;  %v3464_v9 = vsel %vm4794_vm2, %v5007_v38, %v5006_v0  ;;  %v5010_v5 = vld [vmem:[#allocation60_spill] sm:$0xff]  ;;  %v5013_v45 = vld [vmem:[#allocation61_spill] sm:$0xff]  ;;  %v5016_v1 = vld [vmem:[#allocation54_spill] sm:$0xff]  ;;  %vm5018_vm2 = vcmp.gt.s32.totalorder %v3212_v43, 0  ;;  %v2317_v38 = vpop.eup %2316  ;;  %v472_v43 = vadd.f32 1.0, %v3202_v18  ;;  %2340 = vlog2.f32 %v469_v59 }
 0x100   :  { %5008 = vst [vmem:[#allocation48_spill] sm:$0xff] %v3464_v9  ;;  %v3470_v54 = vsel %vm4798_vm3, %v5010_v5, %v5009_v30  ;;  %v3477_v20 = vsel %vm5014_vm1, %v5013_v45, %v5012_v23  ;;  %v5017_v4 = vld [vmem:[#allocation62_spill] sm:$0xff]  ;;  %v5020_v32 = vld [vmem:[#allocation65_spill] sm:$0xff]  ;;  %vm5021_vm3 = vcmp.gt.s32.totalorder %v3227_v27, 0  ;;  %vm5023_vm1 = vcmp.gt.s32.totalorder %v3232_v6, 0  ;;  %v5037_v60 = vld [vmem:[#allocation76_spill] sm:$0xff] }
 0x101   :  { %5011 = vst [vmem:[#allocation49_spill] sm:$0xff] %v3470_v54  ;;  %5015 = vst [vmem:[#allocation60_spill] sm:$0xff] %v3477_v20  ;;  %v3483_v9 = vsel %vm5018_vm2, %v5017_v4, %v5016_v1  ;;  %v5019_v54 = vld [vmem:[#allocation55_spill] sm:$0xff]  ;;  %v3496_v46 = vsel %vm5023_vm1, %v2851_v2, %v2795_v34  ;;  %v2319_v20 = vpop.eup %2318  ;;  %vm5025_vm2 = vcmp.gt.s32.totalorder %v3247_v28, 0  ;;  %v473_v6 = vadd.f32 1.0, %v3222_v26  ;;  %v5036_v59 = vld [vmem:[#allocation66_spill] sm:$0xff] }
 0x102   :  { %v3490_v15 = vsel %vm5021_vm3, %v5020_v32, %v5019_v54  ;;  %5024 = vst [vmem:[#allocation61_spill] sm:$0xff] %v3496_v46  ;;  %v3503_v50 = vsel %vm5025_vm2, %v2856_v36, %v2800_v40  ;;  %vm5027_vm3 = vcmp.gt.s32.totalorder %v3252_v29, 0  ;;  %v2321_v27 = vpop.eup %2320  ;;  %v3516_v18 = vsel %vm266_vm4, %v4910_v12, %v4911_v39  ;;  %v5050_v61 = vld [vmem:[#allocation80_spill] sm:$0xff]  ;;  %v5058_v56 = vld [vmem:[#allocation82_spill] sm:$0xff] }
 0x103   :  { %5022 = vst [vmem:[#allocation53_spill] sm:$0xff] %v3490_v15  ;;  %5026 = vst [vmem:[#allocation54_spill] sm:$0xff] %v3503_v50  ;;  %v3509_v47 = vsel %vm5027_vm3, %v2889_v31, %v2805_v42  ;;  %vm5030_vm1 = vcmp.gt.s32.totalorder %v3282_v63, 0  ;;  %v2323_v28 = vpop.eup %2322  ;;  %v474_v29 = vadd.f32 1.0, %v3242_v19  ;;  %2342 = vlog2.f32 %v470_v33  ;;  %v5033_v50 = vld [vmem:[#allocation75_spill] sm:$0xff]  ;;  %v5043_v33 = vld [vmem:[#allocation68_spill] sm:$0xff] }
 0x104   :  { %5028 = vst [vmem:[#allocation62_spill] sm:$0xff] %v3509_v47  ;;  %5029 = vst [vmem:[#allocation55_spill] sm:$0xff] %v3516_v18  ;;  %v3522_v16 = vsel %vm5030_vm1, %v2899_v25, %v4912_v11  ;;  %v5032_v47 = vld [vmem:[#allocation64_spill] sm:$0xff]  ;;  %vm5034_vm2 = vcmp.gt.s32.totalorder %v3297_v22, 0  ;;  %vm5038_vm3 = vcmp.gt.s32.totalorder %v3312_v17, 0  ;;  %v2325_v46 = vpop.eup %2324  ;;  %v475_v63 = vadd.f32 1.0, %v3262_v58 }
 0x105   :  { %5031 = vst [vmem:[#allocation65_spill] sm:$0xff] %v3522_v16  ;;  %v3529_v26 = vsel %vm5034_vm2, %v5033_v50, %v5032_v47  ;;  %v3535_v18 = vsel %vm5038_vm3, %v5037_v60, %v5036_v59  ;;  %2344 = vlog2.f32 %v471_v41  ;;  %v5040_v16 = vld [vmem:[#allocation67_spill] sm:$0xff]  ;;  %v5041_v25 = vld [vmem:[#allocation77_spill] sm:$0xff]  ;;  %v5044_v22 = vld [vmem:[#allocation78_spill] sm:$0xff]  ;;  %v2327_v50 = vpop.eup %2326  ;;  %v476_v17 = vadd.f32 1.0, %v3277_v3 }
 0x106   :  { %5035 = vst [vmem:[#allocation128_spill] sm:$0xff] %v3529_v26  ;;  %5039 = vst [vmem:[#allocation129_spill] sm:$0xff] %v3535_v18  ;;  %v3542_v19 = vsel %vm270_vm7, %v5041_v25, %v5040_v16  ;;  %v3548_v26 = vsel %vm271_vm5, %v5044_v22, %v5043_v33  ;;  %2346 = vlog2.f32 %v472_v43  ;;  %v5046_v18 = vld [vmem:[#allocation69_spill] sm:$0xff]  ;;  %v5047_v60 = vld [vmem:[#allocation79_spill] sm:$0xff]  ;;  %vm5051_vm1 = vcmp.gt.s32.totalorder %v3351_v10, 0  ;;  %v2329_v25 = vpop.eup %2328 }
 0x107   :  { %5042 = vst [vmem:[#allocation130_spill] sm:$0xff] %v3542_v19  ;;  %5045 = vst [vmem:[#allocation131_spill] sm:$0xff] %v3548_v26  ;;  %v3555_v41 = vsel %vm272_vm8, %v5047_v60, %v5046_v18  ;;  %v5049_v58 = vld [vmem:[#allocation72_spill] sm:$0xff]  ;;  %2348 = vlog2.f32 %v473_v6  ;;  %v5054_v26 = vld [vmem:[#allocation73_spill] sm:$0xff]  ;;  %v2331_v60 = vpop.eup %2330  ;;  %v3591_v59 = vadd.f32 1.0, %v2321_v27  ;;  %vm693_vm2 = vcmask 15360  }
 0x108   :  { %5048 = vst [vmem:[#allocation132_spill] sm:$0xff] %v3555_v41  ;;  %v3561_v19 = vsel %vm5051_vm1, %v5050_v61, %v5049_v58  ;;  %v5053_v57 = vld [vmem:[#allocation108_spill] sm:$0xff]  ;;  %v5055_v33 = vld [vmem:[#allocation81_spill] sm:$0xff]  ;;  %v5057_v3 = vld [vmem:[#allocation74_spill] sm:$0xff]  ;;  %2350 = vlog2.f32 %v474_v29  ;;  %v2333_v13 = vpop.eup %2332  ;;  %v485_v29 = vadd.f32 1.0, %v3430_v62  ;;  %v3599_v62 = vadd.f32 1.0, %v2329_v25 }
 0x109   :  { %5052 = vst [vmem:[#allocation133_spill] sm:$0xff] %v3561_v19  ;;  %v477_v22 = vadd.f32 1.0, %v5053_v57  ;;  %v3568_v43 = vsel %vm274_vm9, %v5055_v33, %v5054_v26  ;;  %v3574_v41 = vsel %vm275_vm6, %v5058_v56, %v5057_v3  ;;  %v5060_v10 = vld [vmem:[#allocation110_spill] sm:$0xff]  ;;  %v5061_v19 = vld [vmem:[#allocation112_spill] sm:$0xff]  ;;  %v5063_v6 = vld [vmem:[#allocation85_spill] sm:$0xff]  ;;  %2352 = vlog2.f32 %v475_v63 }
 0x10a   :  { %5056 = vst [vmem:[#allocation108_spill] sm:$0xff] %v3568_v43  ;;  %5059 = vst [vmem:[#allocation134_spill] sm:$0xff] %v3574_v41  ;;  %v478_v61 = vadd.f32 1.0, %v5060_v10  ;;  %v479_v58 = vadd.f32 1.0, %v5061_v19  ;;  %v5062_v57 = vld [vmem:[#allocation84_spill] sm:$0xff]  ;;  %v2335_v41 = vpop.eup %2334  ;;  %v483_v10 = vadd.f32 1.0, %v3398_v37  ;;  %2354 = vlog2.f32 %v476_v17 }
 0x10b   :  { %v3582_v18 = vsel %vm276_vm11, %v5063_v6, %v5062_v57  ;;  %v5065_v43 = vld [vmem:[#allocation116_spill] sm:$0xff]  ;;  %v484_v19 = vadd.f32 1.0, %v3414_v44  ;;  %v2337_v3 = vpop.eup %2336  ;;  %v488_v6 = vadd.f32 1.0, %v2315_v21  ;;  %2356 = vlog2.f32 %v477_v22 }
 0x10c   :  { %5064 = vst [vmem:[#allocation110_spill] sm:$0xff] %v3582_v18  ;;  %v480_v33 = vadd.f32 1.0, %v5065_v43  ;;  %v5066_v26 = vld [vmem:[#allocation120_spill] sm:$0xff]  ;;  %v487_v18 = vadd.f32 1.0, %v2313_v55  ;;  %v2339_v43 = vpop.eup %2338  ;;  %v489_v57 = vadd.f32 1.0, %v2317_v38  ;;  %2358 = vlog2.f32 %v478_v61 }
 0x10d   :  { %v481_v16 = vadd.f32 1.0, %v5066_v26  ;;  %v5067_v24 = vld [vmem:[#allocation124_spill] sm:$0xff]  ;;  %v490_v26 = vadd.f32 1.0, %v2319_v20  ;;  %v3593_v63 = vadd.f32 1.0, %v2323_v28  ;;  %v3595_v37 = vadd.f32 1.0, %v2325_v46  ;;  %v5068_v20 = vld [vmem:[#allocation26_spill] sm:$0xff] }
 0x10e   :  { %v482_v56 = vadd.f32 1.0, %v5067_v24  ;;  %v2341_v24 = vpop.eup %2340  ;;  %v3597_v44 = vadd.f32 1.0, %v2327_v50  ;;  %2360 = vlog2.f32 %v479_v58  ;;  %v3601_v53 = vadd.f32 1.0, %v2331_v60  ;;  %v5069_v50 = vld [vmem:[#allocation29_spill] sm:$0xff] }
 0x10f   :  { %v2343_v17 = vpop.eup %2342  ;;  %v502_v22 = vmul.f32 0.6931472, %v2341_v24  ;;  %2362 = vlog2.f32 %v480_v33  ;;  %v3603_v21 = vadd.f32 1.0, %v2333_v13  ;;  %v3605_v27 = vadd.f32 1.0, %v2335_v41  ;;  %v5071_v13 = vld [vmem:[#allocation27_spill] sm:$0xff]  ;;  %v5072_v41 = vld [vmem:[#allocation33_spill] sm:$0xff] }
 0x110   :  { %v2345_v38 = vpop.eup %2344  ;;  %v504_v61 = vmul.f32 0.6931472, %v2343_v17  ;;  %2364 = vlog2.f32 %v481_v16  ;;  %v3607_v46 = vadd.f32 1.0, %v2337_v3  ;;  %v5070_v25 = vmax.f32 %v5068_v20, %v5069_v50 }
 0x111   :  { %v2347_v28 = vpop.eup %2346  ;;  %v506_v55 = vmul.f32 0.6931472, %v2345_v38  ;;  %2366 = vlog2.f32 %v482_v56  ;;  %v3614_v24 = vadd.f32 1.0, %v2339_v43  ;;  %v5073_v47 = vmax.f32 %v5071_v13, %v5072_v41  ;;  %v5074_v38 = vld [vmem:[#allocation28_spill] sm:$0xff]  ;;  %v5075_v56 = vld [vmem:[#allocation38_spill] sm:$0xff] }
 0x112   :  { %v3612_v58 = vadd.f32 %v502_v22, %v5070_v25  ;;  %v2349_v60 = vpop.eup %2348  ;;  %v508_v33 = vmul.f32 0.6931472, %v2347_v28  ;;  %2368 = vlog2.f32 %v483_v10  ;;  %v5076_v11 = vmax.f32 %v5074_v38, %v5075_v56  ;;  %v5077_v22 = vld [vmem:[#allocation70_spill] sm:$0xff]  ;;  %v5079_v28 = vld [vmem:[#allocation39_spill] sm:$0xff] }
 0x113   :  { %v3619_v17 = vadd.f32 %v504_v61, %v5073_v47  ;;  %v2351_v16 = vpop.eup %2350  ;;  %v510_v3 = vmul.f32 0.6931472, %v2349_v60  ;;  %2370 = vlog2.f32 %v484_v19  ;;  %v5078_v10 = vld [vmem:[#allocation30_spill] sm:$0xff]  ;;  %v5081_v47 = vld [vmem:[#allocation115_spill] sm:$0xff] }
 0x114   :  { %v3624_v15 = vadd.f32 %v506_v55, %v5076_v11  ;;  %v2353_v43 = vpop.eup %2352  ;;  %v512_v50 = vmul.f32 0.6931472, %v2351_v16  ;;  %2372 = vlog2.f32 %v485_v29  ;;  %v5080_v25 = vmax.f32 %v5078_v10, %v5079_v28  ;;  %v5082_v11 = vld [vmem:[#allocation40_spill] sm:$0xff]  ;;  %v5084_v38 = vld [vmem:[#allocation119_spill] sm:$0xff] }
 0x115   :  { %v2355_v19 = vpop.eup %2354  ;;  %v514_v60 = vmul.f32 0.6931472, %v2353_v43  ;;  %2374 = vlog2.f32 %v486_v35  ;;  %v5083_v55 = vmax.f32 %v4979_v49, %v5082_v11  ;;  %v5088_v49 = vld [vmem:[#allocation35_spill] sm:$0xff] }
 0x116   :  { %v3631_v13 = vadd.f32 %v508_v33, %v5080_v25  ;;  %v2357_v29 = vpop.eup %2356  ;;  %v516_v56 = vmul.f32 0.6931472, %v2355_v19  ;;  %2376 = vlog2.f32 %v487_v18  ;;  %v5085_v33 = vld [vmem:[#allocation43_spill] sm:$0xff]  ;;  %v5098_v19 = vld [vmem:[#allocation126_spill] sm:$0xff] }
 0x117   :  { %v3638_v41 = vadd.f32 %v510_v3, %v5083_v55  ;;  %v5086_v10 = vmax.f32 %v4982_v51, %v5085_v33  ;;  %v5087_v25 = vld [vmem:[#allocation123_spill] sm:$0xff]  ;;  %v2359_v35 = vpop.eup %2358  ;;  %v518_v61 = vmul.f32 0.6931472, %v2357_v29  ;;  %2378 = vlog2.f32 %v488_v6  ;;  %v5089_v3 = vld [vmem:[#allocation44_spill] sm:$0xff]  ;;  %v5092_v51 = vld [vmem:[#allocation45_spill] sm:$0xff] }
 0x118   :  { %v5090_v11 = vmax.f32 %v5088_v49, %v5089_v3  ;;  %v2361_v18 = vpop.eup %2360  ;;  %v520_v20 = vmul.f32 0.6931472, %v2359_v35  ;;  %2380 = vlog2.f32 %v489_v57  ;;  %v5095_v49 = vld [vmem:[#allocation37_spill] sm:$0xff] }
 0x119   :  { %v3645_v28 = vadd.f32 %v512_v50, %v5086_v10  ;;  %v5093_v50 = vmax.f32 %v4988_v14, %v5092_v51  ;;  %v5094_v10 = vld [vmem:[#allocation32_spill] sm:$0xff]  ;;  %v2363_v6 = vpop.eup %2362  ;;  %v522_v43 = vmul.f32 0.6931472, %v2361_v18  ;;  %2382 = vlog2.f32 %v490_v26  ;;  %v5099_v14 = vld [vmem:[#allocation51_spill] sm:$0xff] }
 0x11a   :  { %v3652_v55 = vadd.f32 %v514_v60, %v5090_v11  ;;  %v5096_v60 = vld [vmem:[#allocation50_spill] sm:$0xff]  ;;  %v2365_v57 = vpop.eup %2364  ;;  %v524_v16 = vmul.f32 0.6931472, %v2363_v6  ;;  %2384 = vlog2.f32 %v3591_v59  ;;  %v5104_v6 = vld [vmem:[#allocation127_spill] sm:$0xff] }
 0x11b   :  { %v3659_v33 = vadd.f32 %v516_v56, %v5093_v50  ;;  %v5097_v3 = vmax.f32 %v5095_v49, %v5096_v60  ;;  %v5100_v56 = vmax.f32 %v4994_v52, %v5099_v14  ;;  %v5101_v50 = vld [vmem:[#allocation36_spill] sm:$0xff]  ;;  %v2367_v18 = vpop.eup %2366  ;;  %v526_v29 = vmul.f32 0.6931472, %v2365_v57 }
 0x11c   :  { %2386 = vlog2.f32 %v3593_v63  ;;  %v528_v52 = vmul.f32 0.6931472, %v2367_v18 }
 0x11d   :  { %v3666_v11 = vadd.f32 %v518_v61, %v5097_v3  ;;  %v3674_v51 = vadd.f32 %v520_v20, %v5100_v56  ;;  %v5102_v61 = vld [vmem:[#allocation52_spill] sm:$0xff]  ;;  %v2369_v3 = vpop.eup %2368  ;;  %2388 = vlog2.f32 %v3595_v37 }
 0x11e   :  { %v5103_v49 = vmax.f32 %v4997_v8, %v5102_v61  ;;  %v5105_v20 = vld [vmem:[#allocation56_spill] sm:$0xff]  ;;  %v2371_v26 = vpop.eup %2370  ;;  %2390 = vlog2.f32 %v3597_v44  ;;  %v5108_v61 = vld [vmem:[#allocation57_spill] sm:$0xff] }
 0x11f   :  { %v5106_v14 = vmax.f32 %v5000_v48, %v5105_v20  ;;  %v2373_v18 = vpop.eup %2372  ;;  %v532_v37 = vmul.f32 0.6931472, %v2371_v26  ;;  %2392 = vlog2.f32 %v3599_v62  ;;  %v5110_v48 = vld [vmem:[#allocation58_spill] sm:$0xff] }
 0x120   :  { %v3682_v60 = vadd.f32 %v522_v43, %v5103_v49  ;;  %v530_v43 = vmul.f32 0.6931472, %v2369_v3  ;;  %v5109_v49 = vmax.f32 %v5003_v7, %v5108_v61  ;;  %v2375_v3 = vpop.eup %2374  ;;  %v534_v44 = vmul.f32 0.6931472, %v2373_v18  ;;  %v5115_v61 = vld [vmem:[#allocation46_spill] sm:$0xff]  ;;  %v5118_v18 = vld [vmem:[#allocation47_spill] sm:$0xff] }
 0x121   :  { %v3690_v56 = vadd.f32 %v524_v16, %v5106_v14  ;;  %v5111_v16 = vmax.f32 %v5006_v0, %v5110_v48  ;;  %v5112_v14 = vld [vmem:[#allocation42_spill] sm:$0xff]  ;;  %2394 = vlog2.f32 %v3601_v53  ;;  %v5113_v7 = vmax.f32 %v5009_v30, %v5010_v5  ;;  %v2377_v26 = vpop.eup %2376 }
 0x122   :  { %v3698_v59 = vadd.f32 %v526_v29, %v5109_v49  ;;  %v536_v62 = vmul.f32 0.6931472, %v2375_v3  ;;  %2396 = vlog2.f32 %v3603_v21  ;;  %v5114_v0 = vmax.f32 %v5012_v23, %v5013_v45 }
 0x123   :  { %v3704_v20 = vadd.f32 %v528_v52, %v5111_v16  ;;  %v3712_v29 = vadd.f32 %v530_v43, %v5113_v7  ;;  %v538_v49 = vmul.f32 0.6931472, %v2377_v26  ;;  %2398 = vlog2.f32 %v3605_v27  ;;  %v5122_v26 = vld [vmem:[#allocation49_spill] sm:$0xff] }
 0x124   :  { %v3718_v52 = vadd.f32 %v532_v37, %v5114_v0  ;;  %v5116_v5 = vmax.f32 %v5016_v1, %v5017_v4  ;;  %2400 = vlog2.f32 %v3607_v46  ;;  %v5117_v23 = vmax.f32 %v5019_v54, %v5020_v32  ;;  %v5143_v37 = vld [vmem:[#allocation67_spill] sm:$0xff] }
 0x125   :  { %2402 = vlog2.f32 %v3614_v24  ;;  %v5119_v4 = vmax.f32 %v2795_v34, %v2851_v2  ;;  %v5120_v54 = vmax.f32 %v2800_v40, %v2856_v36  ;;  %v5123_v2 = vmax.f32 %v2805_v42, %v2889_v31 }
 0x126   :  { %v3726_v30 = vadd.f32 %v534_v44, %v5116_v5  ;;  %v3732_v45 = vadd.f32 %v536_v62, %v5117_v23  ;;  %v5121_v44 = vld [vmem:[#allocation48_spill] sm:$0xff] }
 0x127   :  { %v3740_v1 = vadd.f32 %v538_v49, %v5119_v4  ;;  %v5125_v49 = vmax.f32 %v4911_v39, %v4910_v12  ;;  %v5128_v4 = vld [vmem:[#allocation71_spill] sm:$0xff] }
 0x12c   :  { %v53_v35 = vpop.xlane.xlu0 %52 }
 0x12d   :  { %v54_v8 = vrot.slane %v53_v35, 4 }
 0x12f   :  { %v55_v57 = vadd.f32 %v54_v8, %v53_v35  ;;  %v2379_v8 = vpop.eup %2378 }
 0x130   :  { %v2381_v21 = vpop.eup %2380  ;;  %v540_v43 = vmul.f32 0.6931472, %v2379_v8  ;;  %v5124_v8 = vld [vmem:[#allocation60_spill] sm:$0xff] }
 0x131   :  { %v56_v53 = vrot.slane %v55_v57, 2  ;;  %v2383_v48 = vpop.eup %2382  ;;  %v542_v27 = vmul.f32 0.6931472, %v2381_v21 }
 0x132   :  { %v2385_v3 = vpop.eup %2384  ;;  %v544_v46 = vmul.f32 0.6931472, %v2383_v48  ;;  %v3745_v32 = vadd.f32 %v540_v43, %v5120_v54  ;;  %v5126_v43 = vld [vmem:[#allocation53_spill] sm:$0xff] }
 0x133   :  { %v57_v16 = vadd.f32 %v56_v53, %v55_v57  ;;  %v2387_v62 = vpop.eup %2386  ;;  %v546_v0 = vmul.f32 0.6931472, %v2385_v3  ;;  %v3754_v34 = vadd.f32 %v542_v27, %v5123_v2  ;;  %v5127_v27 = vld [vmem:[#allocation63_spill] sm:$0xff]  ;;  %v5135_v57 = vld [vmem:[#allocation54_spill] sm:$0xff] }
 0x134   :  { %v2389_v36 = vpop.eup %2388  ;;  %v548_v40 = vmul.f32 0.6931472, %v2387_v62  ;;  %v3761_v5 = vadd.f32 %v544_v46, %v5125_v49  ;;  %v5129_v3 = vmax.f32 %v5127_v27, %v5128_v4  ;;  %v5131_v62 = vld [vmem:[#allocation61_spill] sm:$0xff]  ;;  %v5132_v46 = vld [vmem:[#allocation64_spill] sm:$0xff]  ;;  %v5133_v49 = vld [vmem:[#allocation75_spill] sm:$0xff] }
 0x135   :  { %v58_v24 = vrot.slane %v57_v16, 1  ;;  %v2391_v48 = vpop.eup %2390  ;;  %v550_v42 = vmul.f32 0.6931472, %v2389_v36  ;;  %v5134_v53 = vmax.f32 %v5132_v46, %v5133_v49  ;;  %v5137_v27 = vld [vmem:[#allocation66_spill] sm:$0xff]  ;;  %v5138_v4 = vld [vmem:[#allocation76_spill] sm:$0xff] }
 0x136   :  { %v3770_v54 = vadd.f32 %v546_v0, %v5129_v3  ;;  %v2393_v12 = vpop.eup %2392  ;;  %v552_v39 = vmul.f32 0.6931472, %v2391_v48  ;;  %v5139_v3 = vmax.f32 %v5137_v27, %v5138_v4  ;;  %v5140_v48 = vld [vmem:[#allocation55_spill] sm:$0xff]  ;;  %v5142_v49 = vld [vmem:[#allocation34_spill] sm:$0xff] }
 0x137   :  { %v59_v31 = vadd.f32 %v58_v24, %v57_v16  ;;  %v3777_v21 = vadd.f32 %v548_v40, %v5134_v53  ;;  %v5136_v16 = vld [vmem:[#allocation62_spill] sm:$0xff]  ;;  %v2395_v36 = vpop.eup %2394  ;;  %v554_v0 = vmul.f32 0.6931472, %v2393_v12  ;;  %v5144_v24 = vld [vmem:[#allocation77_spill] sm:$0xff]  ;;  %v5146_v12 = vld [vmem:[#allocation128_spill] sm:$0xff] }
 0x138   :  { %5130 = vst [vmem:[#allocation112_spill] sm:$0xff] %v3770_v54  ;;  %v3786_v2 = vadd.f32 %v550_v42, %v5139_v3  ;;  %v2397_v40 = vpop.eup %2396  ;;  %v556_v23 = vmul.f32 0.6931472, %v2395_v36  ;;  %v5145_v35 = vmax.f32 %v5143_v37, %v5144_v24  ;;  %v5147_v42 = vsub.f32 %v3612_v58, %v5077_v22  ;;  %v5148_v4 = vld [vmem:[#allocation83_spill] sm:$0xff]  ;;  %v5150_v53 = vld [vmem:[#allocation86_spill] sm:$0xff] }
 0x139   :  { %2218 = vpush %v59_v31  ;;  %vm5149_vm3 = vcmp.gt.s32.totalorder %v5148_v4, 0  ;;  %v2399_v7 = vpop.eup %2398  ;;  %v558_v63 = vmul.f32 0.6931472, %v2397_v40  ;;  %v5152_v36 = vld [vmem:[#allocation78_spill] sm:$0xff]  ;;  %v5156_v24 = vld [vmem:[#allocation59_spill] sm:$0xff] }
 0x13a   :  { %2220 = vpush %v5142_v49  ;;  %v3796_v31 = vadd.f32 %v552_v39, %v5145_v35  ;;  %v661_v3 = vsel %vm5149_vm3, 0.0, %v5147_v42  ;;  %v5151_v49 = vld [vmem:[#allocation68_spill] sm:$0xff]  ;;  %v5154_v35 = vld [vmem:[#allocation129_spill] sm:$0xff]  ;;  %v5155_v39 = vsub.f32 %v3619_v17, %v5081_v47  ;;  %vm5157_vm1 = vcmp.gt.s32.totalorder %v5156_v24, 0  ;;  %v2401_v22 = vpop.eup %2400  ;;  %v5159_v40 = vld [vmem:[#allocation79_spill] sm:$0xff] }
 0x13b   :  { %2222 = vpush %v5150_v53  ;;  %v5153_v46 = vmax.f32 %v5151_v49, %v5152_v36  ;;  %v653_v37 = vsub.f32 %v3786_v2, %v5154_v35  ;;  %v560_v42 = vmul.f32 0.6931472, %v2399_v7  ;;  %v5158_v53 = vld [vmem:[#allocation69_spill] sm:$0xff]  ;;  %v5162_v2 = vsub.f32 %v3624_v15, %v5084_v38  ;;  %v5163_v49 = vld [vmem:[#allocation87_spill] sm:$0xff]  ;;  %v2403_v7 = vpop.eup %2402  ;;  %v5167_v35 = vld [vmem:[#allocation72_spill] sm:$0xff] }
 0x13c   :  { %v662_v58 = vsel %vm5157_vm1, 0.0, %v5155_v39  ;;  %694 = vst.msk [vmem:[#allocation3] sm:$0xff] %vm693_vm2, %v661_v3  ;;  %v5160_v4 = vmax.f32 %v5158_v53, %v5159_v40  ;;  %vm5164_vm3 = vcmp.gt.s32.totalorder %v5163_v49, 0  ;;  %v5165_v47 = vld [vmem:[#allocation25_spill] sm:$0xff]  ;;  %v562_v36 = vmul.f32 0.6931472, %v2401_v22 }
 0x13d   :  { %v3809_v54 = vadd.f32 %v554_v0, %v5153_v46  ;;  %v5161_v0 = vld [vmem:[#allocation130_spill] sm:$0xff]  ;;  %v663_v17 = vsel %vm5164_vm3, 0.0, %v5162_v2  ;;  %695 = vst.msk [vmem:[#allocation3 + $0x8] sm:$0xff] %vm693_vm2, %v662_v58  ;;  %v5166_v3 = vmin.f32 %v5165_v47, 255.0  ;;  %v5168_v39 = vld [vmem:[#allocation80_spill] sm:$0xff]  ;;  %v5170_v53 = vld [vmem:[#allocation131_spill] sm:$0xff]  ;;  %v5171_v15 = vsub.f32 %v3631_v13, %v5087_v25 }
 0x13e   :  { %v3822_v27 = vadd.f32 %v556_v23, %v5160_v4  ;;  %v654_v46 = vsub.f32 %v3796_v31, %v5161_v0  ;;  %v5169_v23 = vmax.f32 %v5167_v35, %v5168_v39  ;;  %v5172_v38 = vld [vmem:[#allocation88_spill] sm:$0xff]  ;;  %696 = vst.msk [vmem:[#allocation3 + $0x10] sm:$0xff] %vm693_vm2, %v663_v17  ;;  %v564_v58 = vmul.f32 0.6931472, %v2403_v7  ;;  %v5174_v4 = vld [vmem:[#allocation73_spill] sm:$0xff]  ;;  %v5182_v13 = vld [vmem:[#allocation74_spill] sm:$0xff] }
 0x13f   :  { %2224 = vpush %v5166_v3  ;;  %v655_v31 = vsub.f32 %v3809_v54, %v5170_v53  ;;  %vm5173_vm1 = vcmp.gt.s32.totalorder %v5172_v38, 0  ;;  %v5175_v0 = vld [vmem:[#allocation81_spill] sm:$0xff]  ;;  %v5177_v49 = vld [vmem:[#allocation132_spill] sm:$0xff]  ;;  %v5183_v25 = vld [vmem:[#allocation82_spill] sm:$0xff] }
 0x140   :  { %v593_v24 = vadd.f32 %v558_v63, %v5169_v23  ;;  %v664_v40 = vsel %vm5173_vm1, 0.0, %v5171_v15  ;;  %v5176_v2 = vmax.f32 %v5174_v4, %v5175_v0  ;;  %v656_v47 = vsub.f32 %v3822_v27, %v5177_v49  ;;  %v5178_v63 = vld [vmem:[#allocation31_spill] sm:$0xff]  ;;  %v5180_v54 = vld [vmem:[#allocation89_spill] sm:$0xff]  ;;  %v5212_v53 = vld [vmem:[#allocation98_spill] sm:$0xff] }
 0x141   :  { %v5179_v3 = vsub.f32 %v3638_v41, %v5178_v63  ;;  %vm5181_vm3 = vcmp.gt.s32.totalorder %v5180_v54, 0  ;;  %697 = vst.msk [vmem:[#allocation3 + $0x18] sm:$0xff] %vm693_vm2, %v664_v40  ;;  %v5184_v39 = vmax.f32 %v5182_v13, %v5183_v25  ;;  %v5185_v7 = vld [vmem:[#allocation133_spill] sm:$0xff]  ;;  %v5188_v41 = vsub.f32 %v3652_v55, %v5098_v19  ;;  %v5189_v15 = vld [vmem:[#allocation91_spill] sm:$0xff]  ;;  %v5191_v40 = vld [vmem:[#allocation84_spill] sm:$0xff] }
 0x142   :  { %v594_v22 = vadd.f32 %v560_v42, %v5176_v2  ;;  %v657_v23 = vsub.f32 %v593_v24, %v5185_v7  ;;  %v5186_v42 = vsub.f32 %v3645_v28, %v5094_v10  ;;  %vm5190_vm1 = vcmp.gt.s32.totalorder %v5189_v15, 0  ;;  %v5192_v4 = vld [vmem:[#allocation85_spill] sm:$0xff]  ;;  %v5194_v2 = vld [vmem:[#allocation108_spill] sm:$0xff] }
 0x143   :  { %v665_v35 = vsel %vm5181_vm3, 0.0, %v5179_v3  ;;  %v595_v17 = vadd.f32 %v562_v36, %v5184_v39  ;;  %v667_v38 = vsel %vm5190_vm1, 0.0, %v5188_v41  ;;  %v5193_v0 = vmax.f32 %v5191_v40, %v5192_v4  ;;  %v5199_v3 = vld [vmem:[#allocation134_spill] sm:$0xff]  ;;  %v5221_v15 = vld [vmem:[#allocation101_spill] sm:$0xff] }
 0x144   :  { %v666_v27 = vsel %vm250_vm10, 0.0, %v5186_v42  ;;  %698 = vst.msk [vmem:[#allocation3 + $0x20] sm:$0xff] %vm693_vm2, %v665_v35  ;;  %v658_v24 = vsub.f32 %v594_v22, %v5194_v2  ;;  %v5195_v28 = vsub.f32 %v3659_v33, %v5101_v50  ;;  %v5197_v55 = vsub.f32 %v3666_v11, %v5104_v6  ;;  %700 = vst.msk [vmem:[#allocation3 + $0x30] sm:$0xff] %vm693_vm2, %v667_v38  ;;  %v5200_v22 = vld [vmem:[#allocation41_spill] sm:$0xff]  ;;  %v5224_v38 = vld [vmem:[#allocation102_spill] sm:$0xff] }
 0x145   :  { %v596_v36 = vadd.f32 %v564_v58, %v5193_v0  ;;  %699 = vst.msk [vmem:[#allocation3 + $0x28] sm:$0xff] %vm693_vm2, %v666_v27  ;;  %v659_v58 = vsub.f32 %v595_v17, %v5199_v3  ;;  %v5201_v54 = vsub.f32 %v3674_v51, %v5200_v22  ;;  %v5203_v50 = vsub.f32 %v3682_v60, %v5112_v14  ;;  %v5207_v51 = vld [vmem:[#allocation110_spill] sm:$0xff]  ;;  %v5209_v42 = vld [vmem:[#allocation97_spill] sm:$0xff]  ;;  %v5215_v27 = vld [vmem:[#allocation99_spill] sm:$0xff] }
 0x146   :  { %v668_v49 = vsel %vm252_vm12, 0.0, %v5195_v28  ;;  %v669_v63 = vsel %vm253_vm13, 0.0, %v5197_v55  ;;  %v5205_v6 = vsub.f32 %v3690_v56, %v5115_v61  ;;  %v5208_v7 = vsub.f32 %v3698_v59, %v5118_v18  ;;  %v5218_v18 = vld [vmem:[#allocation100_spill] sm:$0xff]  ;;  %v5227_v0 = vld [vmem:[#allocation103_spill] sm:$0xff]  ;;  %v5238_v10 = vld [vmem:[#allocation65_spill] sm:$0xff] }
 0x147   :  { %v670_v33 = vsel %vm254_vm14, 0.0, %v5201_v54  ;;  %v671_v11 = vsel %vm255_vm15, 0.0, %v5203_v50  ;;  %701 = vst.msk [vmem:[#allocation3 + $0x38] sm:$0xff] %vm693_vm2, %v668_v49  ;;  %702 = vst.msk [vmem:[#allocation3 + $0x40] sm:$0xff] %vm693_vm2, %v669_v63  ;;  %v660_v17 = vsub.f32 %v596_v36, %v5207_v51  ;;  %vm5210_vm10 = vcmp.gt.s32.totalorder %v5209_v42, 0  ;;  %v5237_v28 = vld [vmem:[#allocation112_spill] sm:$0xff] }
 0x148   :  { %v672_v39 = vsel %vm256_vm0, 0.0, %v5205_v6  ;;  %v673_v60 = vsel %vm5210_vm10, 0.0, %v5208_v7  ;;  %v5211_v14 = vsub.f32 %v3704_v20, %v5121_v44  ;;  %vm5213_vm12 = vcmp.gt.s32.totalorder %v5212_v53, 0  ;;  %703 = vst.msk [vmem:[#allocation3 + $0x48] sm:$0xff] %vm693_vm2, %v670_v33  ;;  %704 = vst.msk [vmem:[#allocation3 + $0x50] sm:$0xff] %vm693_vm2, %v671_v11  ;;  %v5240_v55 = vld [vmem:[#allocation107_spill] sm:$0xff] }
 0x149   :  { %v5214_v61 = vsub.f32 %v3712_v29, %v5122_v26  ;;  %vm5216_vm13 = vcmp.gt.s32.totalorder %v5215_v27, 0  ;;  %705 = vst.msk [vmem:[#allocation3 + $0x58] sm:$0xff] %vm693_vm2, %v672_v39  ;;  %v5217_v59 = vsub.f32 %v3718_v52, %v5124_v8  ;;  %vm5219_vm14 = vcmp.gt.s32.totalorder %v5218_v18, 0  ;;  %706 = vst.msk [vmem:[#allocation3 + $0x60] sm:$0xff] %vm693_vm2, %v673_v60  ;;  %v5250_v54 = vld [vmem:[#allocation118_spill] sm:$0xff] }
 0x14a   :  { %v674_v56 = vsel %vm5213_vm12, 0.0, %v5211_v14  ;;  %v5220_v44 = vsub.f32 %v3726_v30, %v3483_v9  ;;  %vm5222_vm15 = vcmp.gt.s32.totalorder %v5221_v15, 0  ;;  %v5223_v26 = vsub.f32 %v3732_v45, %v5126_v43  ;;  %v5230_v30 = vld [vmem:[#allocation104_spill] sm:$0xff]  ;;  %v5233_v43 = vld [vmem:[#allocation105_spill] sm:$0xff] }
 0x14b   :  { %v675_v41 = vsel %vm5216_vm13, 0.0, %v5214_v61  ;;  %v676_v20 = vsel %vm5219_vm14, 0.0, %v5217_v59  ;;  %vm5225_vm0 = vcmp.gt.s32.totalorder %v5224_v38, 0  ;;  %v5226_v4 = vsub.f32 %v3740_v1, %v5131_v62  ;;  %707 = vst.msk [vmem:[#allocation3 + $0x68] sm:$0xff] %vm693_vm2, %v674_v56 }
 0x14c   :  { %v677_v29 = vsel %vm5222_vm15, 0.0, %v5220_v44  ;;  %v678_v40 = vsel %vm5225_vm0, 0.0, %v5223_v26  ;;  %vm5228_vm3 = vcmp.gt.s32.totalorder %v5227_v0, 0  ;;  %708 = vst.msk [vmem:[#allocation3 + $0x70] sm:$0xff] %vm693_vm2, %v675_v41  ;;  %v5229_v9 = vsub.f32 %v3745_v32, %v5135_v57  ;;  %709 = vst.msk [vmem:[#allocation3 + $0x78] sm:$0xff] %vm693_vm2, %v676_v20 }
 0x14d   :  { %v679_v52 = vsel %vm5228_vm3, 0.0, %v5226_v4  ;;  %vm5231_vm1 = vcmp.gt.s32.totalorder %v5230_v30, 0  ;;  %v5232_v8 = vsub.f32 %v3754_v34, %v5136_v16  ;;  %vm5234_vm10 = vcmp.gt.s32.totalorder %v5233_v43, 0  ;;  %710 = vst.msk [vmem:[#allocation3 + $0x80] sm:$0xff] %vm693_vm2, %v677_v29  ;;  %711 = vst.msk [vmem:[#allocation3 + $0x88] sm:$0xff] %vm693_vm2, %v678_v40  ;;  %v5243_v34 = vld [vmem:[#allocation109_spill] sm:$0xff] }
 0x14e   :  { %v680_v45 = vsel %vm5231_vm1, 0.0, %v5229_v9  ;;  %v5235_v62 = vsub.f32 %v3761_v5, %v5140_v48  ;;  %v5239_v49 = vsub.f32 %v5237_v28, %v5238_v10  ;;  %vm5241_vm12 = vcmp.gt.s32.totalorder %v5240_v55, 0  ;;  %712 = vst.msk [vmem:[#allocation3 + $0x90] sm:$0xff] %vm693_vm2, %v679_v52  ;;  %v5245_v16 = vld [vmem:[#allocation111_spill] sm:$0xff] }
 0x14f   :  { %v681_v1 = vsel %vm5234_vm10, 0.0, %v5232_v8  ;;  %v5242_v57 = vsub.f32 %v3777_v21, %v5146_v12  ;;  %vm5244_vm13 = vcmp.gt.s32.totalorder %v5243_v34, 0  ;;  %v686_v63 = vsel %vm270_vm7, 0.0, %v654_v46  ;;  %713 = vst.msk [vmem:[#allocation3 + $0x98] sm:$0xff] %vm693_vm2, %v680_v45 }
 0x150   :  { %v682_v2 = vsel %vm266_vm4, 0.0, %v5235_v62  ;;  %v683_v32 = vsel %vm5241_vm12, 0.0, %v5239_v49  ;;  %vm5246_vm4 = vcmp.gt.s32.totalorder %v5245_v16, 0  ;;  %v687_v22 = vsel %vm271_vm5, 0.0, %v655_v31  ;;  %714 = vst.msk [vmem:[#allocation3 + $0xa0] sm:$0xff] %vm693_vm2, %v681_v1  ;;  %719 = vst.msk [vmem:[#allocation3 + $0xc8] sm:$0xff] %vm693_vm2, %v686_v63 }
 0x151   :  { %v684_v5 = vsel %vm5244_vm13, 0.0, %v5242_v57  ;;  %v685_v48 = vsel %vm5246_vm4, 0.0, %v653_v37  ;;  %715 = vst.msk [vmem:[#allocation3 + $0xa8] sm:$0xff] %vm693_vm2, %v682_v2  ;;  %716 = vst.msk [vmem:[#allocation3 + $0xb0] sm:$0xff] %vm693_vm2, %v683_v32  ;;  %v688_v12 = vsel %vm272_vm8, 0.0, %v656_v47  ;;  %vm5251_vm14 = vcmp.gt.s32.totalorder %v5250_v54, 0 }
 0x152   :  { %v689_v37 = vsel %vm5251_vm14, 0.0, %v657_v23  ;;  %v690_v46 = vsel %vm274_vm9, 0.0, %v658_v24  ;;  %v691_v31 = vsel %vm275_vm6, 0.0, %v659_v58  ;;  %717 = vst.msk [vmem:[#allocation3 + $0xb8] sm:$0xff] %vm693_vm2, %v684_v5  ;;  %718 = vst.msk [vmem:[#allocation3 + $0xc0] sm:$0xff] %vm693_vm2, %v685_v48  ;;  %v692_v47 = vsel %vm276_vm11, 0.0, %v660_v17 }
 0x153   :  { %720 = vst.msk [vmem:[#allocation3 + $0xd0] sm:$0xff] %vm693_vm2, %v687_v22  ;;  %721 = vst.msk [vmem:[#allocation3 + $0xd8] sm:$0xff] %vm693_vm2, %v688_v12 }
 0x154   :  { %722 = vst.msk [vmem:[#allocation3 + $0xe0] sm:$0xff] %vm693_vm2, %v689_v37  ;;  %723 = vst.msk [vmem:[#allocation3 + $0xe8] sm:$0xff] %vm693_vm2, %v690_v46 }
 0x155   :  { %724 = vst.msk [vmem:[#allocation3 + $0xf0] sm:$0xff] %vm693_vm2, %v691_v31  ;;  %725 = vst.msk [vmem:[#allocation3 + $0xf8] sm:$0xff] %vm693_vm2, %v692_v47 }
 0x16a   :  { %s4005_s5 = spop %2218 }
 0x16b   :  { %s4007_s26 = spop %2220 }
 0x16c   :  { %s4009_s27 = spop %2222 }
 0x170   :  { %s4011_s28 = spop %2224 }
 0x171 LB: > { %v2466_v23 = vmov 0   ;;  %s2116_s30 = sshll.u32 %s2454_s29, 7  ;;  %v5255_v41 = vld [vmem:[#allocation11_spill] sm:$0xff]  ;;  %v5256_v20 = vld [vmem:[#allocation8_spill] sm:$0xff]  ;;  %v5257_v29 = vld [vmem:[#allocation9_spill] sm:$0xff]  ;;  %v2467_v9 = vmov 0.0   ;;  %s2454_s29 = sphi %s4015_s29, %s753_s29   ;;  %s2450_s3 = sphi %s4013_s3, %s5272_s3  }
 0x172   : > { %2405 = vset.pattern.permute.xlu1 %v2466_v23  ;;  %2404 = vset.pattern.permute.xlu0 %v2466_v23  ;;  %s756_s0 = scalar_lea.vmem [#allocation3], %s2116_s30  ;;  %v4076_v27 = vstv %s2116_s30  ;;  %v4082_v15 = vld [vmem:[#allocation2] ss:$0 sm:$0xff]  ;;  %v4085_v26 = vld [vmem:[#allocation2 + $0x2] ss:$0 sm:$0xff]  ;;  %v5258_v0 = vld [vmem:[#allocation12_spill] sm:$0xff] }
 0x173   : > { %v4026_v24 = vld [vmem:[%s756_s0 + $0x10] sm:$0xff]  ;;  %v4028_v58 = vld [vmem:[%s756_s0] sm:$0xff]  ;;  %v4032_v13 = vld [vmem:[%s756_s0 + $0x18] sm:$0xff]  ;;  %v776_v59 = vadd.s32 %v4076_v27, %v5255_v41  ;;  %v774_v44 = vadd.s32 %v4076_v27, %v5256_v20  ;;  %v777_v52 = vadd.s32 %v4076_v27, %v5258_v0  ;;  %s753_s29 = sadd.s32 1, %s2454_s29  }
 0x174   : > { %840 = vperm.xlu1 %2405, %v4026_v24   ;;  %830 = vperm.xlu0 %2404, %v4028_v58   ;;  %v4034_v11 = vld [vmem:[%s756_s0 + $0x8] sm:$0xff]  ;;  %v4040_v25 = vld [vmem:[%s756_s0 + $0x20] sm:$0xff]  ;;  %v4044_v39 = vld [vmem:[%s756_s0 + $0x38] sm:$0xff]  ;;  %p750_p0 = scmp.ge.s32.totalorder %s753_s29, 2  }
 0x175   : > { %v4038_v6 = vld [vmem:[%s756_s0 + $0x28] sm:$0xff]  ;;  %v4046_v51 = vld [vmem:[%s756_s0 + $0x30] sm:$0xff]  ;;  %v4052_v7 = vld [vmem:[%s756_s0 + $0x40] sm:$0xff]  ;;  %v2136_v18 = vadd.s32 4294967168, %v776_v59  ;;  %vm942_vm5 = vcmp.lt.s32.totalorder %v5257_v29, %v776_v59  ;;  %v2134_v40 = vadd.s32 4294967168, %v774_v44  ;;  %vm940_vm0 = vcmp.lt.s32.totalorder %v5257_v29, %v774_v44  ;;  %s4309_s8 = smov (%p750_p0), 0  }
 0x176   : > { %v4050_v17 = vld [vmem:[%s756_s0 + $0x48] sm:$0xff]  ;;  %v4056_v42 = vld [vmem:[%s756_s0 + $0x58] sm:$0xff]  ;;  %v4058_v60 = vld [vmem:[%s756_s0 + $0x50] sm:$0xff]  ;;  %v2137_v1 = vadd.s32 4294967168, %v777_v52 }
 0x177   : > { %v4062_v14 = vld [vmem:[%s756_s0 + $0x68] sm:$0xff]  ;;  %v4064_v53 = vld [vmem:[%s756_s0 + $0x60] sm:$0xff]  ;;  %v4068_v56 = vld [vmem:[%s756_s0 + $0x78] sm:$0xff]  ;;  %vm1125_vm6 = vcmp.lt.s32.totalorder %v5257_v29, %v2136_v18  ;;  %vm1123_vm13 = vcmp.lt.s32.totalorder %v5257_v29, %v2134_v40 }
 0x178   : > { %845 = vperm.xlu1 %2405, %v4032_v13   ;;  %835 = vperm.xlu0 %2404, %v4034_v11   ;;  %v4070_v61 = vld [vmem:[%s756_s0 + $0x70] sm:$0xff]  ;;  %v5262_v54 = vld [vmem:[#allocation16_spill] sm:$0xff]  ;;  %v5263_v50 = vld [vmem:[#allocation15_spill] sm:$0xff] }
 0x179   : > { %v5259_v8 = vld [vmem:[#allocation10_spill] sm:$0xff]  ;;  %v5261_v16 = vld [vmem:[#allocation13_spill] sm:$0xff]  ;;  %v781_v37 = vadd.s32 %v4076_v27, %v5262_v54  ;;  %v780_v47 = vadd.s32 %v4076_v27, %v5263_v50 }
 0x17a   : > { %v775_v43 = vadd.s32 %v4076_v27, %v5259_v8  ;;  %v5260_v49 = vld [vmem:[#allocation14_spill] sm:$0xff]  ;;  %v778_v48 = vadd.s32 %v4076_v27, %v5261_v16 }
 0x17b   : > { %v779_v55 = vadd.s32 %v4076_v27, %v5260_v49  ;;  %v2141_v23 = vadd.s32 4294967168, %v781_v37  ;;  %v2140_v20 = vadd.s32 4294967168, %v780_v47 }
 0x17c   : > { %855 = vperm.xlu1 %2405, %v4038_v6   ;;  %850 = vperm.xlu0 %2404, %v4040_v25   ;;  %v2135_v28 = vadd.s32 4294967168, %v775_v43  ;;  %v2138_v21 = vadd.s32 4294967168, %v778_v48 }
 0x17d   : > { %v2139_v19 = vadd.s32 4294967168, %v779_v55 }
 0x180   : > { %865 = vperm.xlu1 %2405, %v4044_v39   ;;  %860 = vperm.xlu0 %2404, %v4046_v51  }
 0x184   : > { %875 = vperm.xlu1 %2405, %v4050_v17   ;;  %870 = vperm.xlu0 %2404, %v4052_v7  }
 0x188   : > { %885 = vperm.xlu1 %2405, %v4056_v42   ;;  %880 = vperm.xlu0 %2404, %v4058_v60  }
 0x18c   : > { %895 = vperm.xlu1 %2405, %v4062_v14   ;;  %890 = vperm.xlu0 %2404, %v4064_v53  }
 0x190   : > { %905 = vperm.xlu1 %2405, %v4068_v56   ;;  %900 = vperm.xlu0 %2404, %v4070_v61  }
 0x1f3   : > { %v841_v38 = vpop.permute.xlu1 %840  ;;  %v831_v4 = vpop.permute.xlu0 %830 }
 0x1f4   : > { %vm910_vm7 = vcmp.gt.f32.partialorder %v4082_v15, %v841_v38  ;;  %vm926_vm8 = vcmp.eq.f32.partialorder %v4082_v15, %v841_v38  ;;  %vm1109_vm9 = vcmp.eq.f32.partialorder %v4085_v26, %v841_v38  ;;  %vm1093_vm2 = vcmp.gt.f32.partialorder %v4085_v26, %v841_v38  ;;  %v5264_v38 = vld [vmem:[#allocation18_spill] sm:$0xff] }
 0x1f5   : > { %vm958_vm11 = vmand %vm926_vm8, %vm942_vm5  ;;  %vm924_vm3 = vcmp.eq.f32.partialorder %v4082_v15, %v831_v4  ;;  %vm908_vm10 = vcmp.gt.f32.partialorder %v4082_v15, %v831_v4  ;;  %vm1107_vm4 = vcmp.eq.f32.partialorder %v4085_v26, %v831_v4  ;;  %vm1091_vm5 = vcmp.gt.f32.partialorder %v4085_v26, %v831_v4 }
 0x1f6   : > { %vm974_vm15 = vmor %vm910_vm7, %vm958_vm11  ;;  %v783_v40 = vadd.s32 %v4076_v27, %v5264_v38 }
 0x1f7   : > { %v2120_v30 = vsel %vm974_vm15, 1.0, %v2467_v9  ;;  %vm1141_vm1 = vmand %vm1109_vm9, %vm1125_vm6  ;;  %v846_v45 = vpop.permute.xlu1 %845  ;;  %vm943_vm6 = vcmp.lt.s32.totalorder %v5257_v29, %v777_v52  ;;  %v836_v10 = vpop.permute.xlu0 %835  ;;  %vm1126_vm15 = vcmp.lt.s32.totalorder %v5257_v29, %v2137_v1 }
 0x1f8   : > { %vm1157_vm12 = vmor %vm1093_vm2, %vm1141_vm1  ;;  %vm927_vm8 = vcmp.eq.f32.partialorder %v4082_v15, %v846_v45  ;;  %vm911_vm11 = vcmp.gt.f32.partialorder %v4082_v15, %v846_v45  ;;  %vm1094_vm1 = vcmp.gt.f32.partialorder %v4085_v26, %v846_v45 }
 0x1f9   : > { %v2153_v62 = vsel %vm1157_vm12, 1.0, %v2467_v9  ;;  %vm956_vm14 = vmand %vm924_vm3, %vm940_vm0  ;;  %vm1110_vm0 = vcmp.eq.f32.partialorder %v4085_v26, %v846_v45  ;;  %vm941_vm12 = vcmp.lt.s32.totalorder %v5257_v29, %v775_v43  ;;  %v5265_v45 = vld [vmem:[#allocation17_spill] sm:$0xff]  ;;  %v2143_v43 = vadd.s32 4294967168, %v783_v40 }
 0x1fa   : > { %v1221_v36 = vadd.f32 %v2153_v62, %v2120_v30  ;;  %vm972_vm7 = vmor %vm908_vm10, %vm956_vm14  ;;  %vm909_vm14 = vcmp.gt.f32.partialorder %v4082_v15, %v836_v10  ;;  %v782_v8 = vadd.s32 %v4076_v27, %v5265_v45  ;;  %v5271_v45 = vld [vmem:[#allocation23_spill] sm:$0xff] }
 0x1fb   : > { %v2118_v2 = vsel %vm972_vm7, 1.0, %v2467_v9  ;;  %vm1139_vm9 = vmand %vm1107_vm4, %vm1123_vm13  ;;  %vm925_vm13 = vcmp.eq.f32.partialorder %v4082_v15, %v836_v10  ;;  %v856_v5 = vpop.permute.xlu1 %855  ;;  %vm1124_vm7 = vcmp.lt.s32.totalorder %v5257_v29, %v2135_v28  ;;  %v851_v12 = vpop.permute.xlu0 %850 }
 0x1fc   : > { %vm1155_vm2 = vmor %vm1091_vm5, %vm1139_vm9  ;;  %vm1092_vm9 = vcmp.gt.f32.partialorder %v4085_v26, %v836_v10 }
 0x1fd   : > { %v2151_v32 = vsel %vm1155_vm2, 1.0, %v2467_v9  ;;  %vm959_vm3 = vmand %vm927_vm8, %vm943_vm6  ;;  %vm1108_vm6 = vcmp.eq.f32.partialorder %v4085_v26, %v836_v10  ;;  %vm945_vm2 = vcmp.lt.s32.totalorder %v5257_v29, %v779_v55  ;;  %v5266_v10 = vld [vmem:[#allocation20_spill] sm:$0xff] }
 0x1fe   : > { %v1219_v57 = vadd.f32 %v2151_v32, %v2118_v2  ;;  %vm975_vm10 = vmor %vm911_vm11, %vm959_vm3  ;;  %vm913_vm3 = vcmp.gt.f32.partialorder %v4082_v15, %v856_v5  ;;  %v2142_v2 = vadd.s32 4294967168, %v782_v8  ;;  %v785_v49 = vadd.s32 %v4076_v27, %v5266_v10 }
 0x1ff   : > { %v2121_v34 = vsel %vm975_vm10, 1.0, %v2467_v9  ;;  %vm1142_vm4 = vmand %vm1110_vm0, %vm1126_vm15  ;;  %vm929_vm15 = vcmp.eq.f32.partialorder %v4082_v15, %v856_v5  ;;  %vm1128_vm10 = vcmp.lt.s32.totalorder %v5257_v29, %v2139_v19  ;;  %v866_v31 = vpop.permute.xlu1 %865  ;;  %v861_v44 = vpop.permute.xlu0 %860 }
 0x200   : > { %vm1158_vm5 = vmor %vm1094_vm1, %vm1142_vm4  ;;  %1267 = vadd.xlane.f32.xlu0 %v1219_v57  ;;  %vm1096_vm4 = vcmp.gt.f32.partialorder %v4085_v26, %v856_v5 }
 0x201   : > { %v2154_v63 = vsel %vm1158_vm5, 1.0, %v2467_v9  ;;  %vm957_vm8 = vmand %vm925_vm13, %vm941_vm12  ;;  %vm1112_vm12 = vcmp.eq.f32.partialorder %v4085_v26, %v856_v5  ;;  %vm944_vm5 = vcmp.lt.s32.totalorder %v5257_v29, %v778_v48  ;;  %v5267_v5 = vld [vmem:[#allocation19_spill] sm:$0xff]  ;;  %v2145_v48 = vadd.s32 4294967168, %v785_v49 }
 0x202   : > { %v1222_v3 = vadd.f32 %v2154_v63, %v2121_v34  ;;  %vm973_vm11 = vmor %vm909_vm14, %vm957_vm8  ;;  %vm912_vm8 = vcmp.gt.f32.partialorder %v4082_v15, %v851_v12  ;;  %v784_v16 = vadd.s32 %v4076_v27, %v5267_v5 }
 0x203   : > { %v2119_v22 = vsel %vm973_vm11, 1.0, %v2467_v9  ;;  %vm1140_vm0 = vmand %vm1108_vm6, %vm1124_vm7  ;;  %vm928_vm7 = vcmp.eq.f32.partialorder %v4082_v15, %v851_v12  ;;  %vm1127_vm11 = vcmp.lt.s32.totalorder %v5257_v29, %v2138_v21  ;;  %v876_v30 = vpop.permute.xlu1 %875  ;;  %v871_v28 = vpop.permute.xlu0 %870 }
 0x204   : > { %vm1156_vm1 = vmor %vm1092_vm9, %vm1140_vm0  ;;  %1271 = vadd.xlane.f32.xlu0 %v1221_v36  ;;  %vm1095_vm0 = vcmp.gt.f32.partialorder %v4085_v26, %v851_v12 }
 0x205   : > { %v2152_v35 = vsel %vm1156_vm1, 1.0, %v2467_v9  ;;  %vm961_vm13 = vmand %vm929_vm15, %vm945_vm2  ;;  %vm1111_vm2 = vcmp.eq.f32.partialorder %v4085_v26, %v851_v12  ;;  %vm947_vm1 = vcmp.lt.s32.totalorder %v5257_v29, %v781_v37  ;;  %v5268_v12 = vld [vmem:[#allocation22_spill] sm:$0xff] }
 0x206   : > { %v1220_v46 = vadd.f32 %v2152_v35, %v2119_v22  ;;  %vm977_vm14 = vmor %vm913_vm3, %vm961_vm13  ;;  %vm915_vm13 = vcmp.gt.f32.partialorder %v4082_v15, %v866_v31  ;;  %v2144_v22 = vadd.s32 4294967168, %v784_v16  ;;  %v787_v54 = vadd.s32 %v4076_v27, %v5268_v12 }
 0x207   : > { %v2123_v33 = vsel %vm977_vm14, 1.0, %v2467_v9  ;;  %vm1144_vm6 = vmand %vm1112_vm12, %vm1128_vm10  ;;  %vm931_vm10 = vcmp.eq.f32.partialorder %v4082_v15, %v866_v31  ;;  %vm1130_vm14 = vcmp.lt.s32.totalorder %v5257_v29, %v2141_v23  ;;  %v886_v34 = vpop.permute.xlu1 %885  ;;  %v881_v21 = vpop.permute.xlu0 %880 }
 0x208   : > { %vm1160_vm9 = vmor %vm1096_vm4, %vm1144_vm6  ;;  %1269 = vadd.xlane.f32.xlu1 %v1220_v46  ;;  %1273 = vadd.xlane.f32.xlu0 %v1222_v3  ;;  %vm1098_vm6 = vcmp.gt.f32.partialorder %v4085_v26, %v866_v31 }
 0x209   : > { %v2156_v41 = vsel %vm1160_vm9, 1.0, %v2467_v9  ;;  %vm960_vm15 = vmand %vm928_vm7, %vm944_vm5  ;;  %vm1114_vm5 = vcmp.eq.f32.partialorder %v4085_v26, %v866_v31  ;;  %vm946_vm9 = vcmp.lt.s32.totalorder %v5257_v29, %v780_v47  ;;  %v5269_v31 = vld [vmem:[#allocation21_spill] sm:$0xff]  ;;  %v2147_v47 = vadd.s32 4294967168, %v787_v54 }
 0x20a   : > { %v1224_v59 = vadd.f32 %v2156_v41, %v2123_v33  ;;  %vm976_vm3 = vmor %vm912_vm8, %vm960_vm15  ;;  %vm914_vm15 = vcmp.gt.f32.partialorder %v4082_v15, %v861_v44  ;;  %v786_v50 = vadd.s32 %v4076_v27, %v5269_v31 }
 0x20b   : > { %v2122_v18 = vsel %vm976_vm3, 1.0, %v2467_v9  ;;  %vm1143_vm12 = vmand %vm1111_vm2, %vm1127_vm11  ;;  %vm930_vm11 = vcmp.eq.f32.partialorder %v4082_v15, %v861_v44  ;;  %vm1129_vm3 = vcmp.lt.s32.totalorder %v5257_v29, %v2140_v20  ;;  %v896_v33 = vpop.permute.xlu1 %895  ;;  %v891_v20 = vpop.permute.xlu0 %890 }
 0x20c   : > { %vm1159_vm4 = vmor %vm1095_vm0, %vm1143_vm12  ;;  %1277 = vadd.xlane.f32.xlu0 %v1224_v59  ;;  %vm1097_vm12 = vcmp.gt.f32.partialorder %v4085_v26, %v861_v44 }
 0x20d   : > { %v2155_v4 = vsel %vm1159_vm4, 1.0, %v2467_v9  ;;  %vm963_vm7 = vmand %vm931_vm10, %vm947_vm1  ;;  %vm1113_vm1 = vcmp.eq.f32.partialorder %v4085_v26, %v861_v44  ;;  %vm949_vm4 = vcmp.lt.s32.totalorder %v5257_v29, %v783_v40  ;;  %v5270_v44 = vld [vmem:[#allocation24_spill] sm:$0xff] }
 0x20e   : > { %v1223_v0 = vadd.f32 %v2155_v4, %v2122_v18  ;;  %vm979_vm8 = vmor %vm915_vm13, %vm963_vm7  ;;  %vm917_vm7 = vcmp.gt.f32.partialorder %v4082_v15, %v876_v30  ;;  %v2146_v18 = vadd.s32 4294967168, %v786_v50  ;;  %v789_v38 = vadd.s32 %v4076_v27, %v5270_v44 }
 0x20f   : > { %v2125_v52 = vsel %vm979_vm8, 1.0, %v2467_v9  ;;  %vm1146_vm2 = vmand %vm1114_vm5, %vm1130_vm14  ;;  %vm933_vm14 = vcmp.eq.f32.partialorder %v4082_v15, %v876_v30  ;;  %vm1132_vm8 = vcmp.lt.s32.totalorder %v5257_v29, %v2143_v43 }
 0x210   : > { %vm1162_vm0 = vmor %vm1098_vm6, %vm1146_vm2  ;;  %1275 = vadd.xlane.f32.xlu1 %v1223_v0  ;;  %vm1100_vm2 = vcmp.gt.f32.partialorder %v4085_v26, %v876_v30 }
 0x211   : > { %v2158_v1 = vsel %vm1162_vm0, 1.0, %v2467_v9  ;;  %vm962_vm10 = vmand %vm930_vm11, %vm946_vm9  ;;  %vm1116_vm9 = vcmp.eq.f32.partialorder %v4085_v26, %v876_v30  ;;  %vm948_vm0 = vcmp.lt.s32.totalorder %v5257_v29, %v782_v8  ;;  %v2149_v30 = vadd.s32 4294967168, %v789_v38 }
 0x212   : > { %v1226_v62 = vadd.f32 %v2158_v1, %v2125_v52  ;;  %vm978_vm13 = vmor %vm914_vm15, %vm962_vm10  ;;  %vm916_vm10 = vcmp.gt.f32.partialorder %v4082_v15, %v871_v28  ;;  %v906_v52 = vpop.permute.xlu1 %905  ;;  %v788_v8 = vadd.s32 %v4076_v27, %v5271_v45  ;;  %v901_v27 = vpop.permute.xlu0 %900 }
 0x213   : > { %v2124_v36 = vsel %vm978_vm13, 1.0, %v2467_v9  ;;  %vm1145_vm5 = vmand %vm1113_vm1, %vm1129_vm3  ;;  %vm932_vm3 = vcmp.eq.f32.partialorder %v4082_v15, %v871_v28  ;;  %vm1131_vm13 = vcmp.lt.s32.totalorder %v5257_v29, %v2142_v2 }
 0x214   : > { %vm1161_vm6 = vmor %vm1097_vm12, %vm1145_vm5  ;;  %1281 = vadd.xlane.f32.xlu0 %v1226_v62  ;;  %vm1099_vm5 = vcmp.gt.f32.partialorder %v4085_v26, %v871_v28 }
 0x215   : > { %v2157_v55 = vsel %vm1161_vm6, 1.0, %v2467_v9  ;;  %vm965_vm11 = vmand %vm933_vm14, %vm949_vm4  ;;  %vm1115_vm4 = vcmp.eq.f32.partialorder %v4085_v26, %v871_v28  ;;  %vm951_vm6 = vcmp.lt.s32.totalorder %v5257_v29, %v785_v49 }
 0x216   : > { %v1225_v32 = vadd.f32 %v2157_v55, %v2124_v36  ;;  %vm981_vm15 = vmor %vm917_vm7, %vm965_vm11  ;;  %vm919_vm11 = vcmp.gt.f32.partialorder %v4082_v15, %v886_v34  ;;  %v2148_v36 = vadd.s32 4294967168, %v788_v8 }
 0x217   : > { %v2127_v57 = vsel %vm981_vm15, 1.0, %v2467_v9  ;;  %vm1148_vm1 = vmand %vm1116_vm9, %vm1132_vm8  ;;  %vm935_vm8 = vcmp.eq.f32.partialorder %v4082_v15, %v886_v34  ;;  %vm1134_vm15 = vcmp.lt.s32.totalorder %v5257_v29, %v2145_v48 }
 0x218   : > { %vm1164_vm12 = vmor %vm1100_vm2, %vm1148_vm1  ;;  %1279 = vadd.xlane.f32.xlu1 %v1225_v32  ;;  %vm1102_vm1 = vcmp.gt.f32.partialorder %v4085_v26, %v886_v34 }
 0x219   : > { %v2160_v19 = vsel %vm1164_vm12, 1.0, %v2467_v9  ;;  %vm964_vm14 = vmand %vm932_vm3, %vm948_vm0  ;;  %vm1118_vm0 = vcmp.eq.f32.partialorder %v4085_v26, %v886_v34  ;;  %vm950_vm12 = vcmp.lt.s32.totalorder %v5257_v29, %v784_v16  ;;  %v4247_v34 = vstv %s4011_s28 }
 0x21a   : > { %v1228_v63 = vadd.f32 %v2160_v19, %v2127_v57  ;;  %vm980_vm7 = vmor %vm916_vm10, %vm964_vm14  ;;  %vm918_vm14 = vcmp.gt.f32.partialorder %v4082_v15, %v881_v21 }
 0x21b   : > { %v2126_v3 = vsel %vm980_vm7, 1.0, %v2467_v9  ;;  %vm1147_vm9 = vmand %vm1115_vm4, %vm1131_vm13  ;;  %vm934_vm13 = vcmp.eq.f32.partialorder %v4082_v15, %v881_v21  ;;  %vm1133_vm7 = vcmp.lt.s32.totalorder %v5257_v29, %v2144_v22 }
 0x21c   : > { %vm1163_vm2 = vmor %vm1099_vm5, %vm1147_vm9  ;;  %1285 = vadd.xlane.f32.xlu0 %v1228_v63  ;;  %vm1101_vm9 = vcmp.gt.f32.partialorder %v4085_v26, %v881_v21 }
 0x21d   : > { %v2159_v37 = vsel %vm1163_vm2, 1.0, %v2467_v9  ;;  %vm967_vm3 = vmand %vm935_vm8, %vm951_vm6  ;;  %vm1117_vm6 = vcmp.eq.f32.partialorder %v4085_v26, %v881_v21  ;;  %vm953_vm2 = vcmp.lt.s32.totalorder %v5257_v29, %v787_v54 }
 0x21e   : > { %v1227_v35 = vadd.f32 %v2159_v37, %v2126_v3  ;;  %vm983_vm10 = vmor %vm919_vm11, %vm967_vm3  ;;  %vm921_vm3 = vcmp.gt.f32.partialorder %v4082_v15, %v896_v33 }
 0x21f   : > { %v2129_v46 = vsel %vm983_vm10, 1.0, %v2467_v9  ;;  %vm1150_vm4 = vmand %vm1118_vm0, %vm1134_vm15  ;;  %vm937_vm15 = vcmp.eq.f32.partialorder %v4082_v15, %v896_v33  ;;  %vm1136_vm10 = vcmp.lt.s32.totalorder %v5257_v29, %v2147_v47 }
 0x220   : > { %vm1166_vm5 = vmor %vm1102_vm1, %vm1150_vm4  ;;  %1283 = vadd.xlane.f32.xlu1 %v1227_v35  ;;  %vm1104_vm4 = vcmp.gt.f32.partialorder %v4085_v26, %v896_v33 }
 0x221   : > { %v2162_v23 = vsel %vm1166_vm5, 1.0, %v2467_v9  ;;  %vm966_vm8 = vmand %vm934_vm13, %vm950_vm12  ;;  %vm1120_vm12 = vcmp.eq.f32.partialorder %v4085_v26, %v896_v33  ;;  %vm952_vm5 = vcmp.lt.s32.totalorder %v5257_v29, %v786_v50 }
 0x222   : > { %v1230_v41 = vadd.f32 %v2162_v23, %v2129_v46  ;;  %vm982_vm11 = vmor %vm918_vm14, %vm966_vm8  ;;  %vm1135_vm8 = vcmp.lt.s32.totalorder %v5257_v29, %v2146_v18 }
 0x223   : > { %v2128_v59 = vsel %vm982_vm11, 1.0, %v2467_v9  ;;  %vm1149_vm0 = vmand %vm1117_vm6, %vm1133_vm7  ;;  %vm936_vm7 = vcmp.eq.f32.partialorder %v4082_v15, %v891_v20 }
 0x224   : > { %vm1165_vm1 = vmor %vm1101_vm9, %vm1149_vm0  ;;  %1289 = vadd.xlane.f32.xlu0 %v1230_v41  ;;  %vm920_vm9 = vcmp.gt.f32.partialorder %v4082_v15, %v891_v20  ;;  %vm1119_vm0 = vcmp.eq.f32.partialorder %v4085_v26, %v891_v20 }
 0x225   : > { %v2161_v40 = vsel %vm1165_vm1, 1.0, %v2467_v9  ;;  %vm969_vm13 = vmand %vm937_vm15, %vm953_vm2  ;;  %vm1103_vm15 = vcmp.gt.f32.partialorder %v4085_v26, %v891_v20  ;;  %vm955_vm1 = vcmp.lt.s32.totalorder %v5257_v29, %v789_v38 }
 0x226   : > { %v1229_v4 = vadd.f32 %v2161_v40, %v2128_v59  ;;  %vm985_vm14 = vmor %vm921_vm3, %vm969_vm13  ;;  %vm923_vm13 = vcmp.gt.f32.partialorder %v4082_v15, %v906_v52 }
 0x227   : > { %v2131_v0 = vsel %vm985_vm14, 1.0, %v2467_v9  ;;  %vm1152_vm6 = vmand %vm1120_vm12, %vm1136_vm10  ;;  %vm939_vm10 = vcmp.eq.f32.partialorder %v4082_v15, %v906_v52  ;;  %vm1138_vm14 = vcmp.lt.s32.totalorder %v5257_v29, %v2149_v30 }
 0x228   : > { %vm1168_vm11 = vmor %vm1104_vm4, %vm1152_vm6  ;;  %1287 = vadd.xlane.f32.xlu1 %v1229_v4  ;;  %vm1106_vm6 = vcmp.gt.f32.partialorder %v4085_v26, %v906_v52 }
 0x229   : > { %v2164_v43 = vsel %vm1168_vm11, 1.0, %v2467_v9  ;;  %vm968_vm2 = vmand %vm936_vm7, %vm952_vm5  ;;  %vm1122_vm5 = vcmp.eq.f32.partialorder %v4085_v26, %v906_v52  ;;  %vm954_vm11 = vcmp.lt.s32.totalorder %v5257_v29, %v788_v8 }
 0x22a   : > { %v1232_v1 = vadd.f32 %v2164_v43, %v2131_v0  ;;  %vm984_vm3 = vmor %vm920_vm9, %vm968_vm2  ;;  %vm922_vm2 = vcmp.gt.f32.partialorder %v4082_v15, %v901_v27 }
 0x22b   : > { %v2130_v62 = vsel %vm984_vm3, 1.0, %v2467_v9  ;;  %vm1151_vm12 = vmand %vm1119_vm0, %vm1135_vm8  ;;  %vm938_vm8 = vcmp.eq.f32.partialorder %v4082_v15, %v901_v27  ;;  %vm1137_vm3 = vcmp.lt.s32.totalorder %v5257_v29, %v2148_v36 }
 0x22c   : > { %vm1167_vm4 = vmor %vm1103_vm15, %vm1151_vm12  ;;  %1293 = vadd.xlane.f32.xlu0 %v1232_v1  ;;  %vm1121_vm12 = vcmp.eq.f32.partialorder %v4085_v26, %v901_v27 }
 0x22d   : > { %v2163_v2 = vsel %vm1167_vm4, 1.0, %v2467_v9  ;;  %vm971_vm7 = vmand %vm939_vm10, %vm955_vm1  ;;  %vm1105_vm10 = vcmp.gt.f32.partialorder %v4085_v26, %v901_v27 }
 0x22e   : > { %v1231_v28 = vadd.f32 %v2163_v2, %v2130_v62  ;;  %vm987_vm9 = vmor %vm923_vm13, %vm971_vm7 }
 0x22f   : > { %v2133_v10 = vsel %vm987_vm9, 1.0, %v2467_v9  ;;  %vm1154_vm0 = vmand %vm1122_vm5, %vm1138_vm14 }
 0x230   : > { %vm1170_vm15 = vmor %vm1106_vm6, %vm1154_vm0  ;;  %1291 = vadd.xlane.f32.xlu1 %v1231_v28  ;;  %vm1332_vm6 = vcmask 7168  }
 0x231   : > { %v2166_v49 = vsel %vm1170_vm15, 1.0, %v2467_v9  ;;  %vm970_vm1 = vmand %vm938_vm8, %vm954_vm11 }
 0x232   : > { %v1234_v55 = vadd.f32 %v2166_v49, %v2133_v10  ;;  %vm986_vm13 = vmor %vm922_vm2, %vm970_vm1 }
 0x233   : > { %v2132_v32 = vsel %vm986_vm13, 1.0, %v2467_v9  ;;  %vm1153_vm4 = vmand %vm1121_vm12, %vm1137_vm3 }
 0x234   : > { %vm1169_vm14 = vmor %vm1105_vm10, %vm1153_vm4  ;;  %1297 = vadd.xlane.f32.xlu0 %v1234_v55 }
 0x235   : > { %v2165_v15 = vsel %vm1169_vm14, 1.0, %v2467_v9 }
 0x236   : > { %v1233_v57 = vadd.f32 %v2165_v15, %v2132_v32 }
 0x238   : > { %1295 = vadd.xlane.f32.xlu1 %v1233_v57 }
 0x28d   : > { %v1268_v29 = vpop.xlane.xlu0 %1267 }
 0x28e   : > { %vm1300_vm5 = vcmp.lt.f32.partialorder %v1268_v29, %v4247_v34 }
 0x28f   : > { %v1316_v26 = vsel %vm1300_vm5, %v4028_v58, 0.0 }
 0x290   : > { %v1333_v63 = vsel %vm1332_vm6, %v1316_v26, 0.0 }
 0x291   : > { %v1272_v5 = vpop.xlane.xlu0 %1271 }
 0x292   : > { %vm1302_vm7 = vcmp.lt.f32.partialorder %v1272_v5, %v4247_v34 }
 0x293   : > { %v1318_v9 = vsel %vm1302_vm7, %v4026_v24, 0.0 }
 0x294   : > { %v1336_v12 = vsel %vm1332_vm6, %v1318_v9, 0.0 }
 0x295   : > { %v1270_v16 = vpop.xlane.xlu1 %1269  ;;  %v1274_v48 = vpop.xlane.xlu0 %1273 }
 0x296   : > { %vm1301_vm9 = vcmp.lt.f32.partialorder %v1270_v16, %v4247_v34  ;;  %vm1303_vm11 = vcmp.lt.f32.partialorder %v1274_v48, %v4247_v34 }
 0x297   : > { %v1317_v19 = vsel %vm1301_vm9, %v4034_v11, 0.0  ;;  %v1319_v22 = vsel %vm1303_vm11, %v4032_v13, 0.0 }
 0x298   : > { %v1334_v3 = vsel %vm1332_vm6, %v1317_v19, 0.0  ;;  %v1338_v58 = vsel %vm1332_vm6, %v1319_v22, 0.0 }
 0x299   : > { %v1335_v21 = vadd.f32 %v1334_v3, %v1333_v63  ;;  %v1278_v54 = vpop.xlane.xlu0 %1277 }
 0x29a   : > { %vm1305_vm8 = vcmp.lt.f32.partialorder %v1278_v54, %v4247_v34 }
 0x29b   : > { %v1337_v37 = vadd.f32 %v1336_v12, %v1335_v21  ;;  %v1321_v46 = vsel %vm1305_vm8, %v4038_v6, 0.0 }
 0x29c   : > { %v1342_v50 = vsel %vm1332_vm6, %v1321_v46, 0.0 }
 0x29d   : > { %v1276_v11 = vpop.xlane.xlu1 %1275  ;;  %v1339_v35 = vadd.f32 %v1338_v58, %v1337_v37 }
 0x29e   : > { %vm1304_vm0 = vcmp.lt.f32.partialorder %v1276_v11, %v4247_v34 }
 0x29f   : > { %v1320_v24 = vsel %vm1304_vm0, %v4040_v25, 0.0 }
 0x2a0   : > { %v1340_v33 = vsel %vm1332_vm6, %v1320_v24, 0.0 }
 0x2a1   : > { %v1341_v13 = vadd.f32 %v1340_v33, %v1339_v35  ;;  %v1282_v31 = vpop.xlane.xlu0 %1281 }
 0x2a2   : > { %vm1307_vm2 = vcmp.lt.f32.partialorder %v1282_v31, %v4247_v34 }
 0x2a3   : > { %v1343_v23 = vadd.f32 %v1342_v50, %v1341_v13  ;;  %v1323_v59 = vsel %vm1307_vm2, %v4044_v39, 0.0 }
 0x2a4   : > { %v1346_v20 = vsel %vm1332_vm6, %v1323_v59, 0.0 }
 0x2a5   : > { %v1280_v47 = vpop.xlane.xlu1 %1279 }
 0x2a6   : > { %vm1306_vm15 = vcmp.lt.f32.partialorder %v1280_v47, %v4247_v34 }
 0x2a7   : > { %v1322_v41 = vsel %vm1306_vm15, %v4046_v51, 0.0 }
 0x2a8   : > { %v1344_v25 = vsel %vm1332_vm6, %v1322_v41, 0.0 }
 0x2a9   : > { %v1345_v18 = vadd.f32 %v1344_v25, %v1343_v23  ;;  %v1286_v6 = vpop.xlane.xlu0 %1285 }
 0x2aa   : > { %vm1309_vm3 = vcmp.lt.f32.partialorder %v1286_v6, %v4247_v34 }
 0x2ab   : > { %v1347_v38 = vadd.f32 %v1346_v20, %v1345_v18  ;;  %v1325_v4 = vsel %vm1309_vm3, %v4050_v17, 0.0 }
 0x2ac   : > { %v1350_v52 = vsel %vm1332_vm6, %v1325_v4, 0.0 }
 0x2ad   : > { %v1284_v44 = vpop.xlane.xlu1 %1283 }
 0x2ae   : > { %vm1308_vm12 = vcmp.lt.f32.partialorder %v1284_v44, %v4247_v34 }
 0x2af   : > { %v1324_v40 = vsel %vm1308_vm12, %v4052_v7, 0.0 }
 0x2b0   : > { %v1348_v51 = vsel %vm1332_vm6, %v1324_v40, 0.0 }
 0x2b1   : > { %v1349_v0 = vadd.f32 %v1348_v51, %v1347_v38  ;;  %v1290_v39 = vpop.xlane.xlu0 %1289 }
 0x2b2   : > { %vm1311_vm1 = vcmp.lt.f32.partialorder %v1290_v39, %v4247_v34 }
 0x2b3   : > { %v1351_v45 = vadd.f32 %v1350_v52, %v1349_v0  ;;  %v1327_v43 = vsel %vm1311_vm1, %v4056_v42, 0.0 }
 0x2b4   : > { %v1354_v62 = vsel %vm1332_vm6, %v1327_v43, 0.0 }
 0x2b5   : > { %v1288_v30 = vpop.xlane.xlu1 %1287 }
 0x2b6   : > { %vm1310_vm10 = vcmp.lt.f32.partialorder %v1288_v30, %v4247_v34 }
 0x2b7   : > { %v1326_v8 = vsel %vm1310_vm10, %v4058_v60, 0.0 }
 0x2b8   : > { %v1352_v7 = vsel %vm1332_vm6, %v1326_v8, 0.0 }
 0x2b9   : > { %v1353_v1 = vadd.f32 %v1352_v7, %v1351_v45  ;;  %v1294_v17 = vpop.xlane.xlu0 %1293 }
 0x2ba   : > { %vm1313_vm13 = vcmp.lt.f32.partialorder %v1294_v17, %v4247_v34 }
 0x2bb   : > { %v1355_v36 = vadd.f32 %v1354_v62, %v1353_v1  ;;  %v1329_v28 = vsel %vm1313_vm13, %v4062_v14, 0.0 }
 0x2bc   : > { %v1358_v49 = vsel %vm1332_vm6, %v1329_v28, 0.0 }
 0x2bd   : > { %v1292_v27 = vpop.xlane.xlu1 %1291 }
 0x2be   : > { %vm1312_vm4 = vcmp.lt.f32.partialorder %v1292_v27, %v4247_v34 }
 0x2bf   : > { %v1328_v2 = vsel %vm1312_vm4, %v4064_v53, 0.0 }
 0x2c0   : > { %v1356_v60 = vsel %vm1332_vm6, %v1328_v2, 0.0 }
 0x2c1   : > { %v1357_v10 = vadd.f32 %v1356_v60, %v1355_v36  ;;  %v1298_v42 = vpop.xlane.xlu0 %1297 }
 0x2c2   : > { %vm1315_vm14 = vcmp.lt.f32.partialorder %v1298_v42, %v4247_v34 }
 0x2c3   : > { %v1359_v32 = vadd.f32 %v1358_v49, %v1357_v10  ;;  %v1331_v15 = vsel %vm1315_vm14, %v4068_v56, 0.0  ;;  %v5273_v56 = vld [vmem:[#allocation25_spill] sm:$0xff] (%p750_p0) }
 0x2c4   : > { %v1362_v14 = vsel %vm1332_vm6, %v1331_v15, 0.0 }
 0x2c5   : > { %v1296_v55 = vpop.xlane.xlu1 %1295 }
 0x2c6   : > { %vm1314_vm5 = vcmp.lt.f32.partialorder %v1296_v55, %v4247_v34 }
 0x2c7   : > { %v1330_v57 = vsel %vm1314_vm5, %v4070_v61, 0.0  ;;  %v5274_v61 = vmin.f32 (%p750_p0), %v5273_v56, 255.0 }
 0x2c8   : > { %v1360_v53 = vsel %vm1332_vm6, %v1330_v57, 0.0 }
 0x2c9   : > { %v1361_v29 = vadd.f32 %v1360_v53, %v1359_v32  ;;  %v1374_v34 = vrot.slane (%p750_p0), %v5274_v61, 1 }
 0x2cb   : > { %v1363_v5 = vadd.f32 %v1362_v14, %v1361_v29 }
 0x2cd   : > { %1364 = vadd.xlane.f32.xlu1 %v1363_v5 }
 0x35a   : > { %v1365_v26 = vpop.xlane.xlu1 %1364 }
 0x35b   : > { %v1366_v16 = vrot.slane %v1365_v26, 4 }
 0x35d   : > { %v1367_v48 = vadd.f32 %v1366_v16, %v1365_v26 }
 0x35f   : > { %v1368_v19 = vrot.slane %v1367_v48, 2 }
 0x361   : > { %v1369_v9 = vadd.f32 %v1368_v19, %v1367_v48 }
 0x363   : > { %v1370_v63 = vrot.slane %v1369_v9, 1 }
 0x365   : > { %v1371_v3 = vadd.f32 %v1370_v63, %v1369_v9 }
 0x367   : > { %2226 = vpush %v1371_v3 }
 0x368   :  { %2228 = vpush (%p750_p0), %v1374_v34 }
 0x395   :  { %752 = sbr.rel (!%p750_p0) target bundleno = 369 (0x171), region = 62 }
 0x398   : > { %s2227_s1 = spop %2226 }
 0x399   : > { %s1373_s2 = sadd.f32 %s2450_s3, %s2227_s1   ;;  %s4305_s7 = spop (%p750_p0), %2228 }
 0x39b   : > { %s5272_s3 = smov %s1373_s2 }
 0x39c LB: > { %v2468_v22 = vmov 1   ;;  %s2167_s9 = sshll.u32 %s2462_s8, 7  ;;  %v5275_v25 = vld [vmem:[#allocation11_spill] sm:$0xff]  ;;  %v5276_v20 = vld [vmem:[#allocation8_spill] sm:$0xff]  ;;  %v5277_v40 = vld [vmem:[#allocation9_spill] sm:$0xff]  ;;  %v2469_v45 = vmov 0.0   ;;  %s2462_s8 = sphi %s4309_s8, %s1381_s8   ;;  %s2458_s2 = sphi %s1373_s2, %s5292_s2  }
 0x39d   : > { %2407 = vset.pattern.permute.xlu1 %v2468_v22  ;;  %2406 = vset.pattern.permute.xlu0 %v2468_v22  ;;  %s1384_s10 = scalar_lea.vmem [#allocation3], %s2167_s9  ;;  %v4370_v59 = vstv %s2167_s9  ;;  %v4376_v38 = vld [vmem:[#allocation2 + $0x1] ss:$0 sm:$0xff]  ;;  %v4379_v4 = vld [vmem:[#allocation2 + $0x3] ss:$0 sm:$0xff]  ;;  %v5278_v52 = vld [vmem:[#allocation12_spill] sm:$0xff] }
 0x39e   : > { %v4320_v21 = vld [vmem:[%s1384_s10 + $0x10] sm:$0xff]  ;;  %v4322_v12 = vld [vmem:[%s1384_s10] sm:$0xff]  ;;  %v4326_v58 = vld [vmem:[%s1384_s10 + $0x18] sm:$0xff]  ;;  %v1404_v18 = vadd.s32 %v4370_v59, %v5275_v25  ;;  %v1402_v44 = vadd.s32 %v4370_v59, %v5276_v20  ;;  %v1405_v30 = vadd.s32 %v4370_v59, %v5278_v52  ;;  %s2470_s11 = smov 127   ;;  %s1381_s8 = sadd.s32 1, %s2462_s8  }
 0x39f   : > { %1468 = vperm.xlu1 %2407, %v4320_v21   ;;  %1458 = vperm.xlu0 %2406, %v4322_v12   ;;  %v4328_v54 = vld [vmem:[%s1384_s10 + $0x8] sm:$0xff]  ;;  %v4334_v11 = vld [vmem:[%s1384_s10 + $0x20] sm:$0xff]  ;;  %v4338_v35 = vld [vmem:[%s1384_s10 + $0x38] sm:$0xff]  ;;  %p1378_p1 = scmp.ge.s32.totalorder %s1381_s8, 2  }
 0x3a0   : > { %v4332_v37 = vld [vmem:[%s1384_s10 + $0x28] sm:$0xff]  ;;  %v4340_v24 = vld [vmem:[%s1384_s10 + $0x30] sm:$0xff]  ;;  %v4346_v33 = vld [vmem:[%s1384_s10 + $0x40] sm:$0xff]  ;;  %v2187_v6 = vadd.s32 4294967168, %v1404_v18  ;;  %vm1570_vm7 = vcmp.lt.s32.totalorder %v5277_v40, %v1404_v18  ;;  %v2185_v0 = vadd.s32 4294967168, %v1402_v44  ;;  %vm1568_vm12 = vcmp.lt.s32.totalorder %v5277_v40, %v1402_v44  ;;  %s2471_s15 = smov (%p1378_p1), [#allocation5]  }
 0x3a1   : > { %v4344_v46 = vld [vmem:[%s1384_s10 + $0x48] sm:$0xff]  ;;  %v4350_v13 = vld [vmem:[%s1384_s10 + $0x58] sm:$0xff]  ;;  %v4352_v31 = vld [vmem:[%s1384_s10 + $0x50] sm:$0xff]  ;;  %v2188_v17 = vadd.s32 4294967168, %v1405_v30  ;;  %s2085_s16 = sshll.u32 (%p1378_p1), %s2471_s15, 4  ;;  %s2086_s16 = int_to_ptr.vmem [resolvable:$true] %s2085_s16 }
 0x3a2   : > { %v4356_v50 = vld [vmem:[%s1384_s10 + $0x68] sm:$0xff]  ;;  %v4358_v47 = vld [vmem:[%s1384_s10 + $0x60] sm:$0xff]  ;;  %v4362_v23 = vld [vmem:[%s1384_s10 + $0x78] sm:$0xff]  ;;  %vm1753_vm9 = vcmp.lt.s32.totalorder %v5277_v40, %v2187_v6  ;;  %vm1751_vm14 = vcmp.lt.s32.totalorder %v5277_v40, %v2185_v0  ;;  %s2408_s17 = scalar_lea.vmem (%p1378_p1), %s2086_s16, 16  ;;  %s2412_s18 = scalar_lea.vmem (%p1378_p1), %s2086_s16, 32 }
 0x3a3   : > { %1473 = vperm.xlu1 %2407, %v4326_v58   ;;  %1463 = vperm.xlu0 %2406, %v4328_v54   ;;  %v4364_v41 = vld [vmem:[%s1384_s10 + $0x70] sm:$0xff]  ;;  %v5282_v48 = vld [vmem:[#allocation16_spill] sm:$0xff]  ;;  %v5283_v61 = vld [vmem:[#allocation15_spill] sm:$0xff]  ;;  %p2409_p2 = scmp.ne.s32.totalorder (%p1378_p1), %s2086_s16, %s2408_s17  ;;  %p2413_p3 = scmp.lt.s32.totalorder (%p1378_p1), %s2086_s16, %s2086_s16 }
 0x3a4   : > { %v5279_v7 = vld [vmem:[#allocation10_spill] sm:$0xff]  ;;  %v5281_v15 = vld [vmem:[#allocation13_spill] sm:$0xff]  ;;  %v1409_v19 = vadd.s32 %v4370_v59, %v5282_v48  ;;  %v1408_v34 = vadd.s32 %v4370_v59, %v5283_v61  ;;  %p2414_p4 = scmp.lt.s32.totalorder (%p1378_p1), %s2412_s18, %s2408_s17 }
 0x3a5   : > { %v1403_v1 = vadd.s32 %v4370_v59, %v5279_v7  ;;  %v5280_v60 = vld [vmem:[#allocation14_spill] sm:$0xff]  ;;  %v1406_v57 = vadd.s32 %v4370_v59, %v5281_v15 }
 0x3a6   : > { %v1407_v10 = vadd.s32 %v4370_v59, %v5280_v60  ;;  %v2192_v22 = vadd.s32 4294967168, %v1409_v19  ;;  %v2191_v20 = vadd.s32 4294967168, %v1408_v34  ;;  %p2415_p5 = por (%p1378_p1), %p2414_p4, %p2413_p3 }
 0x3a7   : > { %1483 = vperm.xlu1 %2407, %v4332_v37   ;;  %1478 = vperm.xlu0 %2406, %v4334_v11   ;;  %v2186_v2 = vadd.s32 4294967168, %v1403_v1  ;;  %v2189_v26 = vadd.s32 4294967168, %v1406_v57 }
 0x3a8   : > { %v2190_v53 = vadd.s32 4294967168, %v1407_v10  ;;  %p2416_p6 = pnand (%p1378_p1), %p2415_p5, %p2409_p2 }
 0x3ab   : > { %1493 = vperm.xlu1 %2407, %v4338_v35   ;;  %1488 = vperm.xlu0 %2406, %v4340_v24  }
 0x3af   : > { %1503 = vperm.xlu1 %2407, %v4344_v46   ;;  %1498 = vperm.xlu0 %2406, %v4346_v33  }
 0x3b3   : > { %1513 = vperm.xlu1 %2407, %v4350_v13   ;;  %1508 = vperm.xlu0 %2406, %v4352_v31  }
 0x3b7   : > { %1523 = vperm.xlu1 %2407, %v4356_v50   ;;  %1518 = vperm.xlu0 %2406, %v4358_v47  }
 0x3bb   : > { %1533 = vperm.xlu1 %2407, %v4362_v23   ;;  %1528 = vperm.xlu0 %2406, %v4364_v41  }
 0x41e   : > { %v1469_v51 = vpop.permute.xlu1 %1468  ;;  %v1459_v39 = vpop.permute.xlu0 %1458 }
 0x41f   : > { %vm1538_vm11 = vcmp.gt.f32.partialorder %v4376_v38, %v1469_v51  ;;  %vm1554_vm8 = vcmp.eq.f32.partialorder %v4376_v38, %v1469_v51  ;;  %vm1737_vm0 = vcmp.eq.f32.partialorder %v4379_v4, %v1469_v51  ;;  %vm1721_vm15 = vcmp.gt.f32.partialorder %v4379_v4, %v1469_v51  ;;  %v5284_v51 = vld [vmem:[#allocation18_spill] sm:$0xff] }
 0x420   : > { %vm1586_vm2 = vmand %vm1554_vm8, %vm1570_vm7  ;;  %vm1552_vm1 = vcmp.eq.f32.partialorder %v4376_v38, %v1459_v39  ;;  %vm1536_vm13 = vcmp.gt.f32.partialorder %v4376_v38, %v1459_v39  ;;  %vm1735_vm5 = vcmp.eq.f32.partialorder %v4379_v4, %v1459_v39  ;;  %v1411_v0 = vadd.s32 %v4370_v59, %v5284_v51 }
 0x421   : > { %vm1602_vm3 = vmor %vm1538_vm11, %vm1586_vm2  ;;  %vm1719_vm11 = vcmp.gt.f32.partialorder %v4379_v4, %v1459_v39 }
 0x422   : > { %v2171_v8 = vsel %vm1602_vm3, 1.0, %v2469_v45  ;;  %vm1769_vm10 = vmand %vm1737_vm0, %vm1753_vm9  ;;  %v1474_v43 = vpop.permute.xlu1 %1473  ;;  %vm1571_vm9 = vcmp.lt.s32.totalorder %v5277_v40, %v1405_v30  ;;  %v1464_v28 = vpop.permute.xlu0 %1463 }
 0x423   : > { %vm1785_vm4 = vmor %vm1721_vm15, %vm1769_vm10  ;;  %vm1555_vm0 = vcmp.eq.f32.partialorder %v4376_v38, %v1474_v43  ;;  %vm1539_vm15 = vcmp.gt.f32.partialorder %v4376_v38, %v1474_v43  ;;  %vm1754_vm10 = vcmp.lt.s32.totalorder %v5277_v40, %v2188_v17 }
 0x424   : > { %v2204_v62 = vsel %vm1785_vm4, 1.0, %v2469_v45  ;;  %vm1584_vm7 = vmand %vm1552_vm1, %vm1568_vm12  ;;  %vm1738_vm12 = vcmp.eq.f32.partialorder %v4379_v4, %v1474_v43 }
 0x425   : > { %v1849_v27 = vadd.f32 %v2204_v62, %v2171_v8  ;;  %vm1600_vm8 = vmor %vm1536_vm13, %vm1584_vm7  ;;  %vm1722_vm13 = vcmp.gt.f32.partialorder %v4379_v4, %v1474_v43  ;;  %v5285_v43 = vld [vmem:[#allocation17_spill] sm:$0xff] }
 0x426   : > { %v2169_v36 = vsel %vm1600_vm8, 1.0, %v2469_v45  ;;  %vm1767_vm2 = vmand %vm1735_vm5, %vm1751_vm14  ;;  %vm1569_vm14 = vcmp.lt.s32.totalorder %v5277_v40, %v1403_v1  ;;  %vm1553_vm5 = vcmp.eq.f32.partialorder %v4376_v38, %v1464_v28  ;;  %v1484_v32 = vpop.permute.xlu1 %1483  ;;  %v1479_v16 = vpop.permute.xlu0 %1478  ;;  %v1410_v7 = vadd.s32 %v4370_v59, %v5285_v43  ;;  %v5291_v43 = vld [vmem:[#allocation23_spill] sm:$0xff] }
 0x427   : > { %vm1783_vm3 = vmor %vm1719_vm11, %vm1767_vm2  ;;  %vm1537_vm11 = vcmp.gt.f32.partialorder %v4376_v38, %v1464_v28  ;;  %v2194_v1 = vadd.s32 4294967168, %v1411_v0 }
 0x428   : > { %v2202_v42 = vsel %vm1783_vm3, 1.0, %v2469_v45  ;;  %vm1587_vm1 = vmand %vm1555_vm0, %vm1571_vm9  ;;  %vm1752_vm9 = vcmp.lt.s32.totalorder %v5277_v40, %v2186_v2  ;;  %vm1736_vm0 = vcmp.eq.f32.partialorder %v4379_v4, %v1464_v28 }
 0x429   : > { %v1847_v49 = vadd.f32 %v2202_v42, %v2169_v36  ;;  %vm1603_vm4 = vmor %vm1539_vm15, %vm1587_vm1  ;;  %vm1720_vm15 = vcmp.gt.f32.partialorder %v4379_v4, %v1464_v28  ;;  %v2193_v36 = vadd.s32 4294967168, %v1410_v7  ;;  %v5286_v28 = vld [vmem:[#allocation20_spill] sm:$0xff] }
 0x42a   : > { %v2172_v55 = vsel %vm1603_vm4, 1.0, %v2469_v45  ;;  %vm1770_vm7 = vmand %vm1738_vm12, %vm1754_vm10  ;;  %vm1573_vm10 = vcmp.lt.s32.totalorder %v5277_v40, %v1407_v10  ;;  %vm1557_vm12 = vcmp.eq.f32.partialorder %v4376_v38, %v1484_v32  ;;  %v1494_v56 = vpop.permute.xlu1 %1493  ;;  %v1489_v44 = vpop.permute.xlu0 %1488  ;;  %v1413_v60 = vadd.s32 %v4370_v59, %v5286_v28 }
 0x42b   : > { %vm1786_vm8 = vmor %vm1722_vm13, %vm1770_vm7  ;;  %1895 = vadd.xlane.f32.xlu0 %v1847_v49  ;;  %vm1541_vm13 = vcmp.gt.f32.partialorder %v4376_v38, %v1484_v32  ;;  %vm1756_vm7 = vcmp.lt.s32.totalorder %v5277_v40, %v2190_v53 }
 0x42c   : > { %v2205_v14 = vsel %vm1786_vm8, 1.0, %v2469_v45  ;;  %vm1585_vm2 = vmand %vm1553_vm5, %vm1569_vm14  ;;  %vm1740_vm14 = vcmp.eq.f32.partialorder %v4379_v4, %v1484_v32 }
 0x42d   : > { %v1850_v29 = vadd.f32 %v2205_v14, %v2172_v55  ;;  %vm1601_vm3 = vmor %vm1537_vm11, %vm1585_vm2  ;;  %vm1724_vm11 = vcmp.gt.f32.partialorder %v4379_v4, %v1484_v32  ;;  %v5287_v32 = vld [vmem:[#allocation19_spill] sm:$0xff] }
 0x42e   : > { %v2170_v5 = vsel %vm1601_vm3, 1.0, %v2469_v45  ;;  %vm1768_vm1 = vmand %vm1736_vm0, %vm1752_vm9  ;;  %vm1572_vm9 = vcmp.lt.s32.totalorder %v5277_v40, %v1406_v57  ;;  %vm1556_vm0 = vcmp.eq.f32.partialorder %v4376_v38, %v1479_v16  ;;  %v1504_v8 = vpop.permute.xlu1 %1503  ;;  %v1499_v2 = vpop.permute.xlu0 %1498  ;;  %v1412_v15 = vadd.s32 %v4370_v59, %v5287_v32 }
 0x42f   : > { %vm1784_vm4 = vmor %vm1720_vm15, %vm1768_vm1  ;;  %1899 = vadd.xlane.f32.xlu0 %v1849_v27  ;;  %vm1540_vm15 = vcmp.gt.f32.partialorder %v4376_v38, %v1479_v16  ;;  %v2196_v57 = vadd.s32 4294967168, %v1413_v60 }
 0x430   : > { %v2203_v9 = vsel %vm1784_vm4, 1.0, %v2469_v45  ;;  %vm1589_vm5 = vmand %vm1557_vm12, %vm1573_vm10  ;;  %vm1755_vm10 = vcmp.lt.s32.totalorder %v5277_v40, %v2189_v26  ;;  %vm1739_vm12 = vcmp.eq.f32.partialorder %v4379_v4, %v1479_v16 }
 0x431   : > { %v1848_v63 = vadd.f32 %v2203_v9, %v2170_v5  ;;  %vm1605_vm8 = vmor %vm1541_vm13, %vm1589_vm5  ;;  %vm1723_vm13 = vcmp.gt.f32.partialorder %v4379_v4, %v1479_v16  ;;  %v2195_v5 = vadd.s32 4294967168, %v1412_v15  ;;  %v5288_v16 = vld [vmem:[#allocation22_spill] sm:$0xff] }
 0x432   : > { %v2174_v3 = vsel %vm1605_vm8, 1.0, %v2469_v45  ;;  %vm1772_vm2 = vmand %vm1740_vm14, %vm1756_vm7  ;;  %vm1575_vm7 = vcmp.lt.s32.totalorder %v5277_v40, %v1409_v19  ;;  %vm1559_vm14 = vcmp.eq.f32.partialorder %v4376_v38, %v1494_v56  ;;  %v1514_v55 = vpop.permute.xlu1 %1513  ;;  %v1509_v26 = vpop.permute.xlu0 %1508  ;;  %v1415_v48 = vadd.s32 %v4370_v59, %v5288_v16 }
 0x433   : > { %vm1788_vm3 = vmor %vm1724_vm11, %vm1772_vm2  ;;  %1897 = vadd.xlane.f32.xlu1 %v1848_v63  ;;  %1901 = vadd.xlane.f32.xlu0 %v1850_v29  ;;  %vm1543_vm11 = vcmp.gt.f32.partialorder %v4376_v38, %v1494_v56  ;;  %vm1758_vm2 = vcmp.lt.s32.totalorder %v5277_v40, %v2192_v22 }
 0x434   : > { %v2207_v25 = vsel %vm1788_vm3, 1.0, %v2469_v45  ;;  %vm1588_vm1 = vmand %vm1556_vm0, %vm1572_vm9  ;;  %vm1742_vm9 = vcmp.eq.f32.partialorder %v4379_v4, %v1494_v56 }
 0x435   : > { %v1852_v18 = vadd.f32 %v2207_v25, %v2174_v3  ;;  %vm1604_vm4 = vmor %vm1540_vm15, %vm1588_vm1  ;;  %vm1726_vm15 = vcmp.gt.f32.partialorder %v4379_v4, %v1494_v56  ;;  %v5289_v56 = vld [vmem:[#allocation21_spill] sm:$0xff] }
 0x436   : > { %v2173_v6 = vsel %vm1604_vm4, 1.0, %v2469_v45  ;;  %vm1771_vm5 = vmand %vm1739_vm12, %vm1755_vm10  ;;  %vm1574_vm10 = vcmp.lt.s32.totalorder %v5277_v40, %v1408_v34  ;;  %vm1558_vm12 = vcmp.eq.f32.partialorder %v4376_v38, %v1489_v44  ;;  %v1524_v3 = vpop.permute.xlu1 %1523  ;;  %v1414_v61 = vadd.s32 %v4370_v59, %v5289_v56 }
 0x437   : > { %vm1787_vm8 = vmor %vm1723_vm13, %vm1771_vm5  ;;  %1905 = vadd.xlane.f32.xlu0 %v1852_v18  ;;  %vm1542_vm13 = vcmp.gt.f32.partialorder %v4376_v38, %v1489_v44  ;;  %v2198_v34 = vadd.s32 4294967168, %v1415_v48 }
 0x438   : > { %v2206_v39 = vsel %vm1787_vm8, 1.0, %v2469_v45  ;;  %vm1591_vm0 = vmand %vm1559_vm14, %vm1575_vm7  ;;  %vm1757_vm7 = vcmp.lt.s32.totalorder %v5277_v40, %v2191_v20  ;;  %vm1741_vm14 = vcmp.eq.f32.partialorder %v4379_v4, %v1489_v44  ;;  %v1519_v20 = vpop.permute.xlu0 %1518 }
 0x439   : > { %v1851_v52 = vadd.f32 %v2206_v39, %v2173_v6  ;;  %vm1607_vm3 = vmor %vm1543_vm11, %vm1591_vm0  ;;  %vm1725_vm11 = vcmp.gt.f32.partialorder %v4379_v4, %v1489_v44  ;;  %v2197_v6 = vadd.s32 4294967168, %v1414_v61  ;;  %v5290_v44 = vld [vmem:[#allocation24_spill] sm:$0xff] }
 0x43a   : > { %v2176_v30 = vsel %vm1607_vm3, 1.0, %v2469_v45  ;;  %vm1774_vm1 = vmand %vm1742_vm9, %vm1758_vm2  ;;  %vm1577_vm2 = vcmp.lt.s32.totalorder %v5277_v40, %v1411_v0  ;;  %vm1561_vm9 = vcmp.eq.f32.partialorder %v4376_v38, %v1504_v8  ;;  %v1417_v51 = vadd.s32 %v4370_v59, %v5290_v44 }
 0x43b   : > { %vm1790_vm4 = vmor %vm1726_vm15, %vm1774_vm1  ;;  %1903 = vadd.xlane.f32.xlu1 %v1851_v52  ;;  %vm1545_vm15 = vcmp.gt.f32.partialorder %v4376_v38, %v1504_v8  ;;  %vm1760_vm1 = vcmp.lt.s32.totalorder %v5277_v40, %v2194_v1 }
 0x43c   : > { %v2209_v17 = vsel %vm1790_vm4, 1.0, %v2469_v45  ;;  %vm1590_vm5 = vmand %vm1558_vm12, %vm1574_vm10  ;;  %vm1744_vm10 = vcmp.eq.f32.partialorder %v4379_v4, %v1504_v8 }
 0x43d   : > { %v1854_v62 = vadd.f32 %v2209_v17, %v2176_v30  ;;  %vm1606_vm8 = vmor %vm1542_vm13, %vm1590_vm5  ;;  %vm1728_vm13 = vcmp.gt.f32.partialorder %v4379_v4, %v1504_v8  ;;  %v1534_v30 = vpop.permute.xlu1 %1533  ;;  %v2200_v8 = vadd.s32 4294967168, %v1417_v51 }
 0x43e   : > { %v2175_v27 = vsel %vm1606_vm8, 1.0, %v2469_v45  ;;  %vm1773_vm0 = vmand %vm1741_vm14, %vm1757_vm7  ;;  %vm1576_vm7 = vcmp.lt.s32.totalorder %v5277_v40, %v1410_v7  ;;  %vm1560_vm14 = vcmp.eq.f32.partialorder %v4376_v38, %v1499_v2  ;;  %v1416_v7 = vadd.s32 %v4370_v59, %v5291_v43  ;;  %v1529_v59 = vpop.permute.xlu0 %1528 }
 0x43f   : > { %vm1789_vm3 = vmor %vm1725_vm11, %vm1773_vm0  ;;  %1909 = vadd.xlane.f32.xlu0 %v1854_v62  ;;  %vm1544_vm11 = vcmp.gt.f32.partialorder %v4376_v38, %v1499_v2 }
 0x440   : > { %v2208_v10 = vsel %vm1789_vm3, 1.0, %v2469_v45  ;;  %vm1593_vm12 = vmand %vm1561_vm9, %vm1577_vm2  ;;  %vm1759_vm2 = vcmp.lt.s32.totalorder %v5277_v40, %v2193_v36  ;;  %vm1743_vm9 = vcmp.eq.f32.partialorder %v4379_v4, %v1499_v2 }
 0x441   : > { %v1853_v42 = vadd.f32 %v2208_v10, %v2175_v27  ;;  %vm1609_vm4 = vmor %vm1545_vm15, %vm1593_vm12  ;;  %vm1727_vm15 = vcmp.gt.f32.partialorder %v4379_v4, %v1499_v2  ;;  %v2199_v27 = vadd.s32 4294967168, %v1416_v7 }
 0x442   : > { %v2178_v49 = vsel %vm1609_vm4, 1.0, %v2469_v45  ;;  %vm1776_vm5 = vmand %vm1744_vm10, %vm1760_vm1  ;;  %vm1579_vm1 = vcmp.lt.s32.totalorder %v5277_v40, %v1413_v60  ;;  %vm1563_vm10 = vcmp.eq.f32.partialorder %v4376_v38, %v1514_v55 }
 0x443   : > { %vm1792_vm8 = vmor %vm1728_vm13, %vm1776_vm5  ;;  %1907 = vadd.xlane.f32.xlu1 %v1853_v42  ;;  %vm1547_vm13 = vcmp.gt.f32.partialorder %v4376_v38, %v1514_v55  ;;  %vm1762_vm5 = vcmp.lt.s32.totalorder %v5277_v40, %v2196_v57 }
 0x444   : > { %v2211_v53 = vsel %vm1792_vm8, 1.0, %v2469_v45  ;;  %vm1592_vm0 = vmand %vm1560_vm14, %vm1576_vm7  ;;  %vm1746_vm7 = vcmp.eq.f32.partialorder %v4379_v4, %v1514_v55 }
 0x445   : > { %v1856_v14 = vadd.f32 %v2211_v53, %v2178_v49  ;;  %vm1608_vm3 = vmor %vm1544_vm11, %vm1592_vm0  ;;  %vm1730_vm11 = vcmp.gt.f32.partialorder %v4379_v4, %v1514_v55 }
 0x446   : > { %v2177_v29 = vsel %vm1608_vm3, 1.0, %v2469_v45  ;;  %vm1775_vm12 = vmand %vm1743_vm9, %vm1759_vm2  ;;  %vm1578_vm2 = vcmp.lt.s32.totalorder %v5277_v40, %v1412_v15  ;;  %vm1562_vm9 = vcmp.eq.f32.partialorder %v4376_v38, %v1509_v26 }
 0x447   : > { %vm1791_vm4 = vmor %vm1727_vm15, %vm1775_vm12  ;;  %1913 = vadd.xlane.f32.xlu0 %v1856_v14  ;;  %vm1546_vm15 = vcmp.gt.f32.partialorder %v4376_v38, %v1509_v26 }
 0x448   : > { %v2210_v19 = vsel %vm1791_vm4, 1.0, %v2469_v45  ;;  %vm1595_vm14 = vmand %vm1563_vm10, %vm1579_vm1  ;;  %vm1761_vm1 = vcmp.lt.s32.totalorder %v5277_v40, %v2195_v5  ;;  %vm1745_vm10 = vcmp.eq.f32.partialorder %v4379_v4, %v1509_v26 }
 0x449   : > { %v1855_v9 = vadd.f32 %v2210_v19, %v2177_v29  ;;  %vm1611_vm8 = vmor %vm1547_vm13, %vm1595_vm14  ;;  %vm1729_vm13 = vcmp.gt.f32.partialorder %v4379_v4, %v1509_v26 }
 0x44a   : > { %v2180_v63 = vsel %vm1611_vm8, 1.0, %v2469_v45  ;;  %vm1778_vm0 = vmand %vm1746_vm7, %vm1762_vm5  ;;  %vm1581_vm5 = vcmp.lt.s32.totalorder %v5277_v40, %v1415_v48  ;;  %vm1565_vm7 = vcmp.eq.f32.partialorder %v4376_v38, %v1524_v3 }
 0x44b   : > { %vm1794_vm3 = vmor %vm1730_vm11, %vm1778_vm0  ;;  %1911 = vadd.xlane.f32.xlu1 %v1855_v9  ;;  %vm1549_vm11 = vcmp.gt.f32.partialorder %v4376_v38, %v1524_v3  ;;  %vm1764_vm0 = vcmp.lt.s32.totalorder %v5277_v40, %v2198_v34 }
 0x44c   : > { %v2213_v22 = vsel %vm1794_vm3, 1.0, %v2469_v45  ;;  %vm1594_vm12 = vmand %vm1562_vm9, %vm1578_vm2  ;;  %vm1748_vm2 = vcmp.eq.f32.partialorder %v4379_v4, %v1524_v3 }
 0x44d   : > { %v1858_v25 = vadd.f32 %v2213_v22, %v2180_v63  ;;  %vm1610_vm4 = vmor %vm1546_vm15, %vm1594_vm12  ;;  %vm1732_vm15 = vcmp.gt.f32.partialorder %v4379_v4, %v1524_v3 }
 0x44e   : > { %v2179_v18 = vsel %vm1610_vm4, 1.0, %v2469_v45  ;;  %vm1777_vm14 = vmand %vm1745_vm10, %vm1761_vm1  ;;  %vm1580_vm1 = vcmp.lt.s32.totalorder %v5277_v40, %v1414_v61  ;;  %vm1564_vm10 = vcmp.eq.f32.partialorder %v4376_v38, %v1519_v20  ;;  %vm1548_vm4 = vcmp.gt.f32.partialorder %v4376_v38, %v1519_v20 }
 0x44f   : > { %vm1793_vm8 = vmor %vm1729_vm13, %vm1777_vm14  ;;  %1917 = vadd.xlane.f32.xlu0 %v1858_v25  ;;  %vm1763_vm13 = vcmp.lt.s32.totalorder %v5277_v40, %v2197_v6 }
 0x450   : > { %v2212_v0 = vsel %vm1793_vm8, 1.0, %v2469_v45  ;;  %vm1597_vm9 = vmand %vm1565_vm7, %vm1581_vm5  ;;  %vm1747_vm8 = vcmp.eq.f32.partialorder %v4379_v4, %v1519_v20  ;;  %vm1731_vm7 = vcmp.gt.f32.partialorder %v4379_v4, %v1519_v20 }
 0x451   : > { %v1857_v39 = vadd.f32 %v2212_v0, %v2179_v18  ;;  %vm1613_vm3 = vmor %vm1549_vm11, %vm1597_vm9 }
 0x452   : > { %v2182_v52 = vsel %vm1613_vm3, 1.0, %v2469_v45  ;;  %vm1780_vm12 = vmand %vm1748_vm2, %vm1764_vm0  ;;  %vm1583_vm0 = vcmp.lt.s32.totalorder %v5277_v40, %v1417_v51  ;;  %vm1567_vm2 = vcmp.eq.f32.partialorder %v4376_v38, %v1534_v30 }
 0x453   : > { %vm1796_vm14 = vmor %vm1732_vm15, %vm1780_vm12  ;;  %1915 = vadd.xlane.f32.xlu1 %v1857_v39  ;;  %vm1551_vm15 = vcmp.gt.f32.partialorder %v4376_v38, %v1534_v30  ;;  %vm1766_vm12 = vcmp.lt.s32.totalorder %v5277_v40, %v2200_v8 }
 0x454   : > { %v2215_v1 = vsel %vm1796_vm14, 1.0, %v2469_v45  ;;  %vm1596_vm5 = vmand %vm1564_vm10, %vm1580_vm1  ;;  %vm1750_vm1 = vcmp.eq.f32.partialorder %v4379_v4, %v1534_v30 }
 0x455   : > { %v1860_v17 = vadd.f32 %v2215_v1, %v2182_v52  ;;  %vm1612_vm11 = vmor %vm1548_vm4, %vm1596_vm5  ;;  %vm1734_vm4 = vcmp.gt.f32.partialorder %v4379_v4, %v1534_v30  ;;  %vm1582_vm5 = vcmp.lt.s32.totalorder %v5277_v40, %v1416_v7 }
 0x456   : > { %v2181_v62 = vsel %vm1612_vm11, 1.0, %v2469_v45  ;;  %vm1779_vm9 = vmand %vm1747_vm8, %vm1763_vm13  ;;  %vm1566_vm13 = vcmp.eq.f32.partialorder %v4376_v38, %v1529_v59 }
 0x457   : > { %vm1795_vm3 = vmor %vm1731_vm7, %vm1779_vm9  ;;  %1921 = vadd.xlane.f32.xlu0 %v1860_v17  ;;  %vm1550_vm7 = vcmp.gt.f32.partialorder %v4376_v38, %v1529_v59  ;;  %vm1765_vm9 = vcmp.lt.s32.totalorder %v5277_v40, %v2199_v27  ;;  %v4541_v40 = vstv %s4305_s7 }
 0x458   : > { %v2214_v36 = vsel %vm1795_vm3, 1.0, %v2469_v45  ;;  %vm1599_vm10 = vmand %vm1567_vm2, %vm1583_vm0  ;;  %vm1749_vm3 = vcmp.eq.f32.partialorder %v4379_v4, %v1529_v59  ;;  %vm1733_vm2 = vcmp.gt.f32.partialorder %v4379_v4, %v1529_v59 }
 0x459   : > { %v1859_v2 = vadd.f32 %v2214_v36, %v2181_v62  ;;  %vm1615_vm14 = vmor %vm1551_vm15, %vm1599_vm10 }
 0x45a   : > { %v2184_v28 = vsel %vm1615_vm14, 1.0, %v2469_v45  ;;  %vm1782_vm8 = vmand %vm1750_vm1, %vm1766_vm12 }
 0x45b   : > { %vm1798_vm11 = vmor %vm1734_vm4, %vm1782_vm8  ;;  %1919 = vadd.xlane.f32.xlu1 %v1859_v2 }
 0x45c   : > { %v2217_v60 = vsel %vm1798_vm11, 1.0, %v2469_v45  ;;  %vm1598_vm0 = vmand %vm1566_vm13, %vm1582_vm5 }
 0x45d   : > { %v1862_v10 = vadd.f32 %v2217_v60, %v2184_v28  ;;  %vm1614_vm15 = vmor %vm1550_vm7, %vm1598_vm0 }
 0x45e   : > { %v2183_v42 = vsel %vm1614_vm15, 1.0, %v2469_v45  ;;  %vm1781_vm10 = vmand %vm1749_vm3, %vm1765_vm9 }
 0x45f   : > { %vm1797_vm12 = vmor %vm1733_vm2, %vm1781_vm10  ;;  %1925 = vadd.xlane.f32.xlu0 %v1862_v10 }
 0x460   : > { %v2216_v38 = vsel %vm1797_vm12, 1.0, %v2469_v45 }
 0x461   : > { %v1861_v49 = vadd.f32 %v2216_v38, %v2183_v42 }
 0x463   : > { %1923 = vadd.xlane.f32.xlu1 %v1861_v49 }
 0x4b8   : > { %v1896_v55 = vpop.xlane.xlu0 %1895 }
 0x4b9   : > { %vm1928_vm1 = vcmp.lt.f32.partialorder %v1896_v55, %v4541_v40 }
 0x4ba   : > { %v1944_v32 = vsel %vm1928_vm1, %v4322_v12, 0.0 }
 0x4bb   : > { %1976 = vrot.lane.b32.xlu1 %v1944_v32, %s2470_s11 }
 0x4bc   : > { %v1900_v4 = vpop.xlane.xlu0 %1899 }
 0x4bd   : > { %vm1930_vm4 = vcmp.lt.f32.partialorder %v1900_v4, %v4541_v40 }
 0x4be   : > { %v1946_v15 = vsel %vm1930_vm4, %v4320_v21, 0.0 }
 0x4bf   : > { %1980 = vrot.lane.b32.xlu1 %v1946_v15, %s2470_s11 }
 0x4c0   : > { %v1898_v45 = vpop.xlane.xlu1 %1897  ;;  %v1902_v57 = vpop.xlane.xlu0 %1901 }
 0x4c1   : > { %vm1929_vm14 = vcmp.lt.f32.partialorder %v1898_v45, %v4541_v40  ;;  %vm1931_vm5 = vcmp.lt.f32.partialorder %v1902_v57, %v4541_v40 }
 0x4c2   : > { %v1945_v53 = vsel %vm1929_vm14, %v4328_v54, 0.0  ;;  %v1947_v12 = vsel %vm1931_vm5, %v4326_v58, 0.0 }
 0x4c3   : > { %1978 = vrot.lane.b32.xlu0 %v1945_v53, %s2470_s11  ;;  %1982 = vrot.lane.b32.xlu1 %v1947_v12, %s2470_s11 }
 0x4c4   : > { %v1906_v14 = vpop.xlane.xlu0 %1905 }
 0x4c5   : > { %vm1933_vm13 = vcmp.lt.f32.partialorder %v1906_v14, %v4541_v40 }
 0x4c6   : > { %v1949_v21 = vsel %vm1933_vm13, %v4332_v37, 0.0 }
 0x4c7   : > { %1986 = vrot.lane.b32.xlu1 %v1949_v21, %s2470_s11 }
 0x4c8   : > { %v1904_v29 = vpop.xlane.xlu1 %1903 }
 0x4c9   : > { %vm1932_vm8 = vcmp.lt.f32.partialorder %v1904_v29, %v4541_v40 }
 0x4ca   : > { %v1948_v54 = vsel %vm1932_vm8, %v4334_v11, 0.0 }
 0x4cb   : > { %1984 = vrot.lane.b32.xlu0 %v1948_v54, %s2470_s11 }
 0x4cc   : > { %v1910_v5 = vpop.xlane.xlu0 %1909 }
 0x4cd   : > { %vm1935_vm7 = vcmp.lt.f32.partialorder %v1910_v5, %v4541_v40 }
 0x4ce   : > { %v1951_v58 = vsel %vm1935_vm7, %v4338_v35, 0.0 }
 0x4cf   : > { %1990 = vrot.lane.b32.xlu1 %v1951_v58, %s2470_s11 }
 0x4d0   : > { %v1908_v26 = vpop.xlane.xlu1 %1907 }
 0x4d1   : > { %vm1934_vm11 = vcmp.lt.f32.partialorder %v1908_v26, %v4541_v40 }
 0x4d2   : > { %v1950_v37 = vsel %vm1934_vm11, %v4340_v24, 0.0 }
 0x4d3   : > { %1988 = vrot.lane.b32.xlu0 %v1950_v37, %s2470_s11 }
 0x4d4   : > { %v1914_v16 = vpop.xlane.xlu0 %1913 }
 0x4d5   : > { %vm1937_vm9 = vcmp.lt.f32.partialorder %v1914_v16, %v4541_v40 }
 0x4d6   : > { %v1953_v11 = vsel %vm1937_vm9, %v4344_v46, 0.0 }
 0x4d7   : > { %1994 = vrot.lane.b32.xlu1 %v1953_v11, %s2470_s11 }
 0x4d8   : > { %v1912_v48 = vpop.xlane.xlu1 %1911 }
 0x4d9   : > { %vm1936_vm3 = vcmp.lt.f32.partialorder %v1912_v48, %v4541_v40 }
 0x4da   : > { %v1952_v35 = vsel %vm1936_vm3, %v4346_v33, 0.0 }
 0x4db   : > { %1992 = vrot.lane.b32.xlu0 %v1952_v35, %s2470_s11 }
 0x4dc   : > { %v1918_v19 = vpop.xlane.xlu0 %1917 }
 0x4dd   : > { %vm1939_vm0 = vcmp.lt.f32.partialorder %v1918_v19, %v4541_v40 }
 0x4de   : > { %v1955_v24 = vsel %vm1939_vm0, %v4350_v13, 0.0 }
 0x4df   : > { %1998 = vrot.lane.b32.xlu1 %v1955_v24, %s2470_s11 }
 0x4e0   : > { %v1916_v9 = vpop.xlane.xlu1 %1915 }
 0x4e1   : > { %vm1938_vm2 = vcmp.lt.f32.partialorder %v1916_v9, %v4541_v40  ;;  %v5293_v9 = vld [vmem:[#allocation9_spill] sm:$0xff] (%p1378_p1) }
 0x4e2   : > { %v1954_v46 = vsel %vm1938_vm2, %v4352_v31, 0.0  ;;  %vm2067_vm4 = vcmp.eq.s32.totalorder (%p1378_p1), %v5293_v9, 0  ;;  %vm2070_vm14 = vcmp.eq.s32.totalorder (%p1378_p1), %v5293_v9, 1  ;;  %vm2074_vm5 = vcmp.eq.s32.totalorder (%p1378_p1), %v5293_v9, 2 }
 0x4e3   : > { %1996 = vrot.lane.b32.xlu0 %v1954_v46, %s2470_s11  ;;  %v2068_v46 = vstv (%p1378_p1), %s4007_s26 }
 0x4e4   : > { %v1922_v63 = vpop.xlane.xlu0 %1921 }
 0x4e5   : > { %vm1941_vm15 = vcmp.lt.f32.partialorder %v1922_v63, %v4541_v40  ;;  %v2069_v63 = vsel (%p1378_p1), %vm2067_vm4, %v2068_v46, 0.0 }
 0x4e6   : > { %v1957_v33 = vsel %vm1941_vm15, %v4356_v50, 0.0 }
 0x4e7   : > { %2002 = vrot.lane.b32.xlu1 %v1957_v33, %s2470_s11  ;;  %v2075_v33 = vstv (%p1378_p1), %s4005_s5 }
 0x4e8   : > { %v1920_v3 = vpop.xlane.xlu1 %1919 }
 0x4e9   : > { %vm1940_vm10 = vcmp.lt.f32.partialorder %v1920_v3, %v4541_v40 }
 0x4ea   : > { %v1956_v13 = vsel %vm1940_vm10, %v4358_v47, 0.0 }
 0x4eb   : > { %2000 = vrot.lane.b32.xlu0 %v1956_v13, %s2470_s11 }
 0x4ec   : > { %v1926_v56 = vpop.xlane.xlu0 %1925 }
 0x4ed   : > { %vm1943_vm12 = vcmp.lt.f32.partialorder %v1926_v56, %v4541_v40  ;;  %v2076_v56 = vsel (%p1378_p1), %vm2074_vm5, %v2075_v33, 0.0 }
 0x4ee   : > { %v1959_v31 = vsel %vm1943_vm12, %v4362_v23, 0.0 }
 0x4ef   : > { %2006 = vrot.lane.b32.xlu1 %v1959_v31, %s2470_s11 }
 0x4f0   : > { %v1924_v61 = vpop.xlane.xlu1 %1923 }
 0x4f1   : > { %vm1942_vm1 = vcmp.lt.f32.partialorder %v1924_v61, %v4541_v40 }
 0x4f2   : > { %v1958_v50 = vsel %vm1942_vm1, %v4364_v41, 0.0 }
 0x4f3   : > { %2004 = vrot.lane.b32.xlu0 %v1958_v50, %s2470_s11 }
 0x52d   : > { %v1977_v34 = vpop.permute.xlu1 %1976 }
 0x52e   : > { %v2025_v47 = vsel %vm1332_vm6, %v1977_v34, 0.0 }
 0x531   : > { %v1981_v22 = vpop.permute.xlu1 %1980 }
 0x532   : > { %v2028_v23 = vsel %vm1332_vm6, %v1981_v22, 0.0 }
 0x535   : > { %v1979_v25 = vpop.permute.xlu0 %1978  ;;  %v1983_v6 = vpop.permute.xlu1 %1982 }
 0x536   : > { %v2026_v18 = vsel %vm1332_vm6, %v1979_v25, 0.0  ;;  %v2030_v44 = vsel %vm1332_vm6, %v1983_v6, 0.0 }
 0x537   : > { %v2027_v20 = vadd.f32 %v2026_v18, %v2025_v47 }
 0x539   : > { %v2029_v51 = vadd.f32 %v2028_v23, %v2027_v20  ;;  %v1987_v52 = vpop.permute.xlu1 %1986 }
 0x53a   : > { %v2034_v8 = vsel %vm1332_vm6, %v1987_v52, 0.0 }
 0x53b   : > { %v2031_v0 = vadd.f32 %v2030_v44, %v2029_v51 }
 0x53d   : > { %v1985_v39 = vpop.permute.xlu0 %1984 }
 0x53e   : > { %v2032_v41 = vsel %vm1332_vm6, %v1985_v39, 0.0 }
 0x53f   : > { %v2033_v30 = vadd.f32 %v2032_v41, %v2031_v0 }
 0x541   : > { %v2035_v43 = vadd.f32 %v2034_v8, %v2033_v30  ;;  %v1991_v1 = vpop.permute.xlu1 %1990 }
 0x542   : > { %v2038_v59 = vsel %vm1332_vm6, %v1991_v1, 0.0 }
 0x545   : > { %v1989_v7 = vpop.permute.xlu0 %1988 }
 0x546   : > { %v2036_v17 = vsel %vm1332_vm6, %v1989_v7, 0.0 }
 0x547   : > { %v2037_v62 = vadd.f32 %v2036_v17, %v2035_v43 }
 0x549   : > { %v2039_v27 = vadd.f32 %v2038_v59, %v2037_v62  ;;  %v1995_v2 = vpop.permute.xlu1 %1994 }
 0x54a   : > { %v2042_v10 = vsel %vm1332_vm6, %v1995_v2, 0.0 }
 0x54d   : > { %v1993_v36 = vpop.permute.xlu0 %1992 }
 0x54e   : > { %v2040_v28 = vsel %vm1332_vm6, %v1993_v36, 0.0 }
 0x54f   : > { %v2041_v60 = vadd.f32 %v2040_v28, %v2039_v27 }
 0x551   : > { %v2043_v42 = vadd.f32 %v2042_v10, %v2041_v60  ;;  %v1999_v49 = vpop.permute.xlu1 %1998 }
 0x552   : > { %v2046_v32 = vsel %vm1332_vm6, %v1999_v49, 0.0 }
 0x555   : > { %v1997_v38 = vpop.permute.xlu0 %1996 }
 0x556   : > { %v2044_v40 = vsel %vm1332_vm6, %v1997_v38, 0.0 }
 0x557   : > { %v2045_v55 = vadd.f32 %v2044_v40, %v2043_v42 }
 0x559   : > { %v2047_v4 = vadd.f32 %v2046_v32, %v2045_v55  ;;  %v2003_v45 = vpop.permute.xlu1 %2002 }
 0x55a   : > { %v2050_v12 = vsel %vm1332_vm6, %v2003_v45, 0.0 }
 0x55d   : > { %v2001_v15 = vpop.permute.xlu0 %2000 }
 0x55e   : > { %v2048_v57 = vsel %vm1332_vm6, %v2001_v15, 0.0 }
 0x55f   : > { %v2049_v53 = vadd.f32 %v2048_v57, %v2047_v4 }
 0x561   : > { %v2051_v14 = vadd.f32 %v2050_v12, %v2049_v53  ;;  %v2007_v21 = vpop.permute.xlu1 %2006 }
 0x562   : > { %v2054_v5 = vsel %vm1332_vm6, %v2007_v21, 0.0 }
 0x565   : > { %v2005_v29 = vpop.permute.xlu0 %2004 }
 0x566   : > { %v2052_v54 = vsel %vm1332_vm6, %v2005_v29, 0.0 }
 0x567   : > { %v2053_v58 = vadd.f32 %v2052_v54, %v2051_v14 }
 0x569   : > { %v2055_v26 = vadd.f32 %v2054_v5, %v2053_v58 }
 0x56b   : > { %2056 = vadd.xlane.f32.xlu0 %v2055_v26 }
 0x5f8   : > { %v2057_v37 = vpop.xlane.xlu0 %2056 }
 0x5f9   : > { %v2058_v16 = vrot.slane %v2057_v37, 4 }
 0x5fb   : > { %v2059_v11 = vadd.f32 %v2058_v16, %v2057_v37 }
 0x5fd   : > { %v2060_v48 = vrot.slane %v2059_v11, 2 }
 0x5ff   : > { %v2061_v35 = vadd.f32 %v2060_v48, %v2059_v11 }
 0x601   : > { %v2062_v19 = vrot.slane %v2061_v35, 1 }
 0x603   : > { %v2063_v24 = vadd.f32 %v2062_v19, %v2061_v35 }
 0x605   : > { %2230 = vpush %v2063_v24 }
 0x633   :  { %1380 = sbr.rel (!%p1378_p1) target bundleno = 924 (0x39c), region = 73 }
 0x636   : > { %s2231_s12 = spop %2230 }
 0x637   : > { %s2065_s13 = sadd.f32 %s2458_s2, %s2231_s12  }
 0x639   : > { %s5292_s2 = smov %s2065_s13  ;;  %s2066_s14 = sadd.f32 (%p1378_p1), %s4009_s27, %s2065_s13 }
 0x63b   :  { %v2071_v3 = vstv %s2066_s14 }
 0x63c   :  { %v2072_v13 = vsel %vm2070_vm14, %v2071_v3, 0.0 }
 0x63d   :  { %v2073_v31 = vadd.f32 %v2072_v13, %v2069_v63 }
 0x63f   :  { %v2077_v61 = vadd.f32 %v2076_v56, %v2073_v31 }
 0x641   :  { %2078 = vst [vmem:[#allocation5] sm:$0x1] %v2077_v61 }
 0x642   :  { %2419 = shalt.err (!%p2416_p6)
}
 0x643   :  { %s2420_s21 = scalar_lea.hbm %s4637_s6, 16 }
 0x644   :  { %p2421_p7 = scmp.ne.s32.totalorder %s4637_s6, %s2420_s21  ;;  %p2424_p8 = scmp.lt.u32.totalorder %s2420_s21, %s4637_s6 }
 0x646   :  { %p2426_p9 = pnand %p2424_p8, %p2421_p7 }
 0x648   :  { %2429 = shalt.err (!%p2426_p9)
}
 0x649   :  { %2088 = dma.vmem_to_hbm [thread:$0]  %s2086_s16, 16, %s4637_s6, [#allocation6]  }
 0x64a   :  { %2446 = dma.done.wait [#allocation6], 16  }
 0x64b   :  { %2447 = vsyncadd [#allocation6], 4294967280 }
 0x64c   :  { %2092 = vsyncpa [#allocation6], 1 }

</bundles_post_ra>
